<compile_context>
chip_gen: v6e
topology: v6e:2x2x1
jax: 0.10.0
libtpu: 0.0.40
codegen_flags: <defaults>
</compile_context>

<pallas_src>
import jax
import jax.numpy as jnp
from jax.experimental import pallas as pl
from jax.experimental.pallas import tpu as pltpu


# ------------------------------ fused kernel ---------------------------------
def make_fused_gru_kernel(num_layers):
    """Builds a kernel for:  GRU(num_layers) -> relu -> fc1 -> relu -> fc2.

    Ref order: x, (w_ih, w_hh, b_ih, b_hh) * num_layers, w1, b1, w2, b2, out
      x     : (B, T, I)
      w_ih  : (3, in_dim, H)   gate order r, z, n (PyTorch order)
      w_hh  : (3, H, H)
      b_ih  : (3, 1, H)
      b_hh  : (3, 1, H)
      w1    : (H, 128),  b1 : (1, 128)
      w2    : (128, C),  b2 : (1, C)
      out   : (num_layers * B, C)
    """

    def kernel(*refs):
        x_ref = refs[0]
        layer_refs = [refs[1 + 4 * l: 5 + 4 * l] for l in range(num_layers)]
        w1_ref, b1_ref, w2_ref, b2_ref = refs[1 + 4 * num_layers: 5 + 4 * num_layers]
        o_ref = refs[5 + 4 * num_layers]

        B, T, _ = x_ref.shape
        H = w1_ref.shape[0]

        # Layer-0 input rows are batch-major (row = b*T + t); this reshape is a
        # layout no-op for the (B, T, I) VMEM tile.
        xin = x_ref[...].reshape(B * T, -1)
        batch_major = True

        hn_parts = []
        for l, (wih_ref, whh_ref, bih_ref, bhh_ref) in enumerate(layer_refs):
            # ---- hoisted input-to-hidden projection (all timesteps, all gates) ----
            gi_slabs = []  # gi_slabs[g][t] -> (B, H)
            for g in range(3):
                gi_g = (jnp.dot(xin, wih_ref[g], preferred_element_type=jnp.float32)
                        + bih_ref[g])
                if batch_major:
                    gi_g = gi_g.reshape(B, T, H)
                    gi_slabs.append([gi_g[:, t, :] for t in range(T)])
                else:
                    # time-major rows: timestep t occupies rows [t*B, (t+1)*B)
                    gi_slabs.append([gi_g[t * B:(t + 1) * B, :] for t in range(T)])
            gi_r, gi_z, gi_n = gi_slabs

            # ---- recurrence (serial path: only h @ W_hh + VPU/EUP gate math) ----
            h = jnp.zeros((B, H), jnp.float32)
            outs = []
            for t in range(T):
                gh_r = jnp.dot(h, whh_ref[0], preferred_element_type=jnp.float32) + bhh_ref[0]
                gh_z = jnp.dot(h, whh_ref[1], preferred_element_type=jnp.float32) + bhh_ref[1]
                gh_n = jnp.dot(h, whh_ref[2], preferred_element_type=jnp.float32) + bhh_ref[2]
                r = jax.nn.sigmoid(gi_r[t] + gh_r)
                z = jax.nn.sigmoid(gi_z[t] + gh_z)
                n = jnp.tanh(gi_n[t] + r * gh_n)
                h = (1.0 - z) * n + z * h
                outs.append(h)

            hn_parts.append(h)
            if l + 1 < num_layers:
                # Next layer consumes the full sequence, time-major, kept resident
                # in vregs/VMEM (never written back to HBM).
                xin = jnp.concatenate(outs, axis=0)  # (T*B, H)
                batch_major = False

        # ---- head: relu -> fc1 -> relu -> fc2 (hn ordering matches hn.view(-1, H)) ----
        hn = jnp.concatenate(hn_parts, axis=0)  # (num_layers*B, H)
        y = jnp.maximum(hn, 0.0)
        y = jnp.dot(y, w1_ref[...], preferred_element_type=jnp.float32) + b1_ref[...]
        y = jnp.maximum(y, 0.0)
        o_ref[...] = (jnp.dot(y, w2_ref[...], preferred_element_type=jnp.float32)
                      + b2_ref[...]).astype(o_ref.dtype)

    return kernel


def gru_model_forward(x_bti, params):
    """x_bti: (batch, seq_len, input_size), matching PyTorch batch_first=True."""
    B, T, _ = x_bti.shape
    num_layers = len(params["gru"])
    C = params["w2"].shape[1]

    inputs = [x_bti]
    for (w_ih, w_hh, b_ih, b_hh) in params["gru"]:
        inputs += [w_ih, w_hh, b_ih, b_hh]
    inputs += [params["w1"], params["b1"], params["w2"], params["b2"]]

    # Empty grid: everything (a few tens of KB at these shapes) lives in VMEM for
    # the single kernel invocation. Default BlockSpecs = whole-array VMEM blocks.
    # TODO(synk): for large B/H, re-introduce a batch grid axis ("parallel" for
    # v7x's 2 TCs) and bf16 weights with an explicit vmem_limit_bytes.
    return pl.pallas_call(
        make_fused_gru_kernel(num_layers),
        out_shape=jax.ShapeDtypeStruct((num_layers * B, C), jnp.float32),
    )(*inputs)


# --------------------------- parameter construction --------------------------
def init_params(key, num_classes, input_size, hidden_size, num_layers):
    H = hidden_size
    keys = jax.random.split(key, 4 * num_layers + 4)
    ki = iter(keys)
    bound = 1.0 / jnp.sqrt(H)
    gru_params = []
    for layer in range(num_layers):
        in_dim = input_size if layer == 0 else H
        # per-gate layout (gate order r, z, n), stored transposed vs PyTorch so the
        # kernel computes x @ W
        w_ih = jax.random.uniform(next(ki), (3, in_dim, H), jnp.float32, -bound, bound)
        w_hh = jax.random.uniform(next(ki), (3, H, H), jnp.float32, -bound, bound)
        b_ih = jax.random.uniform(next(ki), (3, 1, H), jnp.float32, -bound, bound)
        b_hh = jax.random.uniform(next(ki), (3, 1, H), jnp.float32, -bound, bound)
        gru_params.append((w_ih, w_hh, b_ih, b_hh))

    b1f = 1.0 / jnp.sqrt(H)
    w1 = jax.random.uniform(next(ki), (H, 128), jnp.float32, -b1f, b1f)
    b1 = jax.random.uniform(next(ki), (1, 128), jnp.float32, -b1f, b1f)
    b2f = 1.0 / jnp.sqrt(128.0)
    w2 = jax.random.uniform(next(ki), (128, num_classes), jnp.float32, -b2f, b2f)
    b2 = jax.random.uniform(next(ki), (1, num_classes), jnp.float32, -b2f, b2f)
    return {"gru": gru_params, "w1": w1, "b1": b1, "w2": w2, "b2": b2}


# ------------------------------ pure-JAX reference ----------------------------
def reference_forward(x_bti, params):
    B, T, _ = x_bti.shape
    inp = jnp.transpose(x_bti, (1, 0, 2))  # (T, B, I)
    hn_layers = []
    for (w_ih, w_hh, b_ih, b_hh) in params["gru"]:
        H = w_hh.shape[-1]
        h = jnp.zeros((B, H), jnp.float32)
        outs = []
        for t in range(T):
            x_t = inp[t]
            r = jax.nn.sigmoid(x_t @ w_ih[0] + b_ih[0] + h @ w_hh[0] + b_hh[0])
            z = jax.nn.sigmoid(x_t @ w_ih[1] + b_ih[1] + h @ w_hh[1] + b_hh[1])
            n = jnp.tanh(x_t @ w_ih[2] + b_ih[2] + r * (h @ w_hh[2] + b_hh[2]))
            h = (1.0 - z) * n + z * h
            outs.append(h)
        inp = jnp.stack(outs, axis=0)
        hn_layers.append(h)
    hn = jnp.concatenate(hn_layers, axis=0)
    y = jnp.maximum(hn, 0.0)
    y = jnp.maximum(y @ params["w1"] + params["b1"], 0.0)
    return y @ params["w2"] + params["b2"]


if __name__ == "__main__":
    num_classes, input_size, hidden_size, num_layers, seq_length = 5, 4, 32, 2, 8
    batch = 2

    key = jax.random.PRNGKey(0)
    kx, kp = jax.random.split(key)
    x = jax.random.normal(kx, (batch, seq_length, input_size), jnp.float32)
    params = init_params(kp, num_classes, input_size, hidden_size, num_layers)

    out = jax.block_until_ready(gru_model_forward(x, params))
    ref = reference_forward(x, params)

    assert out.shape == (num_layers * batch, num_classes), out.shape
    assert jnp.allclose(out, ref, atol=1e-4, rtol=1e-4), "mismatch vs reference"

    print("KERNEL_OK")
</pallas_src>

<mosaic_0001>
module attributes {stable_mosaic.version = 11 : i64} {
  func.func @kernel(%arg0: memref<2x8x4xf32, #tpu.memory_space<vmem>>, %arg1: memref<3x4x32xf32, #tpu.memory_space<vmem>>, %arg2: memref<3x32x32xf32, #tpu.memory_space<vmem>>, %arg3: memref<3x1x32xf32, #tpu.memory_space<vmem>>, %arg4: memref<3x1x32xf32, #tpu.memory_space<vmem>>, %arg5: memref<3x32x32xf32, #tpu.memory_space<vmem>>, %arg6: memref<3x32x32xf32, #tpu.memory_space<vmem>>, %arg7: memref<3x1x32xf32, #tpu.memory_space<vmem>>, %arg8: memref<3x1x32xf32, #tpu.memory_space<vmem>>, %arg9: memref<32x128xf32, #tpu.memory_space<vmem>>, %arg10: memref<1x128xf32, #tpu.memory_space<vmem>>, %arg11: memref<128x5xf32, #tpu.memory_space<vmem>>, %arg12: memref<1x5xf32, #tpu.memory_space<vmem>>, %arg13: memref<4x5xf32, #tpu.memory_space<vmem>>) attributes {dimension_semantics = [], scalar_prefetch = 0 : i64, scratch_operands = 0 : i64, tpu.core_type = #tpu.core_type<tc>} {
    %c0 = arith.constant 0 : index
    %c0_0 = arith.constant 0 : index
    %c0_1 = arith.constant 0 : index
    %0 = vector.load %arg0[%c0, %c0_0, %c0_1] : memref<2x8x4xf32, #tpu.memory_space<vmem>>, vector<2x8x4xf32>
    %1 = vector.shape_cast %0 : vector<2x8x4xf32> to vector<16x4xf32>
    %c0_2 = arith.constant 0 : index
    %c0_3 = arith.constant 0 : index
    %c0_4 = arith.constant 0 : index
    %2 = vector.load %arg1[%c0_2, %c0_3, %c0_4] : memref<3x4x32xf32, #tpu.memory_space<vmem>>, vector<1x4x32xf32>
    %3 = vector.shape_cast %2 : vector<1x4x32xf32> to vector<4x32xf32>
    %cst = arith.constant dense<0.000000e+00> : vector<16x32xf32>
    %4 = tpu.matmul %1, %3, %cst {dimension_numbers = #tpu.dot_dimension_numbers<[1], [0], [0], [1], [0, 0, 1, 1], [], []>} : vector<16x4xf32>, vector<4x32xf32>, vector<16x32xf32> -> vector<16x32xf32>
    %c0_5 = arith.constant 0 : index
    %c0_6 = arith.constant 0 : index
    %c0_7 = arith.constant 0 : index
    %5 = vector.load %arg3[%c0_5, %c0_6, %c0_7] : memref<3x1x32xf32, #tpu.memory_space<vmem>>, vector<1x1x32xf32>
    %6 = vector.shape_cast %5 : vector<1x1x32xf32> to vector<1x32xf32>
    %7 = vector.broadcast %6 : vector<1x32xf32> to vector<16x32xf32>
    %8 = arith.addf %4, %7 : vector<16x32xf32>
    %9 = vector.shape_cast %8 : vector<16x32xf32> to vector<2x8x32xf32>
    %10 = vector.extract_strided_slice %9 {offsets = [0, 0, 0], sizes = [2, 1, 32], strides = [1, 1, 1]} : vector<2x8x32xf32> to vector<2x1x32xf32>
    %11 = vector.shape_cast %10 : vector<2x1x32xf32> to vector<2x32xf32>
    %12 = vector.extract_strided_slice %9 {offsets = [0, 1, 0], sizes = [2, 1, 32], strides = [1, 1, 1]} : vector<2x8x32xf32> to vector<2x1x32xf32>
    %13 = vector.shape_cast %12 : vector<2x1x32xf32> to vector<2x32xf32>
    %14 = vector.extract_strided_slice %9 {offsets = [0, 2, 0], sizes = [2, 1, 32], strides = [1, 1, 1]} : vector<2x8x32xf32> to vector<2x1x32xf32>
    %15 = vector.shape_cast %14 : vector<2x1x32xf32> to vector<2x32xf32>
    %16 = vector.extract_strided_slice %9 {offsets = [0, 3, 0], sizes = [2, 1, 32], strides = [1, 1, 1]} : vector<2x8x32xf32> to vector<2x1x32xf32>
    %17 = vector.shape_cast %16 : vector<2x1x32xf32> to vector<2x32xf32>
    %18 = vector.extract_strided_slice %9 {offsets = [0, 4, 0], sizes = [2, 1, 32], strides = [1, 1, 1]} : vector<2x8x32xf32> to vector<2x1x32xf32>
    %19 = vector.shape_cast %18 : vector<2x1x32xf32> to vector<2x32xf32>
    %20 = vector.extract_strided_slice %9 {offsets = [0, 5, 0], sizes = [2, 1, 32], strides = [1, 1, 1]} : vector<2x8x32xf32> to vector<2x1x32xf32>
    %21 = vector.shape_cast %20 : vector<2x1x32xf32> to vector<2x32xf32>
    %22 = vector.extract_strided_slice %9 {offsets = [0, 6, 0], sizes = [2, 1, 32], strides = [1, 1, 1]} : vector<2x8x32xf32> to vector<2x1x32xf32>
    %23 = vector.shape_cast %22 : vector<2x1x32xf32> to vector<2x32xf32>
    %24 = vector.extract_strided_slice %9 {offsets = [0, 7, 0], sizes = [2, 1, 32], strides = [1, 1, 1]} : vector<2x8x32xf32> to vector<2x1x32xf32>
    %25 = vector.shape_cast %24 : vector<2x1x32xf32> to vector<2x32xf32>
    %c1 = arith.constant 1 : index
    %c0_8 = arith.constant 0 : index
    %c0_9 = arith.constant 0 : index
    %26 = vector.load %arg1[%c1, %c0_8, %c0_9] : memref<3x4x32xf32, #tpu.memory_space<vmem>>, vector<1x4x32xf32>
    %27 = vector.shape_cast %26 : vector<1x4x32xf32> to vector<4x32xf32>
    %cst_10 = arith.constant dense<0.000000e+00> : vector<16x32xf32>
    %28 = tpu.matmul %1, %27, %cst_10 {dimension_numbers = #tpu.dot_dimension_numbers<[1], [0], [0], [1], [0, 0, 1, 1], [], []>} : vector<16x4xf32>, vector<4x32xf32>, vector<16x32xf32> -> vector<16x32xf32>
    %c1_11 = arith.constant 1 : index
    %c0_12 = arith.constant 0 : index
    %c0_13 = arith.constant 0 : index
    %29 = vector.load %arg3[%c1_11, %c0_12, %c0_13] : memref<3x1x32xf32, #tpu.memory_space<vmem>>, vector<1x1x32xf32>
    %30 = vector.shape_cast %29 : vector<1x1x32xf32> to vector<1x32xf32>
    %31 = vector.broadcast %30 : vector<1x32xf32> to vector<16x32xf32>
    %32 = arith.addf %28, %31 : vector<16x32xf32>
    %33 = vector.shape_cast %32 : vector<16x32xf32> to vector<2x8x32xf32>
    %34 = vector.extract_strided_slice %33 {offsets = [0, 0, 0], sizes = [2, 1, 32], strides = [1, 1, 1]} : vector<2x8x32xf32> to vector<2x1x32xf32>
    %35 = vector.shape_cast %34 : vector<2x1x32xf32> to vector<2x32xf32>
    %36 = vector.extract_strided_slice %33 {offsets = [0, 1, 0], sizes = [2, 1, 32], strides = [1, 1, 1]} : vector<2x8x32xf32> to vector<2x1x32xf32>
    %37 = vector.shape_cast %36 : vector<2x1x32xf32> to vector<2x32xf32>
    %38 = vector.extract_strided_slice %33 {offsets = [0, 2, 0], sizes = [2, 1, 32], strides = [1, 1, 1]} : vector<2x8x32xf32> to vector<2x1x32xf32>
    %39 = vector.shape_cast %38 : vector<2x1x32xf32> to vector<2x32xf32>
    %40 = vector.extract_strided_slice %33 {offsets = [0, 3, 0], sizes = [2, 1, 32], strides = [1, 1, 1]} : vector<2x8x32xf32> to vector<2x1x32xf32>
    %41 = vector.shape_cast %40 : vector<2x1x32xf32> to vector<2x32xf32>
    %42 = vector.extract_strided_slice %33 {offsets = [0, 4, 0], sizes = [2, 1, 32], strides = [1, 1, 1]} : vector<2x8x32xf32> to vector<2x1x32xf32>
    %43 = vector.shape_cast %42 : vector<2x1x32xf32> to vector<2x32xf32>
    %44 = vector.extract_strided_slice %33 {offsets = [0, 5, 0], sizes = [2, 1, 32], strides = [1, 1, 1]} : vector<2x8x32xf32> to vector<2x1x32xf32>
    %45 = vector.shape_cast %44 : vector<2x1x32xf32> to vector<2x32xf32>
    %46 = vector.extract_strided_slice %33 {offsets = [0, 6, 0], sizes = [2, 1, 32], strides = [1, 1, 1]} : vector<2x8x32xf32> to vector<2x1x32xf32>
    %47 = vector.shape_cast %46 : vector<2x1x32xf32> to vector<2x32xf32>
    %48 = vector.extract_strided_slice %33 {offsets = [0, 7, 0], sizes = [2, 1, 32], strides = [1, 1, 1]} : vector<2x8x32xf32> to vector<2x1x32xf32>
    %49 = vector.shape_cast %48 : vector<2x1x32xf32> to vector<2x32xf32>
    %c2 = arith.constant 2 : index
    %c0_14 = arith.constant 0 : index
    %c0_15 = arith.constant 0 : index
    %50 = vector.load %arg1[%c2, %c0_14, %c0_15] : memref<3x4x32xf32, #tpu.memory_space<vmem>>, vector<1x4x32xf32>
    %51 = vector.shape_cast %50 : vector<1x4x32xf32> to vector<4x32xf32>
    %cst_16 = arith.constant dense<0.000000e+00> : vector<16x32xf32>
    %52 = tpu.matmul %1, %51, %cst_16 {dimension_numbers = #tpu.dot_dimension_numbers<[1], [0], [0], [1], [0, 0, 1, 1], [], []>} : vector<16x4xf32>, vector<4x32xf32>, vector<16x32xf32> -> vector<16x32xf32>
    %c2_17 = arith.constant 2 : index
    %c0_18 = arith.constant 0 : index
    %c0_19 = arith.constant 0 : index
    %53 = vector.load %arg3[%c2_17, %c0_18, %c0_19] : memref<3x1x32xf32, #tpu.memory_space<vmem>>, vector<1x1x32xf32>
    %54 = vector.shape_cast %53 : vector<1x1x32xf32> to vector<1x32xf32>
    %55 = vector.broadcast %54 : vector<1x32xf32> to vector<16x32xf32>
    %56 = arith.addf %52, %55 : vector<16x32xf32>
    %57 = vector.shape_cast %56 : vector<16x32xf32> to vector<2x8x32xf32>
    %58 = vector.extract_strided_slice %57 {offsets = [0, 0, 0], sizes = [2, 1, 32], strides = [1, 1, 1]} : vector<2x8x32xf32> to vector<2x1x32xf32>
    %59 = vector.shape_cast %58 : vector<2x1x32xf32> to vector<2x32xf32>
    %60 = vector.extract_strided_slice %57 {offsets = [0, 1, 0], sizes = [2, 1, 32], strides = [1, 1, 1]} : vector<2x8x32xf32> to vector<2x1x32xf32>
    %61 = vector.shape_cast %60 : vector<2x1x32xf32> to vector<2x32xf32>
    %62 = vector.extract_strided_slice %57 {offsets = [0, 2, 0], sizes = [2, 1, 32], strides = [1, 1, 1]} : vector<2x8x32xf32> to vector<2x1x32xf32>
    %63 = vector.shape_cast %62 : vector<2x1x32xf32> to vector<2x32xf32>
    %64 = vector.extract_strided_slice %57 {offsets = [0, 3, 0], sizes = [2, 1, 32], strides = [1, 1, 1]} : vector<2x8x32xf32> to vector<2x1x32xf32>
    %65 = vector.shape_cast %64 : vector<2x1x32xf32> to vector<2x32xf32>
    %66 = vector.extract_strided_slice %57 {offsets = [0, 4, 0], sizes = [2, 1, 32], strides = [1, 1, 1]} : vector<2x8x32xf32> to vector<2x1x32xf32>
    %67 = vector.shape_cast %66 : vector<2x1x32xf32> to vector<2x32xf32>
    %68 = vector.extract_strided_slice %57 {offsets = [0, 5, 0], sizes = [2, 1, 32], strides = [1, 1, 1]} : vector<2x8x32xf32> to vector<2x1x32xf32>
    %69 = vector.shape_cast %68 : vector<2x1x32xf32> to vector<2x32xf32>
    %70 = vector.extract_strided_slice %57 {offsets = [0, 6, 0], sizes = [2, 1, 32], strides = [1, 1, 1]} : vector<2x8x32xf32> to vector<2x1x32xf32>
    %71 = vector.shape_cast %70 : vector<2x1x32xf32> to vector<2x32xf32>
    %72 = vector.extract_strided_slice %57 {offsets = [0, 7, 0], sizes = [2, 1, 32], strides = [1, 1, 1]} : vector<2x8x32xf32> to vector<2x1x32xf32>
    %73 = vector.shape_cast %72 : vector<2x1x32xf32> to vector<2x32xf32>
    %cst_20 = arith.constant 0.000000e+00 : f32
    %74 = vector.broadcast %cst_20 : f32 to vector<2x32xf32>
    %c0_21 = arith.constant 0 : index
    %c0_22 = arith.constant 0 : index
    %c0_23 = arith.constant 0 : index
    %75 = vector.load %arg2[%c0_21, %c0_22, %c0_23] : memref<3x32x32xf32, #tpu.memory_space<vmem>>, vector<1x32x32xf32>
    %76 = vector.shape_cast %75 : vector<1x32x32xf32> to vector<32x32xf32>
    %cst_24 = arith.constant dense<0.000000e+00> : vector<2x32xf32>
    %77 = tpu.matmul %74, %76, %cst_24 {dimension_numbers = #tpu.dot_dimension_numbers<[1], [0], [0], [1], [0, 0, 1, 1], [], []>} : vector<2x32xf32>, vector<32x32xf32>, vector<2x32xf32> -> vector<2x32xf32>
    %c0_25 = arith.constant 0 : index
    %c0_26 = arith.constant 0 : index
    %c0_27 = arith.constant 0 : index
    %78 = vector.load %arg4[%c0_25, %c0_26, %c0_27] : memref<3x1x32xf32, #tpu.memory_space<vmem>>, vector<1x1x32xf32>
    %79 = vector.shape_cast %78 : vector<1x1x32xf32> to vector<1x32xf32>
    %80 = vector.broadcast %79 : vector<1x32xf32> to vector<2x32xf32>
    %81 = arith.addf %77, %80 : vector<2x32xf32>
    %c1_28 = arith.constant 1 : index
    %c0_29 = arith.constant 0 : index
    %c0_30 = arith.constant 0 : index
    %82 = vector.load %arg2[%c1_28, %c0_29, %c0_30] : memref<3x32x32xf32, #tpu.memory_space<vmem>>, vector<1x32x32xf32>
    %83 = vector.shape_cast %82 : vector<1x32x32xf32> to vector<32x32xf32>
    %cst_31 = arith.constant dense<0.000000e+00> : vector<2x32xf32>
    %84 = tpu.matmul %74, %83, %cst_31 {dimension_numbers = #tpu.dot_dimension_numbers<[1], [0], [0], [1], [0, 0, 1, 1], [], []>} : vector<2x32xf32>, vector<32x32xf32>, vector<2x32xf32> -> vector<2x32xf32>
    %c1_32 = arith.constant 1 : index
    %c0_33 = arith.constant 0 : index
    %c0_34 = arith.constant 0 : index
    %85 = vector.load %arg4[%c1_32, %c0_33, %c0_34] : memref<3x1x32xf32, #tpu.memory_space<vmem>>, vector<1x1x32xf32>
    %86 = vector.shape_cast %85 : vector<1x1x32xf32> to vector<1x32xf32>
    %87 = vector.broadcast %86 : vector<1x32xf32> to vector<2x32xf32>
    %88 = arith.addf %84, %87 : vector<2x32xf32>
    %c2_35 = arith.constant 2 : index
    %c0_36 = arith.constant 0 : index
    %c0_37 = arith.constant 0 : index
    %89 = vector.load %arg2[%c2_35, %c0_36, %c0_37] : memref<3x32x32xf32, #tpu.memory_space<vmem>>, vector<1x32x32xf32>
    %90 = vector.shape_cast %89 : vector<1x32x32xf32> to vector<32x32xf32>
    %cst_38 = arith.constant dense<0.000000e+00> : vector<2x32xf32>
    %91 = tpu.matmul %74, %90, %cst_38 {dimension_numbers = #tpu.dot_dimension_numbers<[1], [0], [0], [1], [0, 0, 1, 1], [], []>} : vector<2x32xf32>, vector<32x32xf32>, vector<2x32xf32> -> vector<2x32xf32>
    %c2_39 = arith.constant 2 : index
    %c0_40 = arith.constant 0 : index
    %c0_41 = arith.constant 0 : index
    %92 = vector.load %arg4[%c2_39, %c0_40, %c0_41] : memref<3x1x32xf32, #tpu.memory_space<vmem>>, vector<1x1x32xf32>
    %93 = vector.shape_cast %92 : vector<1x1x32xf32> to vector<1x32xf32>
    %94 = vector.broadcast %93 : vector<1x32xf32> to vector<2x32xf32>
    %95 = arith.addf %91, %94 : vector<2x32xf32>
    %96 = arith.addf %11, %81 : vector<2x32xf32>
    %97 = arith.negf %96 : vector<2x32xf32>
    %98 = math.exp %97 : vector<2x32xf32>
    %cst_42 = arith.constant 1.000000e+00 : f32
    %99 = vector.broadcast %cst_42 : f32 to vector<2x32xf32>
    %100 = arith.addf %99, %98 : vector<2x32xf32>
    %101 = arith.divf %99, %100 : vector<2x32xf32>
    %102 = arith.addf %35, %88 : vector<2x32xf32>
    %103 = arith.negf %102 : vector<2x32xf32>
    %104 = math.exp %103 : vector<2x32xf32>
    %cst_43 = arith.constant 1.000000e+00 : f32
    %105 = vector.broadcast %cst_43 : f32 to vector<2x32xf32>
    %106 = arith.addf %105, %104 : vector<2x32xf32>
    %107 = arith.divf %105, %106 : vector<2x32xf32>
    %108 = arith.mulf %101, %95 : vector<2x32xf32>
    %109 = arith.addf %59, %108 : vector<2x32xf32>
    %110 = math.tanh %109 : vector<2x32xf32>
    %cst_44 = arith.constant 1.000000e+00 : f32
    %111 = vector.broadcast %cst_44 : f32 to vector<2x32xf32>
    %112 = arith.subf %111, %107 : vector<2x32xf32>
    %113 = arith.mulf %112, %110 : vector<2x32xf32>
    %114 = arith.mulf %107, %74 : vector<2x32xf32>
    %115 = arith.addf %113, %114 : vector<2x32xf32>
    %c0_45 = arith.constant 0 : index
    %c0_46 = arith.constant 0 : index
    %c0_47 = arith.constant 0 : index
    %116 = vector.load %arg2[%c0_45, %c0_46, %c0_47] : memref<3x32x32xf32, #tpu.memory_space<vmem>>, vector<1x32x32xf32>
    %117 = vector.shape_cast %116 : vector<1x32x32xf32> to vector<32x32xf32>
    %cst_48 = arith.constant dense<0.000000e+00> : vector<2x32xf32>
    %118 = tpu.matmul %115, %117, %cst_48 {dimension_numbers = #tpu.dot_dimension_numbers<[1], [0], [0], [1], [0, 0, 1, 1], [], []>} : vector<2x32xf32>, vector<32x32xf32>, vector<2x32xf32> -> vector<2x32xf32>
    %c0_49 = arith.constant 0 : index
    %c0_50 = arith.constant 0 : index
    %c0_51 = arith.constant 0 : index
    %119 = vector.load %arg4[%c0_49, %c0_50, %c0_51] : memref<3x1x32xf32, #tpu.memory_space<vmem>>, vector<1x1x32xf32>
    %120 = vector.shape_cast %119 : vector<1x1x32xf32> to vector<1x32xf32>
    %121 = vector.broadcast %120 : vector<1x32xf32> to vector<2x32xf32>
    %122 = arith.addf %118, %121 : vector<2x32xf32>
    %c1_52 = arith.constant 1 : index
    %c0_53 = arith.constant 0 : index
    %c0_54 = arith.constant 0 : index
    %123 = vector.load %arg2[%c1_52, %c0_53, %c0_54] : memref<3x32x32xf32, #tpu.memory_space<vmem>>, vector<1x32x32xf32>
    %124 = vector.shape_cast %123 : vector<1x32x32xf32> to vector<32x32xf32>
    %cst_55 = arith.constant dense<0.000000e+00> : vector<2x32xf32>
    %125 = tpu.matmul %115, %124, %cst_55 {dimension_numbers = #tpu.dot_dimension_numbers<[1], [0], [0], [1], [0, 0, 1, 1], [], []>} : vector<2x32xf32>, vector<32x32xf32>, vector<2x32xf32> -> vector<2x32xf32>
    %c1_56 = arith.constant 1 : index
    %c0_57 = arith.constant 0 : index
    %c0_58 = arith.constant 0 : index
    %126 = vector.load %arg4[%c1_56, %c0_57, %c0_58] : memref<3x1x32xf32, #tpu.memory_space<vmem>>, vector<1x1x32xf32>
    %127 = vector.shape_cast %126 : vector<1x1x32xf32> to vector<1x32xf32>
    %128 = vector.broadcast %127 : vector<1x32xf32> to vector<2x32xf32>
    %129 = arith.addf %125, %128 : vector<2x32xf32>
    %c2_59 = arith.constant 2 : index
    %c0_60 = arith.constant 0 : index
    %c0_61 = arith.constant 0 : index
    %130 = vector.load %arg2[%c2_59, %c0_60, %c0_61] : memref<3x32x32xf32, #tpu.memory_space<vmem>>, vector<1x32x32xf32>
    %131 = vector.shape_cast %130 : vector<1x32x32xf32> to vector<32x32xf32>
    %cst_62 = arith.constant dense<0.000000e+00> : vector<2x32xf32>
    %132 = tpu.matmul %115, %131, %cst_62 {dimension_numbers = #tpu.dot_dimension_numbers<[1], [0], [0], [1], [0, 0, 1, 1], [], []>} : vector<2x32xf32>, vector<32x32xf32>, vector<2x32xf32> -> vector<2x32xf32>
    %c2_63 = arith.constant 2 : index
    %c0_64 = arith.constant 0 : index
    %c0_65 = arith.constant 0 : index
    %133 = vector.load %arg4[%c2_63, %c0_64, %c0_65] : memref<3x1x32xf32, #tpu.memory_space<vmem>>, vector<1x1x32xf32>
    %134 = vector.shape_cast %133 : vector<1x1x32xf32> to vector<1x32xf32>
    %135 = vector.broadcast %134 : vector<1x32xf32> to vector<2x32xf32>
    %136 = arith.addf %132, %135 : vector<2x32xf32>
    %137 = arith.addf %13, %122 : vector<2x32xf32>
    %138 = arith.negf %137 : vector<2x32xf32>
    %139 = math.exp %138 : vector<2x32xf32>
    %cst_66 = arith.constant 1.000000e+00 : f32
    %140 = vector.broadcast %cst_66 : f32 to vector<2x32xf32>
    %141 = arith.addf %140, %139 : vector<2x32xf32>
    %142 = arith.divf %140, %141 : vector<2x32xf32>
    %143 = arith.addf %37, %129 : vector<2x32xf32>
    %144 = arith.negf %143 : vector<2x32xf32>
    %145 = math.exp %144 : vector<2x32xf32>
    %cst_67 = arith.constant 1.000000e+00 : f32
    %146 = vector.broadcast %cst_67 : f32 to vector<2x32xf32>
    %147 = arith.addf %146, %145 : vector<2x32xf32>
    %148 = arith.divf %146, %147 : vector<2x32xf32>
    %149 = arith.mulf %142, %136 : vector<2x32xf32>
    %150 = arith.addf %61, %149 : vector<2x32xf32>
    %151 = math.tanh %150 : vector<2x32xf32>
    %cst_68 = arith.constant 1.000000e+00 : f32
    %152 = vector.broadcast %cst_68 : f32 to vector<2x32xf32>
    %153 = arith.subf %152, %148 : vector<2x32xf32>
    %154 = arith.mulf %153, %151 : vector<2x32xf32>
    %155 = arith.mulf %148, %115 : vector<2x32xf32>
    %156 = arith.addf %154, %155 : vector<2x32xf32>
    %c0_69 = arith.constant 0 : index
    %c0_70 = arith.constant 0 : index
    %c0_71 = arith.constant 0 : index
    %157 = vector.load %arg2[%c0_69, %c0_70, %c0_71] : memref<3x32x32xf32, #tpu.memory_space<vmem>>, vector<1x32x32xf32>
    %158 = vector.shape_cast %157 : vector<1x32x32xf32> to vector<32x32xf32>
    %cst_72 = arith.constant dense<0.000000e+00> : vector<2x32xf32>
    %159 = tpu.matmul %156, %158, %cst_72 {dimension_numbers = #tpu.dot_dimension_numbers<[1], [0], [0], [1], [0, 0, 1, 1], [], []>} : vector<2x32xf32>, vector<32x32xf32>, vector<2x32xf32> -> vector<2x32xf32>
    %c0_73 = arith.constant 0 : index
    %c0_74 = arith.constant 0 : index
    %c0_75 = arith.constant 0 : index
    %160 = vector.load %arg4[%c0_73, %c0_74, %c0_75] : memref<3x1x32xf32, #tpu.memory_space<vmem>>, vector<1x1x32xf32>
    %161 = vector.shape_cast %160 : vector<1x1x32xf32> to vector<1x32xf32>
    %162 = vector.broadcast %161 : vector<1x32xf32> to vector<2x32xf32>
    %163 = arith.addf %159, %162 : vector<2x32xf32>
    %c1_76 = arith.constant 1 : index
    %c0_77 = arith.constant 0 : index
    %c0_78 = arith.constant 0 : index
    %164 = vector.load %arg2[%c1_76, %c0_77, %c0_78] : memref<3x32x32xf32, #tpu.memory_space<vmem>>, vector<1x32x32xf32>
    %165 = vector.shape_cast %164 : vector<1x32x32xf32> to vector<32x32xf32>
    %cst_79 = arith.constant dense<0.000000e+00> : vector<2x32xf32>
    %166 = tpu.matmul %156, %165, %cst_79 {dimension_numbers = #tpu.dot_dimension_numbers<[1], [0], [0], [1], [0, 0, 1, 1], [], []>} : vector<2x32xf32>, vector<32x32xf32>, vector<2x32xf32> -> vector<2x32xf32>
    %c1_80 = arith.constant 1 : index
    %c0_81 = arith.constant 0 : index
    %c0_82 = arith.constant 0 : index
    %167 = vector.load %arg4[%c1_80, %c0_81, %c0_82] : memref<3x1x32xf32, #tpu.memory_space<vmem>>, vector<1x1x32xf32>
    %168 = vector.shape_cast %167 : vector<1x1x32xf32> to vector<1x32xf32>
    %169 = vector.broadcast %168 : vector<1x32xf32> to vector<2x32xf32>
    %170 = arith.addf %166, %169 : vector<2x32xf32>
    %c2_83 = arith.constant 2 : index
    %c0_84 = arith.constant 0 : index
    %c0_85 = arith.constant 0 : index
    %171 = vector.load %arg2[%c2_83, %c0_84, %c0_85] : memref<3x32x32xf32, #tpu.memory_space<vmem>>, vector<1x32x32xf32>
    %172 = vector.shape_cast %171 : vector<1x32x32xf32> to vector<32x32xf32>
    %cst_86 = arith.constant dense<0.000000e+00> : vector<2x32xf32>
    %173 = tpu.matmul %156, %172, %cst_86 {dimension_numbers = #tpu.dot_dimension_numbers<[1], [0], [0], [1], [0, 0, 1, 1], [], []>} : vector<2x32xf32>, vector<32x32xf32>, vector<2x32xf32> -> vector<2x32xf32>
    %c2_87 = arith.constant 2 : index
    %c0_88 = arith.constant 0 : index
    %c0_89 = arith.constant 0 : index
    %174 = vector.load %arg4[%c2_87, %c0_88, %c0_89] : memref<3x1x32xf32, #tpu.memory_space<vmem>>, vector<1x1x32xf32>
    %175 = vector.shape_cast %174 : vector<1x1x32xf32> to vector<1x32xf32>
    %176 = vector.broadcast %175 : vector<1x32xf32> to vector<2x32xf32>
    %177 = arith.addf %173, %176 : vector<2x32xf32>
    %178 = arith.addf %15, %163 : vector<2x32xf32>
    %179 = arith.negf %178 : vector<2x32xf32>
    %180 = math.exp %179 : vector<2x32xf32>
    %cst_90 = arith.constant 1.000000e+00 : f32
    %181 = vector.broadcast %cst_90 : f32 to vector<2x32xf32>
    %182 = arith.addf %181, %180 : vector<2x32xf32>
    %183 = arith.divf %181, %182 : vector<2x32xf32>
    %184 = arith.addf %39, %170 : vector<2x32xf32>
    %185 = arith.negf %184 : vector<2x32xf32>
    %186 = math.exp %185 : vector<2x32xf32>
    %cst_91 = arith.constant 1.000000e+00 : f32
    %187 = vector.broadcast %cst_91 : f32 to vector<2x32xf32>
    %188 = arith.addf %187, %186 : vector<2x32xf32>
    %189 = arith.divf %187, %188 : vector<2x32xf32>
    %190 = arith.mulf %183, %177 : vector<2x32xf32>
    %191 = arith.addf %63, %190 : vector<2x32xf32>
    %192 = math.tanh %191 : vector<2x32xf32>
    %cst_92 = arith.constant 1.000000e+00 : f32
    %193 = vector.broadcast %cst_92 : f32 to vector<2x32xf32>
    %194 = arith.subf %193, %189 : vector<2x32xf32>
    %195 = arith.mulf %194, %192 : vector<2x32xf32>
    %196 = arith.mulf %189, %156 : vector<2x32xf32>
    %197 = arith.addf %195, %196 : vector<2x32xf32>
    %c0_93 = arith.constant 0 : index
    %c0_94 = arith.constant 0 : index
    %c0_95 = arith.constant 0 : index
    %198 = vector.load %arg2[%c0_93, %c0_94, %c0_95] : memref<3x32x32xf32, #tpu.memory_space<vmem>>, vector<1x32x32xf32>
    %199 = vector.shape_cast %198 : vector<1x32x32xf32> to vector<32x32xf32>
    %cst_96 = arith.constant dense<0.000000e+00> : vector<2x32xf32>
    %200 = tpu.matmul %197, %199, %cst_96 {dimension_numbers = #tpu.dot_dimension_numbers<[1], [0], [0], [1], [0, 0, 1, 1], [], []>} : vector<2x32xf32>, vector<32x32xf32>, vector<2x32xf32> -> vector<2x32xf32>
    %c0_97 = arith.constant 0 : index
    %c0_98 = arith.constant 0 : index
    %c0_99 = arith.constant 0 : index
    %201 = vector.load %arg4[%c0_97, %c0_98, %c0_99] : memref<3x1x32xf32, #tpu.memory_space<vmem>>, vector<1x1x32xf32>
    %202 = vector.shape_cast %201 : vector<1x1x32xf32> to vector<1x32xf32>
    %203 = vector.broadcast %202 : vector<1x32xf32> to vector<2x32xf32>
    %204 = arith.addf %200, %203 : vector<2x32xf32>
    %c1_100 = arith.constant 1 : index
    %c0_101 = arith.constant 0 : index
    %c0_102 = arith.constant 0 : index
    %205 = vector.load %arg2[%c1_100, %c0_101, %c0_102] : memref<3x32x32xf32, #tpu.memory_space<vmem>>, vector<1x32x32xf32>
    %206 = vector.shape_cast %205 : vector<1x32x32xf32> to vector<32x32xf32>
    %cst_103 = arith.constant dense<0.000000e+00> : vector<2x32xf32>
    %207 = tpu.matmul %197, %206, %cst_103 {dimension_numbers = #tpu.dot_dimension_numbers<[1], [0], [0], [1], [0, 0, 1, 1], [], []>} : vector<2x32xf32>, vector<32x32xf32>, vector<2x32xf32> -> vector<2x32xf32>
    %c1_104 = arith.constant 1 : index
    %c0_105 = arith.constant 0 : index
    %c0_106 = arith.constant 0 : index
    %208 = vector.load %arg4[%c1_104, %c0_105, %c0_106] : memref<3x1x32xf32, #tpu.memory_space<vmem>>, vector<1x1x32xf32>
    %209 = vector.shape_cast %208 : vector<1x1x32xf32> to vector<1x32xf32>
    %210 = vector.broadcast %209 : vector<1x32xf32> to vector<2x32xf32>
    %211 = arith.addf %207, %210 : vector<2x32xf32>
    %c2_107 = arith.constant 2 : index
    %c0_108 = arith.constant 0 : index
    %c0_109 = arith.constant 0 : index
    %212 = vector.load %arg2[%c2_107, %c0_108, %c0_109] : memref<3x32x32xf32, #tpu.memory_space<vmem>>, vector<1x32x32xf32>
    %213 = vector.shape_cast %212 : vector<1x32x32xf32> to vector<32x32xf32>
    %cst_110 = arith.constant dense<0.000000e+00> : vector<2x32xf32>
    %214 = tpu.matmul %197, %213, %cst_110 {dimension_numbers = #tpu.dot_dimension_numbers<[1], [0], [0], [1], [0, 0, 1, 1], [], []>} : vector<2x32xf32>, vector<32x32xf32>, vector<2x32xf32> -> vector<2x32xf32>
    %c2_111 = arith.constant 2 : index
    %c0_112 = arith.constant 0 : index
    %c0_113 = arith.constant 0 : index
    %215 = vector.load %arg4[%c2_111, %c0_112, %c0_113] : memref<3x1x32xf32, #tpu.memory_space<vmem>>, vector<1x1x32xf32>
    %216 = vector.shape_cast %215 : vector<1x1x32xf32> to vector<1x32xf32>
    %217 = vector.broadcast %216 : vector<1x32xf32> to vector<2x32xf32>
    %218 = arith.addf %214, %217 : vector<2x32xf32>
    %219 = arith.addf %17, %204 : vector<2x32xf32>
    %220 = arith.negf %219 : vector<2x32xf32>
    %221 = math.exp %220 : vector<2x32xf32>
    %cst_114 = arith.constant 1.000000e+00 : f32
    %222 = vector.broadcast %cst_114 : f32 to vector<2x32xf32>
    %223 = arith.addf %222, %221 : vector<2x32xf32>
    %224 = arith.divf %222, %223 : vector<2x32xf32>
    %225 = arith.addf %41, %211 : vector<2x32xf32>
    %226 = arith.negf %225 : vector<2x32xf32>
    %227 = math.exp %226 : vector<2x32xf32>
    %cst_115 = arith.constant 1.000000e+00 : f32
    %228 = vector.broadcast %cst_115 : f32 to vector<2x32xf32>
    %229 = arith.addf %228, %227 : vector<2x32xf32>
    %230 = arith.divf %228, %229 : vector<2x32xf32>
    %231 = arith.mulf %224, %218 : vector<2x32xf32>
    %232 = arith.addf %65, %231 : vector<2x32xf32>
    %233 = math.tanh %232 : vector<2x32xf32>
    %cst_116 = arith.constant 1.000000e+00 : f32
    %234 = vector.broadcast %cst_116 : f32 to vector<2x32xf32>
    %235 = arith.subf %234, %230 : vector<2x32xf32>
    %236 = arith.mulf %235, %233 : vector<2x32xf32>
    %237 = arith.mulf %230, %197 : vector<2x32xf32>
    %238 = arith.addf %236, %237 : vector<2x32xf32>
    %c0_117 = arith.constant 0 : index
    %c0_118 = arith.constant 0 : index
    %c0_119 = arith.constant 0 : index
    %239 = vector.load %arg2[%c0_117, %c0_118, %c0_119] : memref<3x32x32xf32, #tpu.memory_space<vmem>>, vector<1x32x32xf32>
    %240 = vector.shape_cast %239 : vector<1x32x32xf32> to vector<32x32xf32>
    %cst_120 = arith.constant dense<0.000000e+00> : vector<2x32xf32>
    %241 = tpu.matmul %238, %240, %cst_120 {dimension_numbers = #tpu.dot_dimension_numbers<[1], [0], [0], [1], [0, 0, 1, 1], [], []>} : vector<2x32xf32>, vector<32x32xf32>, vector<2x32xf32> -> vector<2x32xf32>
    %c0_121 = arith.constant 0 : index
    %c0_122 = arith.constant 0 : index
    %c0_123 = arith.constant 0 : index
    %242 = vector.load %arg4[%c0_121, %c0_122, %c0_123] : memref<3x1x32xf32, #tpu.memory_space<vmem>>, vector<1x1x32xf32>
    %243 = vector.shape_cast %242 : vector<1x1x32xf32> to vector<1x32xf32>
    %244 = vector.broadcast %243 : vector<1x32xf32> to vector<2x32xf32>
    %245 = arith.addf %241, %244 : vector<2x32xf32>
    %c1_124 = arith.constant 1 : index
    %c0_125 = arith.constant 0 : index
    %c0_126 = arith.constant 0 : index
    %246 = vector.load %arg2[%c1_124, %c0_125, %c0_126] : memref<3x32x32xf32, #tpu.memory_space<vmem>>, vector<1x32x32xf32>
    %247 = vector.shape_cast %246 : vector<1x32x32xf32> to vector<32x32xf32>
    %cst_127 = arith.constant dense<0.000000e+00> : vector<2x32xf32>
    %248 = tpu.matmul %238, %247, %cst_127 {dimension_numbers = #tpu.dot_dimension_numbers<[1], [0], [0], [1], [0, 0, 1, 1], [], []>} : vector<2x32xf32>, vector<32x32xf32>, vector<2x32xf32> -> vector<2x32xf32>
    %c1_128 = arith.constant 1 : index
    %c0_129 = arith.constant 0 : index
    %c0_130 = arith.constant 0 : index
    %249 = vector.load %arg4[%c1_128, %c0_129, %c0_130] : memref<3x1x32xf32, #tpu.memory_space<vmem>>, vector<1x1x32xf32>
    %250 = vector.shape_cast %249 : vector<1x1x32xf32> to vector<1x32xf32>
    %251 = vector.broadcast %250 : vector<1x32xf32> to vector<2x32xf32>
    %252 = arith.addf %248, %251 : vector<2x32xf32>
    %c2_131 = arith.constant 2 : index
    %c0_132 = arith.constant 0 : index
    %c0_133 = arith.constant 0 : index
    %253 = vector.load %arg2[%c2_131, %c0_132, %c0_133] : memref<3x32x32xf32, #tpu.memory_space<vmem>>, vector<1x32x32xf32>
    %254 = vector.shape_cast %253 : vector<1x32x32xf32> to vector<32x32xf32>
    %cst_134 = arith.constant dense<0.000000e+00> : vector<2x32xf32>
    %255 = tpu.matmul %238, %254, %cst_134 {dimension_numbers = #tpu.dot_dimension_numbers<[1], [0], [0], [1], [0, 0, 1, 1], [], []>} : vector<2x32xf32>, vector<32x32xf32>, vector<2x32xf32> -> vector<2x32xf32>
    %c2_135 = arith.constant 2 : index
    %c0_136 = arith.constant 0 : index
    %c0_137 = arith.constant 0 : index
    %256 = vector.load %arg4[%c2_135, %c0_136, %c0_137] : memref<3x1x32xf32, #tpu.memory_space<vmem>>, vector<1x1x32xf32>
    %257 = vector.shape_cast %256 : vector<1x1x32xf32> to vector<1x32xf32>
    %258 = vector.broadcast %257 : vector<1x32xf32> to vector<2x32xf32>
    %259 = arith.addf %255, %258 : vector<2x32xf32>
    %260 = arith.addf %19, %245 : vector<2x32xf32>
    %261 = arith.negf %260 : vector<2x32xf32>
    %262 = math.exp %261 : vector<2x32xf32>
    %cst_138 = arith.constant 1.000000e+00 : f32
    %263 = vector.broadcast %cst_138 : f32 to vector<2x32xf32>
    %264 = arith.addf %263, %262 : vector<2x32xf32>
    %265 = arith.divf %263, %264 : vector<2x32xf32>
    %266 = arith.addf %43, %252 : vector<2x32xf32>
    %267 = arith.negf %266 : vector<2x32xf32>
    %268 = math.exp %267 : vector<2x32xf32>
    %cst_139 = arith.constant 1.000000e+00 : f32
    %269 = vector.broadcast %cst_139 : f32 to vector<2x32xf32>
    %270 = arith.addf %269, %268 : vector<2x32xf32>
    %271 = arith.divf %269, %270 : vector<2x32xf32>
    %272 = arith.mulf %265, %259 : vector<2x32xf32>
    %273 = arith.addf %67, %272 : vector<2x32xf32>
    %274 = math.tanh %273 : vector<2x32xf32>
    %cst_140 = arith.constant 1.000000e+00 : f32
    %275 = vector.broadcast %cst_140 : f32 to vector<2x32xf32>
    %276 = arith.subf %275, %271 : vector<2x32xf32>
    %277 = arith.mulf %276, %274 : vector<2x32xf32>
    %278 = arith.mulf %271, %238 : vector<2x32xf32>
    %279 = arith.addf %277, %278 : vector<2x32xf32>
    %c0_141 = arith.constant 0 : index
    %c0_142 = arith.constant 0 : index
    %c0_143 = arith.constant 0 : index
    %280 = vector.load %arg2[%c0_141, %c0_142, %c0_143] : memref<3x32x32xf32, #tpu.memory_space<vmem>>, vector<1x32x32xf32>
    %281 = vector.shape_cast %280 : vector<1x32x32xf32> to vector<32x32xf32>
    %cst_144 = arith.constant dense<0.000000e+00> : vector<2x32xf32>
    %282 = tpu.matmul %279, %281, %cst_144 {dimension_numbers = #tpu.dot_dimension_numbers<[1], [0], [0], [1], [0, 0, 1, 1], [], []>} : vector<2x32xf32>, vector<32x32xf32>, vector<2x32xf32> -> vector<2x32xf32>
    %c0_145 = arith.constant 0 : index
    %c0_146 = arith.constant 0 : index
    %c0_147 = arith.constant 0 : index
    %283 = vector.load %arg4[%c0_145, %c0_146, %c0_147] : memref<3x1x32xf32, #tpu.memory_space<vmem>>, vector<1x1x32xf32>
    %284 = vector.shape_cast %283 : vector<1x1x32xf32> to vector<1x32xf32>
    %285 = vector.broadcast %284 : vector<1x32xf32> to vector<2x32xf32>
    %286 = arith.addf %282, %285 : vector<2x32xf32>
    %c1_148 = arith.constant 1 : index
    %c0_149 = arith.constant 0 : index
    %c0_150 = arith.constant 0 : index
    %287 = vector.load %arg2[%c1_148, %c0_149, %c0_150] : memref<3x32x32xf32, #tpu.memory_space<vmem>>, vector<1x32x32xf32>
    %288 = vector.shape_cast %287 : vector<1x32x32xf32> to vector<32x32xf32>
    %cst_151 = arith.constant dense<0.000000e+00> : vector<2x32xf32>
    %289 = tpu.matmul %279, %288, %cst_151 {dimension_numbers = #tpu.dot_dimension_numbers<[1], [0], [0], [1], [0, 0, 1, 1], [], []>} : vector<2x32xf32>, vector<32x32xf32>, vector<2x32xf32> -> vector<2x32xf32>
    %c1_152 = arith.constant 1 : index
    %c0_153 = arith.constant 0 : index
    %c0_154 = arith.constant 0 : index
    %290 = vector.load %arg4[%c1_152, %c0_153, %c0_154] : memref<3x1x32xf32, #tpu.memory_space<vmem>>, vector<1x1x32xf32>
    %291 = vector.shape_cast %290 : vector<1x1x32xf32> to vector<1x32xf32>
    %292 = vector.broadcast %291 : vector<1x32xf32> to vector<2x32xf32>
    %293 = arith.addf %289, %292 : vector<2x32xf32>
    %c2_155 = arith.constant 2 : index
    %c0_156 = arith.constant 0 : index
    %c0_157 = arith.constant 0 : index
    %294 = vector.load %arg2[%c2_155, %c0_156, %c0_157] : memref<3x32x32xf32, #tpu.memory_space<vmem>>, vector<1x32x32xf32>
    %295 = vector.shape_cast %294 : vector<1x32x32xf32> to vector<32x32xf32>
    %cst_158 = arith.constant dense<0.000000e+00> : vector<2x32xf32>
    %296 = tpu.matmul %279, %295, %cst_158 {dimension_numbers = #tpu.dot_dimension_numbers<[1], [0], [0], [1], [0, 0, 1, 1], [], []>} : vector<2x32xf32>, vector<32x32xf32>, vector<2x32xf32> -> vector<2x32xf32>
    %c2_159 = arith.constant 2 : index
    %c0_160 = arith.constant 0 : index
    %c0_161 = arith.constant 0 : index
    %297 = vector.load %arg4[%c2_159, %c0_160, %c0_161] : memref<3x1x32xf32, #tpu.memory_space<vmem>>, vector<1x1x32xf32>
    %298 = vector.shape_cast %297 : vector<1x1x32xf32> to vector<1x32xf32>
    %299 = vector.broadcast %298 : vector<1x32xf32> to vector<2x32xf32>
    %300 = arith.addf %296, %299 : vector<2x32xf32>
    %301 = arith.addf %21, %286 : vector<2x32xf32>
    %302 = arith.negf %301 : vector<2x32xf32>
    %303 = math.exp %302 : vector<2x32xf32>
    %cst_162 = arith.constant 1.000000e+00 : f32
    %304 = vector.broadcast %cst_162 : f32 to vector<2x32xf32>
    %305 = arith.addf %304, %303 : vector<2x32xf32>
    %306 = arith.divf %304, %305 : vector<2x32xf32>
    %307 = arith.addf %45, %293 : vector<2x32xf32>
    %308 = arith.negf %307 : vector<2x32xf32>
    %309 = math.exp %308 : vector<2x32xf32>
    %cst_163 = arith.constant 1.000000e+00 : f32
    %310 = vector.broadcast %cst_163 : f32 to vector<2x32xf32>
    %311 = arith.addf %310, %309 : vector<2x32xf32>
    %312 = arith.divf %310, %311 : vector<2x32xf32>
    %313 = arith.mulf %306, %300 : vector<2x32xf32>
    %314 = arith.addf %69, %313 : vector<2x32xf32>
    %315 = math.tanh %314 : vector<2x32xf32>
    %cst_164 = arith.constant 1.000000e+00 : f32
    %316 = vector.broadcast %cst_164 : f32 to vector<2x32xf32>
    %317 = arith.subf %316, %312 : vector<2x32xf32>
    %318 = arith.mulf %317, %315 : vector<2x32xf32>
    %319 = arith.mulf %312, %279 : vector<2x32xf32>
    %320 = arith.addf %318, %319 : vector<2x32xf32>
    %c0_165 = arith.constant 0 : index
    %c0_166 = arith.constant 0 : index
    %c0_167 = arith.constant 0 : index
    %321 = vector.load %arg2[%c0_165, %c0_166, %c0_167] : memref<3x32x32xf32, #tpu.memory_space<vmem>>, vector<1x32x32xf32>
    %322 = vector.shape_cast %321 : vector<1x32x32xf32> to vector<32x32xf32>
    %cst_168 = arith.constant dense<0.000000e+00> : vector<2x32xf32>
    %323 = tpu.matmul %320, %322, %cst_168 {dimension_numbers = #tpu.dot_dimension_numbers<[1], [0], [0], [1], [0, 0, 1, 1], [], []>} : vector<2x32xf32>, vector<32x32xf32>, vector<2x32xf32> -> vector<2x32xf32>
    %c0_169 = arith.constant 0 : index
    %c0_170 = arith.constant 0 : index
    %c0_171 = arith.constant 0 : index
    %324 = vector.load %arg4[%c0_169, %c0_170, %c0_171] : memref<3x1x32xf32, #tpu.memory_space<vmem>>, vector<1x1x32xf32>
    %325 = vector.shape_cast %324 : vector<1x1x32xf32> to vector<1x32xf32>
    %326 = vector.broadcast %325 : vector<1x32xf32> to vector<2x32xf32>
    %327 = arith.addf %323, %326 : vector<2x32xf32>
    %c1_172 = arith.constant 1 : index
    %c0_173 = arith.constant 0 : index
    %c0_174 = arith.constant 0 : index
    %328 = vector.load %arg2[%c1_172, %c0_173, %c0_174] : memref<3x32x32xf32, #tpu.memory_space<vmem>>, vector<1x32x32xf32>
    %329 = vector.shape_cast %328 : vector<1x32x32xf32> to vector<32x32xf32>
    %cst_175 = arith.constant dense<0.000000e+00> : vector<2x32xf32>
    %330 = tpu.matmul %320, %329, %cst_175 {dimension_numbers = #tpu.dot_dimension_numbers<[1], [0], [0], [1], [0, 0, 1, 1], [], []>} : vector<2x32xf32>, vector<32x32xf32>, vector<2x32xf32> -> vector<2x32xf32>
    %c1_176 = arith.constant 1 : index
    %c0_177 = arith.constant 0 : index
    %c0_178 = arith.constant 0 : index
    %331 = vector.load %arg4[%c1_176, %c0_177, %c0_178] : memref<3x1x32xf32, #tpu.memory_space<vmem>>, vector<1x1x32xf32>
    %332 = vector.shape_cast %331 : vector<1x1x32xf32> to vector<1x32xf32>
    %333 = vector.broadcast %332 : vector<1x32xf32> to vector<2x32xf32>
    %334 = arith.addf %330, %333 : vector<2x32xf32>
    %c2_179 = arith.constant 2 : index
    %c0_180 = arith.constant 0 : index
    %c0_181 = arith.constant 0 : index
    %335 = vector.load %arg2[%c2_179, %c0_180, %c0_181] : memref<3x32x32xf32, #tpu.memory_space<vmem>>, vector<1x32x32xf32>
    %336 = vector.shape_cast %335 : vector<1x32x32xf32> to vector<32x32xf32>
    %cst_182 = arith.constant dense<0.000000e+00> : vector<2x32xf32>
    %337 = tpu.matmul %320, %336, %cst_182 {dimension_numbers = #tpu.dot_dimension_numbers<[1], [0], [0], [1], [0, 0, 1, 1], [], []>} : vector<2x32xf32>, vector<32x32xf32>, vector<2x32xf32> -> vector<2x32xf32>
    %c2_183 = arith.constant 2 : index
    %c0_184 = arith.constant 0 : index
    %c0_185 = arith.constant 0 : index
    %338 = vector.load %arg4[%c2_183, %c0_184, %c0_185] : memref<3x1x32xf32, #tpu.memory_space<vmem>>, vector<1x1x32xf32>
    %339 = vector.shape_cast %338 : vector<1x1x32xf32> to vector<1x32xf32>
    %340 = vector.broadcast %339 : vector<1x32xf32> to vector<2x32xf32>
    %341 = arith.addf %337, %340 : vector<2x32xf32>
    %342 = arith.addf %23, %327 : vector<2x32xf32>
    %343 = arith.negf %342 : vector<2x32xf32>
    %344 = math.exp %343 : vector<2x32xf32>
    %cst_186 = arith.constant 1.000000e+00 : f32
    %345 = vector.broadcast %cst_186 : f32 to vector<2x32xf32>
    %346 = arith.addf %345, %344 : vector<2x32xf32>
    %347 = arith.divf %345, %346 : vector<2x32xf32>
    %348 = arith.addf %47, %334 : vector<2x32xf32>
    %349 = arith.negf %348 : vector<2x32xf32>
    %350 = math.exp %349 : vector<2x32xf32>
    %cst_187 = arith.constant 1.000000e+00 : f32
    %351 = vector.broadcast %cst_187 : f32 to vector<2x32xf32>
    %352 = arith.addf %351, %350 : vector<2x32xf32>
    %353 = arith.divf %351, %352 : vector<2x32xf32>
    %354 = arith.mulf %347, %341 : vector<2x32xf32>
    %355 = arith.addf %71, %354 : vector<2x32xf32>
    %356 = math.tanh %355 : vector<2x32xf32>
    %cst_188 = arith.constant 1.000000e+00 : f32
    %357 = vector.broadcast %cst_188 : f32 to vector<2x32xf32>
    %358 = arith.subf %357, %353 : vector<2x32xf32>
    %359 = arith.mulf %358, %356 : vector<2x32xf32>
    %360 = arith.mulf %353, %320 : vector<2x32xf32>
    %361 = arith.addf %359, %360 : vector<2x32xf32>
    %c0_189 = arith.constant 0 : index
    %c0_190 = arith.constant 0 : index
    %c0_191 = arith.constant 0 : index
    %362 = vector.load %arg2[%c0_189, %c0_190, %c0_191] : memref<3x32x32xf32, #tpu.memory_space<vmem>>, vector<1x32x32xf32>
    %363 = vector.shape_cast %362 : vector<1x32x32xf32> to vector<32x32xf32>
    %cst_192 = arith.constant dense<0.000000e+00> : vector<2x32xf32>
    %364 = tpu.matmul %361, %363, %cst_192 {dimension_numbers = #tpu.dot_dimension_numbers<[1], [0], [0], [1], [0, 0, 1, 1], [], []>} : vector<2x32xf32>, vector<32x32xf32>, vector<2x32xf32> -> vector<2x32xf32>
    %c0_193 = arith.constant 0 : index
    %c0_194 = arith.constant 0 : index
    %c0_195 = arith.constant 0 : index
    %365 = vector.load %arg4[%c0_193, %c0_194, %c0_195] : memref<3x1x32xf32, #tpu.memory_space<vmem>>, vector<1x1x32xf32>
    %366 = vector.shape_cast %365 : vector<1x1x32xf32> to vector<1x32xf32>
    %367 = vector.broadcast %366 : vector<1x32xf32> to vector<2x32xf32>
    %368 = arith.addf %364, %367 : vector<2x32xf32>
    %c1_196 = arith.constant 1 : index
    %c0_197 = arith.constant 0 : index
    %c0_198 = arith.constant 0 : index
    %369 = vector.load %arg2[%c1_196, %c0_197, %c0_198] : memref<3x32x32xf32, #tpu.memory_space<vmem>>, vector<1x32x32xf32>
    %370 = vector.shape_cast %369 : vector<1x32x32xf32> to vector<32x32xf32>
    %cst_199 = arith.constant dense<0.000000e+00> : vector<2x32xf32>
    %371 = tpu.matmul %361, %370, %cst_199 {dimension_numbers = #tpu.dot_dimension_numbers<[1], [0], [0], [1], [0, 0, 1, 1], [], []>} : vector<2x32xf32>, vector<32x32xf32>, vector<2x32xf32> -> vector<2x32xf32>
    %c1_200 = arith.constant 1 : index
    %c0_201 = arith.constant 0 : index
    %c0_202 = arith.constant 0 : index
    %372 = vector.load %arg4[%c1_200, %c0_201, %c0_202] : memref<3x1x32xf32, #tpu.memory_space<vmem>>, vector<1x1x32xf32>
    %373 = vector.shape_cast %372 : vector<1x1x32xf32> to vector<1x32xf32>
    %374 = vector.broadcast %373 : vector<1x32xf32> to vector<2x32xf32>
    %375 = arith.addf %371, %374 : vector<2x32xf32>
    %c2_203 = arith.constant 2 : index
    %c0_204 = arith.constant 0 : index
    %c0_205 = arith.constant 0 : index
    %376 = vector.load %arg2[%c2_203, %c0_204, %c0_205] : memref<3x32x32xf32, #tpu.memory_space<vmem>>, vector<1x32x32xf32>
    %377 = vector.shape_cast %376 : vector<1x32x32xf32> to vector<32x32xf32>
    %cst_206 = arith.constant dense<0.000000e+00> : vector<2x32xf32>
    %378 = tpu.matmul %361, %377, %cst_206 {dimension_numbers = #tpu.dot_dimension_numbers<[1], [0], [0], [1], [0, 0, 1, 1], [], []>} : vector<2x32xf32>, vector<32x32xf32>, vector<2x32xf32> -> vector<2x32xf32>
    %c2_207 = arith.constant 2 : index
    %c0_208 = arith.constant 0 : index
    %c0_209 = arith.constant 0 : index
    %379 = vector.load %arg4[%c2_207, %c0_208, %c0_209] : memref<3x1x32xf32, #tpu.memory_space<vmem>>, vector<1x1x32xf32>
    %380 = vector.shape_cast %379 : vector<1x1x32xf32> to vector<1x32xf32>
    %381 = vector.broadcast %380 : vector<1x32xf32> to vector<2x32xf32>
    %382 = arith.addf %378, %381 : vector<2x32xf32>
    %383 = arith.addf %25, %368 : vector<2x32xf32>
    %384 = arith.negf %383 : vector<2x32xf32>
    %385 = math.exp %384 : vector<2x32xf32>
    %cst_210 = arith.constant 1.000000e+00 : f32
    %386 = vector.broadcast %cst_210 : f32 to vector<2x32xf32>
    %387 = arith.addf %386, %385 : vector<2x32xf32>
    %388 = arith.divf %386, %387 : vector<2x32xf32>
    %389 = arith.addf %49, %375 : vector<2x32xf32>
    %390 = arith.negf %389 : vector<2x32xf32>
    %391 = math.exp %390 : vector<2x32xf32>
    %cst_211 = arith.constant 1.000000e+00 : f32
    %392 = vector.broadcast %cst_211 : f32 to vector<2x32xf32>
    %393 = arith.addf %392, %391 : vector<2x32xf32>
    %394 = arith.divf %392, %393 : vector<2x32xf32>
    %395 = arith.mulf %388, %382 : vector<2x32xf32>
    %396 = arith.addf %73, %395 : vector<2x32xf32>
    %397 = math.tanh %396 : vector<2x32xf32>
    %cst_212 = arith.constant 1.000000e+00 : f32
    %398 = vector.broadcast %cst_212 : f32 to vector<2x32xf32>
    %399 = arith.subf %398, %394 : vector<2x32xf32>
    %400 = arith.mulf %399, %397 : vector<2x32xf32>
    %401 = arith.mulf %394, %361 : vector<2x32xf32>
    %402 = arith.addf %400, %401 : vector<2x32xf32>
    %403 = tpu.concatenate %115, %156, %197, %238, %279, %320, %361, %402 in 0 : vector<2x32xf32>, vector<2x32xf32>, vector<2x32xf32>, vector<2x32xf32>, vector<2x32xf32>, vector<2x32xf32>, vector<2x32xf32>, vector<2x32xf32> -> vector<16x32xf32>
    %c0_213 = arith.constant 0 : index
    %c0_214 = arith.constant 0 : index
    %c0_215 = arith.constant 0 : index
    %404 = vector.load %arg5[%c0_213, %c0_214, %c0_215] : memref<3x32x32xf32, #tpu.memory_space<vmem>>, vector<1x32x32xf32>
    %405 = vector.shape_cast %404 : vector<1x32x32xf32> to vector<32x32xf32>
    %cst_216 = arith.constant dense<0.000000e+00> : vector<16x32xf32>
    %406 = tpu.matmul %403, %405, %cst_216 {dimension_numbers = #tpu.dot_dimension_numbers<[1], [0], [0], [1], [0, 0, 1, 1], [], []>} : vector<16x32xf32>, vector<32x32xf32>, vector<16x32xf32> -> vector<16x32xf32>
    %c0_217 = arith.constant 0 : index
    %c0_218 = arith.constant 0 : index
    %c0_219 = arith.constant 0 : index
    %407 = vector.load %arg7[%c0_217, %c0_218, %c0_219] : memref<3x1x32xf32, #tpu.memory_space<vmem>>, vector<1x1x32xf32>
    %408 = vector.shape_cast %407 : vector<1x1x32xf32> to vector<1x32xf32>
    %409 = vector.broadcast %408 : vector<1x32xf32> to vector<16x32xf32>
    %410 = arith.addf %406, %409 : vector<16x32xf32>
    %411 = vector.extract_strided_slice %410 {offsets = [0, 0], sizes = [2, 32], strides = [1, 1]} : vector<16x32xf32> to vector<2x32xf32>
    %412 = vector.extract_strided_slice %410 {offsets = [2, 0], sizes = [2, 32], strides = [1, 1]} : vector<16x32xf32> to vector<2x32xf32>
    %413 = vector.extract_strided_slice %410 {offsets = [4, 0], sizes = [2, 32], strides = [1, 1]} : vector<16x32xf32> to vector<2x32xf32>
    %414 = vector.extract_strided_slice %410 {offsets = [6, 0], sizes = [2, 32], strides = [1, 1]} : vector<16x32xf32> to vector<2x32xf32>
    %415 = vector.extract_strided_slice %410 {offsets = [8, 0], sizes = [2, 32], strides = [1, 1]} : vector<16x32xf32> to vector<2x32xf32>
    %416 = vector.extract_strided_slice %410 {offsets = [10, 0], sizes = [2, 32], strides = [1, 1]} : vector<16x32xf32> to vector<2x32xf32>
    %417 = vector.extract_strided_slice %410 {offsets = [12, 0], sizes = [2, 32], strides = [1, 1]} : vector<16x32xf32> to vector<2x32xf32>
    %418 = vector.extract_strided_slice %410 {offsets = [14, 0], sizes = [2, 32], strides = [1, 1]} : vector<16x32xf32> to vector<2x32xf32>
    %c1_220 = arith.constant 1 : index
    %c0_221 = arith.constant 0 : index
    %c0_222 = arith.constant 0 : index
    %419 = vector.load %arg5[%c1_220, %c0_221, %c0_222] : memref<3x32x32xf32, #tpu.memory_space<vmem>>, vector<1x32x32xf32>
    %420 = vector.shape_cast %419 : vector<1x32x32xf32> to vector<32x32xf32>
    %cst_223 = arith.constant dense<0.000000e+00> : vector<16x32xf32>
    %421 = tpu.matmul %403, %420, %cst_223 {dimension_numbers = #tpu.dot_dimension_numbers<[1], [0], [0], [1], [0, 0, 1, 1], [], []>} : vector<16x32xf32>, vector<32x32xf32>, vector<16x32xf32> -> vector<16x32xf32>
    %c1_224 = arith.constant 1 : index
    %c0_225 = arith.constant 0 : index
    %c0_226 = arith.constant 0 : index
    %422 = vector.load %arg7[%c1_224, %c0_225, %c0_226] : memref<3x1x32xf32, #tpu.memory_space<vmem>>, vector<1x1x32xf32>
    %423 = vector.shape_cast %422 : vector<1x1x32xf32> to vector<1x32xf32>
    %424 = vector.broadcast %423 : vector<1x32xf32> to vector<16x32xf32>
    %425 = arith.addf %421, %424 : vector<16x32xf32>
    %426 = vector.extract_strided_slice %425 {offsets = [0, 0], sizes = [2, 32], strides = [1, 1]} : vector<16x32xf32> to vector<2x32xf32>
    %427 = vector.extract_strided_slice %425 {offsets = [2, 0], sizes = [2, 32], strides = [1, 1]} : vector<16x32xf32> to vector<2x32xf32>
    %428 = vector.extract_strided_slice %425 {offsets = [4, 0], sizes = [2, 32], strides = [1, 1]} : vector<16x32xf32> to vector<2x32xf32>
    %429 = vector.extract_strided_slice %425 {offsets = [6, 0], sizes = [2, 32], strides = [1, 1]} : vector<16x32xf32> to vector<2x32xf32>
    %430 = vector.extract_strided_slice %425 {offsets = [8, 0], sizes = [2, 32], strides = [1, 1]} : vector<16x32xf32> to vector<2x32xf32>
    %431 = vector.extract_strided_slice %425 {offsets = [10, 0], sizes = [2, 32], strides = [1, 1]} : vector<16x32xf32> to vector<2x32xf32>
    %432 = vector.extract_strided_slice %425 {offsets = [12, 0], sizes = [2, 32], strides = [1, 1]} : vector<16x32xf32> to vector<2x32xf32>
    %433 = vector.extract_strided_slice %425 {offsets = [14, 0], sizes = [2, 32], strides = [1, 1]} : vector<16x32xf32> to vector<2x32xf32>
    %c2_227 = arith.constant 2 : index
    %c0_228 = arith.constant 0 : index
    %c0_229 = arith.constant 0 : index
    %434 = vector.load %arg5[%c2_227, %c0_228, %c0_229] : memref<3x32x32xf32, #tpu.memory_space<vmem>>, vector<1x32x32xf32>
    %435 = vector.shape_cast %434 : vector<1x32x32xf32> to vector<32x32xf32>
    %cst_230 = arith.constant dense<0.000000e+00> : vector<16x32xf32>
    %436 = tpu.matmul %403, %435, %cst_230 {dimension_numbers = #tpu.dot_dimension_numbers<[1], [0], [0], [1], [0, 0, 1, 1], [], []>} : vector<16x32xf32>, vector<32x32xf32>, vector<16x32xf32> -> vector<16x32xf32>
    %c2_231 = arith.constant 2 : index
    %c0_232 = arith.constant 0 : index
    %c0_233 = arith.constant 0 : index
    %437 = vector.load %arg7[%c2_231, %c0_232, %c0_233] : memref<3x1x32xf32, #tpu.memory_space<vmem>>, vector<1x1x32xf32>
    %438 = vector.shape_cast %437 : vector<1x1x32xf32> to vector<1x32xf32>
    %439 = vector.broadcast %438 : vector<1x32xf32> to vector<16x32xf32>
    %440 = arith.addf %436, %439 : vector<16x32xf32>
    %441 = vector.extract_strided_slice %440 {offsets = [0, 0], sizes = [2, 32], strides = [1, 1]} : vector<16x32xf32> to vector<2x32xf32>
    %442 = vector.extract_strided_slice %440 {offsets = [2, 0], sizes = [2, 32], strides = [1, 1]} : vector<16x32xf32> to vector<2x32xf32>
    %443 = vector.extract_strided_slice %440 {offsets = [4, 0], sizes = [2, 32], strides = [1, 1]} : vector<16x32xf32> to vector<2x32xf32>
    %444 = vector.extract_strided_slice %440 {offsets = [6, 0], sizes = [2, 32], strides = [1, 1]} : vector<16x32xf32> to vector<2x32xf32>
    %445 = vector.extract_strided_slice %440 {offsets = [8, 0], sizes = [2, 32], strides = [1, 1]} : vector<16x32xf32> to vector<2x32xf32>
    %446 = vector.extract_strided_slice %440 {offsets = [10, 0], sizes = [2, 32], strides = [1, 1]} : vector<16x32xf32> to vector<2x32xf32>
    %447 = vector.extract_strided_slice %440 {offsets = [12, 0], sizes = [2, 32], strides = [1, 1]} : vector<16x32xf32> to vector<2x32xf32>
    %448 = vector.extract_strided_slice %440 {offsets = [14, 0], sizes = [2, 32], strides = [1, 1]} : vector<16x32xf32> to vector<2x32xf32>
    %cst_234 = arith.constant 0.000000e+00 : f32
    %449 = vector.broadcast %cst_234 : f32 to vector<2x32xf32>
    %c0_235 = arith.constant 0 : index
    %c0_236 = arith.constant 0 : index
    %c0_237 = arith.constant 0 : index
    %450 = vector.load %arg6[%c0_235, %c0_236, %c0_237] : memref<3x32x32xf32, #tpu.memory_space<vmem>>, vector<1x32x32xf32>
    %451 = vector.shape_cast %450 : vector<1x32x32xf32> to vector<32x32xf32>
    %cst_238 = arith.constant dense<0.000000e+00> : vector<2x32xf32>
    %452 = tpu.matmul %449, %451, %cst_238 {dimension_numbers = #tpu.dot_dimension_numbers<[1], [0], [0], [1], [0, 0, 1, 1], [], []>} : vector<2x32xf32>, vector<32x32xf32>, vector<2x32xf32> -> vector<2x32xf32>
    %c0_239 = arith.constant 0 : index
    %c0_240 = arith.constant 0 : index
    %c0_241 = arith.constant 0 : index
    %453 = vector.load %arg8[%c0_239, %c0_240, %c0_241] : memref<3x1x32xf32, #tpu.memory_space<vmem>>, vector<1x1x32xf32>
    %454 = vector.shape_cast %453 : vector<1x1x32xf32> to vector<1x32xf32>
    %455 = vector.broadcast %454 : vector<1x32xf32> to vector<2x32xf32>
    %456 = arith.addf %452, %455 : vector<2x32xf32>
    %c1_242 = arith.constant 1 : index
    %c0_243 = arith.constant 0 : index
    %c0_244 = arith.constant 0 : index
    %457 = vector.load %arg6[%c1_242, %c0_243, %c0_244] : memref<3x32x32xf32, #tpu.memory_space<vmem>>, vector<1x32x32xf32>
    %458 = vector.shape_cast %457 : vector<1x32x32xf32> to vector<32x32xf32>
    %cst_245 = arith.constant dense<0.000000e+00> : vector<2x32xf32>
    %459 = tpu.matmul %449, %458, %cst_245 {dimension_numbers = #tpu.dot_dimension_numbers<[1], [0], [0], [1], [0, 0, 1, 1], [], []>} : vector<2x32xf32>, vector<32x32xf32>, vector<2x32xf32> -> vector<2x32xf32>
    %c1_246 = arith.constant 1 : index
    %c0_247 = arith.constant 0 : index
    %c0_248 = arith.constant 0 : index
    %460 = vector.load %arg8[%c1_246, %c0_247, %c0_248] : memref<3x1x32xf32, #tpu.memory_space<vmem>>, vector<1x1x32xf32>
    %461 = vector.shape_cast %460 : vector<1x1x32xf32> to vector<1x32xf32>
    %462 = vector.broadcast %461 : vector<1x32xf32> to vector<2x32xf32>
    %463 = arith.addf %459, %462 : vector<2x32xf32>
    %c2_249 = arith.constant 2 : index
    %c0_250 = arith.constant 0 : index
    %c0_251 = arith.constant 0 : index
    %464 = vector.load %arg6[%c2_249, %c0_250, %c0_251] : memref<3x32x32xf32, #tpu.memory_space<vmem>>, vector<1x32x32xf32>
    %465 = vector.shape_cast %464 : vector<1x32x32xf32> to vector<32x32xf32>
    %cst_252 = arith.constant dense<0.000000e+00> : vector<2x32xf32>
    %466 = tpu.matmul %449, %465, %cst_252 {dimension_numbers = #tpu.dot_dimension_numbers<[1], [0], [0], [1], [0, 0, 1, 1], [], []>} : vector<2x32xf32>, vector<32x32xf32>, vector<2x32xf32> -> vector<2x32xf32>
    %c2_253 = arith.constant 2 : index
    %c0_254 = arith.constant 0 : index
    %c0_255 = arith.constant 0 : index
    %467 = vector.load %arg8[%c2_253, %c0_254, %c0_255] : memref<3x1x32xf32, #tpu.memory_space<vmem>>, vector<1x1x32xf32>
    %468 = vector.shape_cast %467 : vector<1x1x32xf32> to vector<1x32xf32>
    %469 = vector.broadcast %468 : vector<1x32xf32> to vector<2x32xf32>
    %470 = arith.addf %466, %469 : vector<2x32xf32>
    %471 = arith.addf %411, %456 : vector<2x32xf32>
    %472 = arith.negf %471 : vector<2x32xf32>
    %473 = math.exp %472 : vector<2x32xf32>
    %cst_256 = arith.constant 1.000000e+00 : f32
    %474 = vector.broadcast %cst_256 : f32 to vector<2x32xf32>
    %475 = arith.addf %474, %473 : vector<2x32xf32>
    %476 = arith.divf %474, %475 : vector<2x32xf32>
    %477 = arith.addf %426, %463 : vector<2x32xf32>
    %478 = arith.negf %477 : vector<2x32xf32>
    %479 = math.exp %478 : vector<2x32xf32>
    %cst_257 = arith.constant 1.000000e+00 : f32
    %480 = vector.broadcast %cst_257 : f32 to vector<2x32xf32>
    %481 = arith.addf %480, %479 : vector<2x32xf32>
    %482 = arith.divf %480, %481 : vector<2x32xf32>
    %483 = arith.mulf %476, %470 : vector<2x32xf32>
    %484 = arith.addf %441, %483 : vector<2x32xf32>
    %485 = math.tanh %484 : vector<2x32xf32>
    %cst_258 = arith.constant 1.000000e+00 : f32
    %486 = vector.broadcast %cst_258 : f32 to vector<2x32xf32>
    %487 = arith.subf %486, %482 : vector<2x32xf32>
    %488 = arith.mulf %487, %485 : vector<2x32xf32>
    %489 = arith.mulf %482, %449 : vector<2x32xf32>
    %490 = arith.addf %488, %489 : vector<2x32xf32>
    %c0_259 = arith.constant 0 : index
    %c0_260 = arith.constant 0 : index
    %c0_261 = arith.constant 0 : index
    %491 = vector.load %arg6[%c0_259, %c0_260, %c0_261] : memref<3x32x32xf32, #tpu.memory_space<vmem>>, vector<1x32x32xf32>
    %492 = vector.shape_cast %491 : vector<1x32x32xf32> to vector<32x32xf32>
    %cst_262 = arith.constant dense<0.000000e+00> : vector<2x32xf32>
    %493 = tpu.matmul %490, %492, %cst_262 {dimension_numbers = #tpu.dot_dimension_numbers<[1], [0], [0], [1], [0, 0, 1, 1], [], []>} : vector<2x32xf32>, vector<32x32xf32>, vector<2x32xf32> -> vector<2x32xf32>
    %c0_263 = arith.constant 0 : index
    %c0_264 = arith.constant 0 : index
    %c0_265 = arith.constant 0 : index
    %494 = vector.load %arg8[%c0_263, %c0_264, %c0_265] : memref<3x1x32xf32, #tpu.memory_space<vmem>>, vector<1x1x32xf32>
    %495 = vector.shape_cast %494 : vector<1x1x32xf32> to vector<1x32xf32>
    %496 = vector.broadcast %495 : vector<1x32xf32> to vector<2x32xf32>
    %497 = arith.addf %493, %496 : vector<2x32xf32>
    %c1_266 = arith.constant 1 : index
    %c0_267 = arith.constant 0 : index
    %c0_268 = arith.constant 0 : index
    %498 = vector.load %arg6[%c1_266, %c0_267, %c0_268] : memref<3x32x32xf32, #tpu.memory_space<vmem>>, vector<1x32x32xf32>
    %499 = vector.shape_cast %498 : vector<1x32x32xf32> to vector<32x32xf32>
    %cst_269 = arith.constant dense<0.000000e+00> : vector<2x32xf32>
    %500 = tpu.matmul %490, %499, %cst_269 {dimension_numbers = #tpu.dot_dimension_numbers<[1], [0], [0], [1], [0, 0, 1, 1], [], []>} : vector<2x32xf32>, vector<32x32xf32>, vector<2x32xf32> -> vector<2x32xf32>
    %c1_270 = arith.constant 1 : index
    %c0_271 = arith.constant 0 : index
    %c0_272 = arith.constant 0 : index
    %501 = vector.load %arg8[%c1_270, %c0_271, %c0_272] : memref<3x1x32xf32, #tpu.memory_space<vmem>>, vector<1x1x32xf32>
    %502 = vector.shape_cast %501 : vector<1x1x32xf32> to vector<1x32xf32>
    %503 = vector.broadcast %502 : vector<1x32xf32> to vector<2x32xf32>
    %504 = arith.addf %500, %503 : vector<2x32xf32>
    %c2_273 = arith.constant 2 : index
    %c0_274 = arith.constant 0 : index
    %c0_275 = arith.constant 0 : index
    %505 = vector.load %arg6[%c2_273, %c0_274, %c0_275] : memref<3x32x32xf32, #tpu.memory_space<vmem>>, vector<1x32x32xf32>
    %506 = vector.shape_cast %505 : vector<1x32x32xf32> to vector<32x32xf32>
    %cst_276 = arith.constant dense<0.000000e+00> : vector<2x32xf32>
    %507 = tpu.matmul %490, %506, %cst_276 {dimension_numbers = #tpu.dot_dimension_numbers<[1], [0], [0], [1], [0, 0, 1, 1], [], []>} : vector<2x32xf32>, vector<32x32xf32>, vector<2x32xf32> -> vector<2x32xf32>
    %c2_277 = arith.constant 2 : index
    %c0_278 = arith.constant 0 : index
    %c0_279 = arith.constant 0 : index
    %508 = vector.load %arg8[%c2_277, %c0_278, %c0_279] : memref<3x1x32xf32, #tpu.memory_space<vmem>>, vector<1x1x32xf32>
    %509 = vector.shape_cast %508 : vector<1x1x32xf32> to vector<1x32xf32>
    %510 = vector.broadcast %509 : vector<1x32xf32> to vector<2x32xf32>
    %511 = arith.addf %507, %510 : vector<2x32xf32>
    %512 = arith.addf %412, %497 : vector<2x32xf32>
    %513 = arith.negf %512 : vector<2x32xf32>
    %514 = math.exp %513 : vector<2x32xf32>
    %cst_280 = arith.constant 1.000000e+00 : f32
    %515 = vector.broadcast %cst_280 : f32 to vector<2x32xf32>
    %516 = arith.addf %515, %514 : vector<2x32xf32>
    %517 = arith.divf %515, %516 : vector<2x32xf32>
    %518 = arith.addf %427, %504 : vector<2x32xf32>
    %519 = arith.negf %518 : vector<2x32xf32>
    %520 = math.exp %519 : vector<2x32xf32>
    %cst_281 = arith.constant 1.000000e+00 : f32
    %521 = vector.broadcast %cst_281 : f32 to vector<2x32xf32>
    %522 = arith.addf %521, %520 : vector<2x32xf32>
    %523 = arith.divf %521, %522 : vector<2x32xf32>
    %524 = arith.mulf %517, %511 : vector<2x32xf32>
    %525 = arith.addf %442, %524 : vector<2x32xf32>
    %526 = math.tanh %525 : vector<2x32xf32>
    %cst_282 = arith.constant 1.000000e+00 : f32
    %527 = vector.broadcast %cst_282 : f32 to vector<2x32xf32>
    %528 = arith.subf %527, %523 : vector<2x32xf32>
    %529 = arith.mulf %528, %526 : vector<2x32xf32>
    %530 = arith.mulf %523, %490 : vector<2x32xf32>
    %531 = arith.addf %529, %530 : vector<2x32xf32>
    %c0_283 = arith.constant 0 : index
    %c0_284 = arith.constant 0 : index
    %c0_285 = arith.constant 0 : index
    %532 = vector.load %arg6[%c0_283, %c0_284, %c0_285] : memref<3x32x32xf32, #tpu.memory_space<vmem>>, vector<1x32x32xf32>
    %533 = vector.shape_cast %532 : vector<1x32x32xf32> to vector<32x32xf32>
    %cst_286 = arith.constant dense<0.000000e+00> : vector<2x32xf32>
    %534 = tpu.matmul %531, %533, %cst_286 {dimension_numbers = #tpu.dot_dimension_numbers<[1], [0], [0], [1], [0, 0, 1, 1], [], []>} : vector<2x32xf32>, vector<32x32xf32>, vector<2x32xf32> -> vector<2x32xf32>
    %c0_287 = arith.constant 0 : index
    %c0_288 = arith.constant 0 : index
    %c0_289 = arith.constant 0 : index
    %535 = vector.load %arg8[%c0_287, %c0_288, %c0_289] : memref<3x1x32xf32, #tpu.memory_space<vmem>>, vector<1x1x32xf32>
    %536 = vector.shape_cast %535 : vector<1x1x32xf32> to vector<1x32xf32>
    %537 = vector.broadcast %536 : vector<1x32xf32> to vector<2x32xf32>
    %538 = arith.addf %534, %537 : vector<2x32xf32>
    %c1_290 = arith.constant 1 : index
    %c0_291 = arith.constant 0 : index
    %c0_292 = arith.constant 0 : index
    %539 = vector.load %arg6[%c1_290, %c0_291, %c0_292] : memref<3x32x32xf32, #tpu.memory_space<vmem>>, vector<1x32x32xf32>
    %540 = vector.shape_cast %539 : vector<1x32x32xf32> to vector<32x32xf32>
    %cst_293 = arith.constant dense<0.000000e+00> : vector<2x32xf32>
    %541 = tpu.matmul %531, %540, %cst_293 {dimension_numbers = #tpu.dot_dimension_numbers<[1], [0], [0], [1], [0, 0, 1, 1], [], []>} : vector<2x32xf32>, vector<32x32xf32>, vector<2x32xf32> -> vector<2x32xf32>
    %c1_294 = arith.constant 1 : index
    %c0_295 = arith.constant 0 : index
    %c0_296 = arith.constant 0 : index
    %542 = vector.load %arg8[%c1_294, %c0_295, %c0_296] : memref<3x1x32xf32, #tpu.memory_space<vmem>>, vector<1x1x32xf32>
    %543 = vector.shape_cast %542 : vector<1x1x32xf32> to vector<1x32xf32>
    %544 = vector.broadcast %543 : vector<1x32xf32> to vector<2x32xf32>
    %545 = arith.addf %541, %544 : vector<2x32xf32>
    %c2_297 = arith.constant 2 : index
    %c0_298 = arith.constant 0 : index
    %c0_299 = arith.constant 0 : index
    %546 = vector.load %arg6[%c2_297, %c0_298, %c0_299] : memref<3x32x32xf32, #tpu.memory_space<vmem>>, vector<1x32x32xf32>
    %547 = vector.shape_cast %546 : vector<1x32x32xf32> to vector<32x32xf32>
    %cst_300 = arith.constant dense<0.000000e+00> : vector<2x32xf32>
    %548 = tpu.matmul %531, %547, %cst_300 {dimension_numbers = #tpu.dot_dimension_numbers<[1], [0], [0], [1], [0, 0, 1, 1], [], []>} : vector<2x32xf32>, vector<32x32xf32>, vector<2x32xf32> -> vector<2x32xf32>
    %c2_301 = arith.constant 2 : index
    %c0_302 = arith.constant 0 : index
    %c0_303 = arith.constant 0 : index
    %549 = vector.load %arg8[%c2_301, %c0_302, %c0_303] : memref<3x1x32xf32, #tpu.memory_space<vmem>>, vector<1x1x32xf32>
    %550 = vector.shape_cast %549 : vector<1x1x32xf32> to vector<1x32xf32>
    %551 = vector.broadcast %550 : vector<1x32xf32> to vector<2x32xf32>
    %552 = arith.addf %548, %551 : vector<2x32xf32>
    %553 = arith.addf %413, %538 : vector<2x32xf32>
    %554 = arith.negf %553 : vector<2x32xf32>
    %555 = math.exp %554 : vector<2x32xf32>
    %cst_304 = arith.constant 1.000000e+00 : f32
    %556 = vector.broadcast %cst_304 : f32 to vector<2x32xf32>
    %557 = arith.addf %556, %555 : vector<2x32xf32>
    %558 = arith.divf %556, %557 : vector<2x32xf32>
    %559 = arith.addf %428, %545 : vector<2x32xf32>
    %560 = arith.negf %559 : vector<2x32xf32>
    %561 = math.exp %560 : vector<2x32xf32>
    %cst_305 = arith.constant 1.000000e+00 : f32
    %562 = vector.broadcast %cst_305 : f32 to vector<2x32xf32>
    %563 = arith.addf %562, %561 : vector<2x32xf32>
    %564 = arith.divf %562, %563 : vector<2x32xf32>
    %565 = arith.mulf %558, %552 : vector<2x32xf32>
    %566 = arith.addf %443, %565 : vector<2x32xf32>
    %567 = math.tanh %566 : vector<2x32xf32>
    %cst_306 = arith.constant 1.000000e+00 : f32
    %568 = vector.broadcast %cst_306 : f32 to vector<2x32xf32>
    %569 = arith.subf %568, %564 : vector<2x32xf32>
    %570 = arith.mulf %569, %567 : vector<2x32xf32>
    %571 = arith.mulf %564, %531 : vector<2x32xf32>
    %572 = arith.addf %570, %571 : vector<2x32xf32>
    %c0_307 = arith.constant 0 : index
    %c0_308 = arith.constant 0 : index
    %c0_309 = arith.constant 0 : index
    %573 = vector.load %arg6[%c0_307, %c0_308, %c0_309] : memref<3x32x32xf32, #tpu.memory_space<vmem>>, vector<1x32x32xf32>
    %574 = vector.shape_cast %573 : vector<1x32x32xf32> to vector<32x32xf32>
    %cst_310 = arith.constant dense<0.000000e+00> : vector<2x32xf32>
    %575 = tpu.matmul %572, %574, %cst_310 {dimension_numbers = #tpu.dot_dimension_numbers<[1], [0], [0], [1], [0, 0, 1, 1], [], []>} : vector<2x32xf32>, vector<32x32xf32>, vector<2x32xf32> -> vector<2x32xf32>
    %c0_311 = arith.constant 0 : index
    %c0_312 = arith.constant 0 : index
    %c0_313 = arith.constant 0 : index
    %576 = vector.load %arg8[%c0_311, %c0_312, %c0_313] : memref<3x1x32xf32, #tpu.memory_space<vmem>>, vector<1x1x32xf32>
    %577 = vector.shape_cast %576 : vector<1x1x32xf32> to vector<1x32xf32>
    %578 = vector.broadcast %577 : vector<1x32xf32> to vector<2x32xf32>
    %579 = arith.addf %575, %578 : vector<2x32xf32>
    %c1_314 = arith.constant 1 : index
    %c0_315 = arith.constant 0 : index
    %c0_316 = arith.constant 0 : index
    %580 = vector.load %arg6[%c1_314, %c0_315, %c0_316] : memref<3x32x32xf32, #tpu.memory_space<vmem>>, vector<1x32x32xf32>
    %581 = vector.shape_cast %580 : vector<1x32x32xf32> to vector<32x32xf32>
    %cst_317 = arith.constant dense<0.000000e+00> : vector<2x32xf32>
    %582 = tpu.matmul %572, %581, %cst_317 {dimension_numbers = #tpu.dot_dimension_numbers<[1], [0], [0], [1], [0, 0, 1, 1], [], []>} : vector<2x32xf32>, vector<32x32xf32>, vector<2x32xf32> -> vector<2x32xf32>
    %c1_318 = arith.constant 1 : index
    %c0_319 = arith.constant 0 : index
    %c0_320 = arith.constant 0 : index
    %583 = vector.load %arg8[%c1_318, %c0_319, %c0_320] : memref<3x1x32xf32, #tpu.memory_space<vmem>>, vector<1x1x32xf32>
    %584 = vector.shape_cast %583 : vector<1x1x32xf32> to vector<1x32xf32>
    %585 = vector.broadcast %584 : vector<1x32xf32> to vector<2x32xf32>
    %586 = arith.addf %582, %585 : vector<2x32xf32>
    %c2_321 = arith.constant 2 : index
    %c0_322 = arith.constant 0 : index
    %c0_323 = arith.constant 0 : index
    %587 = vector.load %arg6[%c2_321, %c0_322, %c0_323] : memref<3x32x32xf32, #tpu.memory_space<vmem>>, vector<1x32x32xf32>
    %588 = vector.shape_cast %587 : vector<1x32x32xf32> to vector<32x32xf32>
    %cst_324 = arith.constant dense<0.000000e+00> : vector<2x32xf32>
    %589 = tpu.matmul %572, %588, %cst_324 {dimension_numbers = #tpu.dot_dimension_numbers<[1], [0], [0], [1], [0, 0, 1, 1], [], []>} : vector<2x32xf32>, vector<32x32xf32>, vector<2x32xf32> -> vector<2x32xf32>
    %c2_325 = arith.constant 2 : index
    %c0_326 = arith.constant 0 : index
    %c0_327 = arith.constant 0 : index
    %590 = vector.load %arg8[%c2_325, %c0_326, %c0_327] : memref<3x1x32xf32, #tpu.memory_space<vmem>>, vector<1x1x32xf32>
    %591 = vector.shape_cast %590 : vector<1x1x32xf32> to vector<1x32xf32>
    %592 = vector.broadcast %591 : vector<1x32xf32> to vector<2x32xf32>
    %593 = arith.addf %589, %592 : vector<2x32xf32>
    %594 = arith.addf %414, %579 : vector<2x32xf32>
    %595 = arith.negf %594 : vector<2x32xf32>
    %596 = math.exp %595 : vector<2x32xf32>
    %cst_328 = arith.constant 1.000000e+00 : f32
    %597 = vector.broadcast %cst_328 : f32 to vector<2x32xf32>
    %598 = arith.addf %597, %596 : vector<2x32xf32>
    %599 = arith.divf %597, %598 : vector<2x32xf32>
    %600 = arith.addf %429, %586 : vector<2x32xf32>
    %601 = arith.negf %600 : vector<2x32xf32>
    %602 = math.exp %601 : vector<2x32xf32>
    %cst_329 = arith.constant 1.000000e+00 : f32
    %603 = vector.broadcast %cst_329 : f32 to vector<2x32xf32>
    %604 = arith.addf %603, %602 : vector<2x32xf32>
    %605 = arith.divf %603, %604 : vector<2x32xf32>
    %606 = arith.mulf %599, %593 : vector<2x32xf32>
    %607 = arith.addf %444, %606 : vector<2x32xf32>
    %608 = math.tanh %607 : vector<2x32xf32>
    %cst_330 = arith.constant 1.000000e+00 : f32
    %609 = vector.broadcast %cst_330 : f32 to vector<2x32xf32>
    %610 = arith.subf %609, %605 : vector<2x32xf32>
    %611 = arith.mulf %610, %608 : vector<2x32xf32>
    %612 = arith.mulf %605, %572 : vector<2x32xf32>
    %613 = arith.addf %611, %612 : vector<2x32xf32>
    %c0_331 = arith.constant 0 : index
    %c0_332 = arith.constant 0 : index
    %c0_333 = arith.constant 0 : index
    %614 = vector.load %arg6[%c0_331, %c0_332, %c0_333] : memref<3x32x32xf32, #tpu.memory_space<vmem>>, vector<1x32x32xf32>
    %615 = vector.shape_cast %614 : vector<1x32x32xf32> to vector<32x32xf32>
    %cst_334 = arith.constant dense<0.000000e+00> : vector<2x32xf32>
    %616 = tpu.matmul %613, %615, %cst_334 {dimension_numbers = #tpu.dot_dimension_numbers<[1], [0], [0], [1], [0, 0, 1, 1], [], []>} : vector<2x32xf32>, vector<32x32xf32>, vector<2x32xf32> -> vector<2x32xf32>
    %c0_335 = arith.constant 0 : index
    %c0_336 = arith.constant 0 : index
    %c0_337 = arith.constant 0 : index
    %617 = vector.load %arg8[%c0_335, %c0_336, %c0_337] : memref<3x1x32xf32, #tpu.memory_space<vmem>>, vector<1x1x32xf32>
    %618 = vector.shape_cast %617 : vector<1x1x32xf32> to vector<1x32xf32>
    %619 = vector.broadcast %618 : vector<1x32xf32> to vector<2x32xf32>
    %620 = arith.addf %616, %619 : vector<2x32xf32>
    %c1_338 = arith.constant 1 : index
    %c0_339 = arith.constant 0 : index
    %c0_340 = arith.constant 0 : index
    %621 = vector.load %arg6[%c1_338, %c0_339, %c0_340] : memref<3x32x32xf32, #tpu.memory_space<vmem>>, vector<1x32x32xf32>
    %622 = vector.shape_cast %621 : vector<1x32x32xf32> to vector<32x32xf32>
    %cst_341 = arith.constant dense<0.000000e+00> : vector<2x32xf32>
    %623 = tpu.matmul %613, %622, %cst_341 {dimension_numbers = #tpu.dot_dimension_numbers<[1], [0], [0], [1], [0, 0, 1, 1], [], []>} : vector<2x32xf32>, vector<32x32xf32>, vector<2x32xf32> -> vector<2x32xf32>
    %c1_342 = arith.constant 1 : index
    %c0_343 = arith.constant 0 : index
    %c0_344 = arith.constant 0 : index
    %624 = vector.load %arg8[%c1_342, %c0_343, %c0_344] : memref<3x1x32xf32, #tpu.memory_space<vmem>>, vector<1x1x32xf32>
    %625 = vector.shape_cast %624 : vector<1x1x32xf32> to vector<1x32xf32>
    %626 = vector.broadcast %625 : vector<1x32xf32> to vector<2x32xf32>
    %627 = arith.addf %623, %626 : vector<2x32xf32>
    %c2_345 = arith.constant 2 : index
    %c0_346 = arith.constant 0 : index
    %c0_347 = arith.constant 0 : index
    %628 = vector.load %arg6[%c2_345, %c0_346, %c0_347] : memref<3x32x32xf32, #tpu.memory_space<vmem>>, vector<1x32x32xf32>
    %629 = vector.shape_cast %628 : vector<1x32x32xf32> to vector<32x32xf32>
    %cst_348 = arith.constant dense<0.000000e+00> : vector<2x32xf32>
    %630 = tpu.matmul %613, %629, %cst_348 {dimension_numbers = #tpu.dot_dimension_numbers<[1], [0], [0], [1], [0, 0, 1, 1], [], []>} : vector<2x32xf32>, vector<32x32xf32>, vector<2x32xf32> -> vector<2x32xf32>
    %c2_349 = arith.constant 2 : index
    %c0_350 = arith.constant 0 : index
    %c0_351 = arith.constant 0 : index
    %631 = vector.load %arg8[%c2_349, %c0_350, %c0_351] : memref<3x1x32xf32, #tpu.memory_space<vmem>>, vector<1x1x32xf32>
    %632 = vector.shape_cast %631 : vector<1x1x32xf32> to vector<1x32xf32>
    %633 = vector.broadcast %632 : vector<1x32xf32> to vector<2x32xf32>
    %634 = arith.addf %630, %633 : vector<2x32xf32>
    %635 = arith.addf %415, %620 : vector<2x32xf32>
    %636 = arith.negf %635 : vector<2x32xf32>
    %637 = math.exp %636 : vector<2x32xf32>
    %cst_352 = arith.constant 1.000000e+00 : f32
    %638 = vector.broadcast %cst_352 : f32 to vector<2x32xf32>
    %639 = arith.addf %638, %637 : vector<2x32xf32>
    %640 = arith.divf %638, %639 : vector<2x32xf32>
    %641 = arith.addf %430, %627 : vector<2x32xf32>
    %642 = arith.negf %641 : vector<2x32xf32>
    %643 = math.exp %642 : vector<2x32xf32>
    %cst_353 = arith.constant 1.000000e+00 : f32
    %644 = vector.broadcast %cst_353 : f32 to vector<2x32xf32>
    %645 = arith.addf %644, %643 : vector<2x32xf32>
    %646 = arith.divf %644, %645 : vector<2x32xf32>
    %647 = arith.mulf %640, %634 : vector<2x32xf32>
    %648 = arith.addf %445, %647 : vector<2x32xf32>
    %649 = math.tanh %648 : vector<2x32xf32>
    %cst_354 = arith.constant 1.000000e+00 : f32
    %650 = vector.broadcast %cst_354 : f32 to vector<2x32xf32>
    %651 = arith.subf %650, %646 : vector<2x32xf32>
    %652 = arith.mulf %651, %649 : vector<2x32xf32>
    %653 = arith.mulf %646, %613 : vector<2x32xf32>
    %654 = arith.addf %652, %653 : vector<2x32xf32>
    %c0_355 = arith.constant 0 : index
    %c0_356 = arith.constant 0 : index
    %c0_357 = arith.constant 0 : index
    %655 = vector.load %arg6[%c0_355, %c0_356, %c0_357] : memref<3x32x32xf32, #tpu.memory_space<vmem>>, vector<1x32x32xf32>
    %656 = vector.shape_cast %655 : vector<1x32x32xf32> to vector<32x32xf32>
    %cst_358 = arith.constant dense<0.000000e+00> : vector<2x32xf32>
    %657 = tpu.matmul %654, %656, %cst_358 {dimension_numbers = #tpu.dot_dimension_numbers<[1], [0], [0], [1], [0, 0, 1, 1], [], []>} : vector<2x32xf32>, vector<32x32xf32>, vector<2x32xf32> -> vector<2x32xf32>
    %c0_359 = arith.constant 0 : index
    %c0_360 = arith.constant 0 : index
    %c0_361 = arith.constant 0 : index
    %658 = vector.load %arg8[%c0_359, %c0_360, %c0_361] : memref<3x1x32xf32, #tpu.memory_space<vmem>>, vector<1x1x32xf32>
    %659 = vector.shape_cast %658 : vector<1x1x32xf32> to vector<1x32xf32>
    %660 = vector.broadcast %659 : vector<1x32xf32> to vector<2x32xf32>
    %661 = arith.addf %657, %660 : vector<2x32xf32>
    %c1_362 = arith.constant 1 : index
    %c0_363 = arith.constant 0 : index
    %c0_364 = arith.constant 0 : index
    %662 = vector.load %arg6[%c1_362, %c0_363, %c0_364] : memref<3x32x32xf32, #tpu.memory_space<vmem>>, vector<1x32x32xf32>
    %663 = vector.shape_cast %662 : vector<1x32x32xf32> to vector<32x32xf32>
    %cst_365 = arith.constant dense<0.000000e+00> : vector<2x32xf32>
    %664 = tpu.matmul %654, %663, %cst_365 {dimension_numbers = #tpu.dot_dimension_numbers<[1], [0], [0], [1], [0, 0, 1, 1], [], []>} : vector<2x32xf32>, vector<32x32xf32>, vector<2x32xf32> -> vector<2x32xf32>
    %c1_366 = arith.constant 1 : index
    %c0_367 = arith.constant 0 : index
    %c0_368 = arith.constant 0 : index
    %665 = vector.load %arg8[%c1_366, %c0_367, %c0_368] : memref<3x1x32xf32, #tpu.memory_space<vmem>>, vector<1x1x32xf32>
    %666 = vector.shape_cast %665 : vector<1x1x32xf32> to vector<1x32xf32>
    %667 = vector.broadcast %666 : vector<1x32xf32> to vector<2x32xf32>
    %668 = arith.addf %664, %667 : vector<2x32xf32>
    %c2_369 = arith.constant 2 : index
    %c0_370 = arith.constant 0 : index
    %c0_371 = arith.constant 0 : index
    %669 = vector.load %arg6[%c2_369, %c0_370, %c0_371] : memref<3x32x32xf32, #tpu.memory_space<vmem>>, vector<1x32x32xf32>
    %670 = vector.shape_cast %669 : vector<1x32x32xf32> to vector<32x32xf32>
    %cst_372 = arith.constant dense<0.000000e+00> : vector<2x32xf32>
    %671 = tpu.matmul %654, %670, %cst_372 {dimension_numbers = #tpu.dot_dimension_numbers<[1], [0], [0], [1], [0, 0, 1, 1], [], []>} : vector<2x32xf32>, vector<32x32xf32>, vector<2x32xf32> -> vector<2x32xf32>
    %c2_373 = arith.constant 2 : index
    %c0_374 = arith.constant 0 : index
    %c0_375 = arith.constant 0 : index
    %672 = vector.load %arg8[%c2_373, %c0_374, %c0_375] : memref<3x1x32xf32, #tpu.memory_space<vmem>>, vector<1x1x32xf32>
    %673 = vector.shape_cast %672 : vector<1x1x32xf32> to vector<1x32xf32>
    %674 = vector.broadcast %673 : vector<1x32xf32> to vector<2x32xf32>
    %675 = arith.addf %671, %674 : vector<2x32xf32>
    %676 = arith.addf %416, %661 : vector<2x32xf32>
    %677 = arith.negf %676 : vector<2x32xf32>
    %678 = math.exp %677 : vector<2x32xf32>
    %cst_376 = arith.constant 1.000000e+00 : f32
    %679 = vector.broadcast %cst_376 : f32 to vector<2x32xf32>
    %680 = arith.addf %679, %678 : vector<2x32xf32>
    %681 = arith.divf %679, %680 : vector<2x32xf32>
    %682 = arith.addf %431, %668 : vector<2x32xf32>
    %683 = arith.negf %682 : vector<2x32xf32>
    %684 = math.exp %683 : vector<2x32xf32>
    %cst_377 = arith.constant 1.000000e+00 : f32
    %685 = vector.broadcast %cst_377 : f32 to vector<2x32xf32>
    %686 = arith.addf %685, %684 : vector<2x32xf32>
    %687 = arith.divf %685, %686 : vector<2x32xf32>
    %688 = arith.mulf %681, %675 : vector<2x32xf32>
    %689 = arith.addf %446, %688 : vector<2x32xf32>
    %690 = math.tanh %689 : vector<2x32xf32>
    %cst_378 = arith.constant 1.000000e+00 : f32
    %691 = vector.broadcast %cst_378 : f32 to vector<2x32xf32>
    %692 = arith.subf %691, %687 : vector<2x32xf32>
    %693 = arith.mulf %692, %690 : vector<2x32xf32>
    %694 = arith.mulf %687, %654 : vector<2x32xf32>
    %695 = arith.addf %693, %694 : vector<2x32xf32>
    %c0_379 = arith.constant 0 : index
    %c0_380 = arith.constant 0 : index
    %c0_381 = arith.constant 0 : index
    %696 = vector.load %arg6[%c0_379, %c0_380, %c0_381] : memref<3x32x32xf32, #tpu.memory_space<vmem>>, vector<1x32x32xf32>
    %697 = vector.shape_cast %696 : vector<1x32x32xf32> to vector<32x32xf32>
    %cst_382 = arith.constant dense<0.000000e+00> : vector<2x32xf32>
    %698 = tpu.matmul %695, %697, %cst_382 {dimension_numbers = #tpu.dot_dimension_numbers<[1], [0], [0], [1], [0, 0, 1, 1], [], []>} : vector<2x32xf32>, vector<32x32xf32>, vector<2x32xf32> -> vector<2x32xf32>
    %c0_383 = arith.constant 0 : index
    %c0_384 = arith.constant 0 : index
    %c0_385 = arith.constant 0 : index
    %699 = vector.load %arg8[%c0_383, %c0_384, %c0_385] : memref<3x1x32xf32, #tpu.memory_space<vmem>>, vector<1x1x32xf32>
    %700 = vector.shape_cast %699 : vector<1x1x32xf32> to vector<1x32xf32>
    %701 = vector.broadcast %700 : vector<1x32xf32> to vector<2x32xf32>
    %702 = arith.addf %698, %701 : vector<2x32xf32>
    %c1_386 = arith.constant 1 : index
    %c0_387 = arith.constant 0 : index
    %c0_388 = arith.constant 0 : index
    %703 = vector.load %arg6[%c1_386, %c0_387, %c0_388] : memref<3x32x32xf32, #tpu.memory_space<vmem>>, vector<1x32x32xf32>
    %704 = vector.shape_cast %703 : vector<1x32x32xf32> to vector<32x32xf32>
    %cst_389 = arith.constant dense<0.000000e+00> : vector<2x32xf32>
    %705 = tpu.matmul %695, %704, %cst_389 {dimension_numbers = #tpu.dot_dimension_numbers<[1], [0], [0], [1], [0, 0, 1, 1], [], []>} : vector<2x32xf32>, vector<32x32xf32>, vector<2x32xf32> -> vector<2x32xf32>
    %c1_390 = arith.constant 1 : index
    %c0_391 = arith.constant 0 : index
    %c0_392 = arith.constant 0 : index
    %706 = vector.load %arg8[%c1_390, %c0_391, %c0_392] : memref<3x1x32xf32, #tpu.memory_space<vmem>>, vector<1x1x32xf32>
    %707 = vector.shape_cast %706 : vector<1x1x32xf32> to vector<1x32xf32>
    %708 = vector.broadcast %707 : vector<1x32xf32> to vector<2x32xf32>
    %709 = arith.addf %705, %708 : vector<2x32xf32>
    %c2_393 = arith.constant 2 : index
    %c0_394 = arith.constant 0 : index
    %c0_395 = arith.constant 0 : index
    %710 = vector.load %arg6[%c2_393, %c0_394, %c0_395] : memref<3x32x32xf32, #tpu.memory_space<vmem>>, vector<1x32x32xf32>
    %711 = vector.shape_cast %710 : vector<1x32x32xf32> to vector<32x32xf32>
    %cst_396 = arith.constant dense<0.000000e+00> : vector<2x32xf32>
    %712 = tpu.matmul %695, %711, %cst_396 {dimension_numbers = #tpu.dot_dimension_numbers<[1], [0], [0], [1], [0, 0, 1, 1], [], []>} : vector<2x32xf32>, vector<32x32xf32>, vector<2x32xf32> -> vector<2x32xf32>
    %c2_397 = arith.constant 2 : index
    %c0_398 = arith.constant 0 : index
    %c0_399 = arith.constant 0 : index
    %713 = vector.load %arg8[%c2_397, %c0_398, %c0_399] : memref<3x1x32xf32, #tpu.memory_space<vmem>>, vector<1x1x32xf32>
    %714 = vector.shape_cast %713 : vector<1x1x32xf32> to vector<1x32xf32>
    %715 = vector.broadcast %714 : vector<1x32xf32> to vector<2x32xf32>
    %716 = arith.addf %712, %715 : vector<2x32xf32>
    %717 = arith.addf %417, %702 : vector<2x32xf32>
    %718 = arith.negf %717 : vector<2x32xf32>
    %719 = math.exp %718 : vector<2x32xf32>
    %cst_400 = arith.constant 1.000000e+00 : f32
    %720 = vector.broadcast %cst_400 : f32 to vector<2x32xf32>
    %721 = arith.addf %720, %719 : vector<2x32xf32>
    %722 = arith.divf %720, %721 : vector<2x32xf32>
    %723 = arith.addf %432, %709 : vector<2x32xf32>
    %724 = arith.negf %723 : vector<2x32xf32>
    %725 = math.exp %724 : vector<2x32xf32>
    %cst_401 = arith.constant 1.000000e+00 : f32
    %726 = vector.broadcast %cst_401 : f32 to vector<2x32xf32>
    %727 = arith.addf %726, %725 : vector<2x32xf32>
    %728 = arith.divf %726, %727 : vector<2x32xf32>
    %729 = arith.mulf %722, %716 : vector<2x32xf32>
    %730 = arith.addf %447, %729 : vector<2x32xf32>
    %731 = math.tanh %730 : vector<2x32xf32>
    %cst_402 = arith.constant 1.000000e+00 : f32
    %732 = vector.broadcast %cst_402 : f32 to vector<2x32xf32>
    %733 = arith.subf %732, %728 : vector<2x32xf32>
    %734 = arith.mulf %733, %731 : vector<2x32xf32>
    %735 = arith.mulf %728, %695 : vector<2x32xf32>
    %736 = arith.addf %734, %735 : vector<2x32xf32>
    %c0_403 = arith.constant 0 : index
    %c0_404 = arith.constant 0 : index
    %c0_405 = arith.constant 0 : index
    %737 = vector.load %arg6[%c0_403, %c0_404, %c0_405] : memref<3x32x32xf32, #tpu.memory_space<vmem>>, vector<1x32x32xf32>
    %738 = vector.shape_cast %737 : vector<1x32x32xf32> to vector<32x32xf32>
    %cst_406 = arith.constant dense<0.000000e+00> : vector<2x32xf32>
    %739 = tpu.matmul %736, %738, %cst_406 {dimension_numbers = #tpu.dot_dimension_numbers<[1], [0], [0], [1], [0, 0, 1, 1], [], []>} : vector<2x32xf32>, vector<32x32xf32>, vector<2x32xf32> -> vector<2x32xf32>
    %c0_407 = arith.constant 0 : index
    %c0_408 = arith.constant 0 : index
    %c0_409 = arith.constant 0 : index
    %740 = vector.load %arg8[%c0_407, %c0_408, %c0_409] : memref<3x1x32xf32, #tpu.memory_space<vmem>>, vector<1x1x32xf32>
    %741 = vector.shape_cast %740 : vector<1x1x32xf32> to vector<1x32xf32>
    %742 = vector.broadcast %741 : vector<1x32xf32> to vector<2x32xf32>
    %743 = arith.addf %739, %742 : vector<2x32xf32>
    %c1_410 = arith.constant 1 : index
    %c0_411 = arith.constant 0 : index
    %c0_412 = arith.constant 0 : index
    %744 = vector.load %arg6[%c1_410, %c0_411, %c0_412] : memref<3x32x32xf32, #tpu.memory_space<vmem>>, vector<1x32x32xf32>
    %745 = vector.shape_cast %744 : vector<1x32x32xf32> to vector<32x32xf32>
    %cst_413 = arith.constant dense<0.000000e+00> : vector<2x32xf32>
    %746 = tpu.matmul %736, %745, %cst_413 {dimension_numbers = #tpu.dot_dimension_numbers<[1], [0], [0], [1], [0, 0, 1, 1], [], []>} : vector<2x32xf32>, vector<32x32xf32>, vector<2x32xf32> -> vector<2x32xf32>
    %c1_414 = arith.constant 1 : index
    %c0_415 = arith.constant 0 : index
    %c0_416 = arith.constant 0 : index
    %747 = vector.load %arg8[%c1_414, %c0_415, %c0_416] : memref<3x1x32xf32, #tpu.memory_space<vmem>>, vector<1x1x32xf32>
    %748 = vector.shape_cast %747 : vector<1x1x32xf32> to vector<1x32xf32>
    %749 = vector.broadcast %748 : vector<1x32xf32> to vector<2x32xf32>
    %750 = arith.addf %746, %749 : vector<2x32xf32>
    %c2_417 = arith.constant 2 : index
    %c0_418 = arith.constant 0 : index
    %c0_419 = arith.constant 0 : index
    %751 = vector.load %arg6[%c2_417, %c0_418, %c0_419] : memref<3x32x32xf32, #tpu.memory_space<vmem>>, vector<1x32x32xf32>
    %752 = vector.shape_cast %751 : vector<1x32x32xf32> to vector<32x32xf32>
    %cst_420 = arith.constant dense<0.000000e+00> : vector<2x32xf32>
    %753 = tpu.matmul %736, %752, %cst_420 {dimension_numbers = #tpu.dot_dimension_numbers<[1], [0], [0], [1], [0, 0, 1, 1], [], []>} : vector<2x32xf32>, vector<32x32xf32>, vector<2x32xf32> -> vector<2x32xf32>
    %c2_421 = arith.constant 2 : index
    %c0_422 = arith.constant 0 : index
    %c0_423 = arith.constant 0 : index
    %754 = vector.load %arg8[%c2_421, %c0_422, %c0_423] : memref<3x1x32xf32, #tpu.memory_space<vmem>>, vector<1x1x32xf32>
    %755 = vector.shape_cast %754 : vector<1x1x32xf32> to vector<1x32xf32>
    %756 = vector.broadcast %755 : vector<1x32xf32> to vector<2x32xf32>
    %757 = arith.addf %753, %756 : vector<2x32xf32>
    %758 = arith.addf %418, %743 : vector<2x32xf32>
    %759 = arith.negf %758 : vector<2x32xf32>
    %760 = math.exp %759 : vector<2x32xf32>
    %cst_424 = arith.constant 1.000000e+00 : f32
    %761 = vector.broadcast %cst_424 : f32 to vector<2x32xf32>
    %762 = arith.addf %761, %760 : vector<2x32xf32>
    %763 = arith.divf %761, %762 : vector<2x32xf32>
    %764 = arith.addf %433, %750 : vector<2x32xf32>
    %765 = arith.negf %764 : vector<2x32xf32>
    %766 = math.exp %765 : vector<2x32xf32>
    %cst_425 = arith.constant 1.000000e+00 : f32
    %767 = vector.broadcast %cst_425 : f32 to vector<2x32xf32>
    %768 = arith.addf %767, %766 : vector<2x32xf32>
    %769 = arith.divf %767, %768 : vector<2x32xf32>
    %770 = arith.mulf %763, %757 : vector<2x32xf32>
    %771 = arith.addf %448, %770 : vector<2x32xf32>
    %772 = math.tanh %771 : vector<2x32xf32>
    %cst_426 = arith.constant 1.000000e+00 : f32
    %773 = vector.broadcast %cst_426 : f32 to vector<2x32xf32>
    %774 = arith.subf %773, %769 : vector<2x32xf32>
    %775 = arith.mulf %774, %772 : vector<2x32xf32>
    %776 = arith.mulf %769, %736 : vector<2x32xf32>
    %777 = arith.addf %775, %776 : vector<2x32xf32>
    %778 = tpu.concatenate %402, %777 in 0 : vector<2x32xf32>, vector<2x32xf32> -> vector<4x32xf32>
    %cst_427 = arith.constant 0.000000e+00 : f32
    %779 = vector.broadcast %cst_427 : f32 to vector<4x32xf32>
    %780 = arith.maximumf %778, %779 : vector<4x32xf32>
    %c0_428 = arith.constant 0 : index
    %c0_429 = arith.constant 0 : index
    %781 = vector.load %arg9[%c0_428, %c0_429] : memref<32x128xf32, #tpu.memory_space<vmem>>, vector<32x128xf32>
    %cst_430 = arith.constant dense<0.000000e+00> : vector<4x128xf32>
    %782 = tpu.matmul %780, %781, %cst_430 {dimension_numbers = #tpu.dot_dimension_numbers<[1], [0], [0], [1], [0, 0, 1, 1], [], []>} : vector<4x32xf32>, vector<32x128xf32>, vector<4x128xf32> -> vector<4x128xf32>
    %c0_431 = arith.constant 0 : index
    %c0_432 = arith.constant 0 : index
    %783 = vector.load %arg10[%c0_431, %c0_432] : memref<1x128xf32, #tpu.memory_space<vmem>>, vector<1x128xf32>
    %784 = vector.broadcast %783 : vector<1x128xf32> to vector<4x128xf32>
    %785 = arith.addf %782, %784 : vector<4x128xf32>
    %cst_433 = arith.constant 0.000000e+00 : f32
    %786 = vector.broadcast %cst_433 : f32 to vector<4x128xf32>
    %787 = arith.maximumf %785, %786 : vector<4x128xf32>
    %c0_434 = arith.constant 0 : index
    %c0_435 = arith.constant 0 : index
    %788 = vector.load %arg11[%c0_434, %c0_435] : memref<128x5xf32, #tpu.memory_space<vmem>>, vector<128x5xf32>
    %cst_436 = arith.constant dense<0.000000e+00> : vector<4x5xf32>
    %789 = tpu.matmul %787, %788, %cst_436 {dimension_numbers = #tpu.dot_dimension_numbers<[1], [0], [0], [1], [0, 0, 1, 1], [], []>} : vector<4x128xf32>, vector<128x5xf32>, vector<4x5xf32> -> vector<4x5xf32>
    %c0_437 = arith.constant 0 : index
    %c0_438 = arith.constant 0 : index
    %790 = vector.load %arg12[%c0_437, %c0_438] : memref<1x5xf32, #tpu.memory_space<vmem>>, vector<1x5xf32>
    %791 = vector.broadcast %790 : vector<1x5xf32> to vector<4x5xf32>
    %792 = arith.addf %789, %791 : vector<4x5xf32>
    %c0_439 = arith.constant 0 : index
    %c0_440 = arith.constant 0 : index
    %793 = vector.load %arg13[%c0_439, %c0_440] : memref<4x5xf32, #tpu.memory_space<vmem>>, vector<4x5xf32>
    tpu.vector_store %arg13[%c0_439, %c0_440], %792 {strides = array<i32>} : memref<4x5xf32, #tpu.memory_space<vmem>>, vector<4x5xf32>,
    return
  }
}

</mosaic_0001>

<bundles_post_ra>
// kernel: tpu_custom_call.1
= control target key start
LH: loop header
LB: loop body
LE: loop exit
PB: predicated region body
PF: predicated region fallthrough
CT: control target
= control target key end

     0   :  { %18 = vsyncpa [#allocation3], 0  ;;  %s7695_s0 = inlined_call_operand.vmem [shape: f32[2,8,4], index: 0, kind: input, shape index: {}]   ;;  %s7696_s1 = inlined_call_operand.vmem [shape: f32[3,4,32], index: 1, kind: input, shape index: {}]   ;;  %s7697_s2 = inlined_call_operand.vmem [shape: f32[3,32,32], index: 2, kind: input, shape index: {}]   ;;  %s7698_s3 = inlined_call_operand.vmem [shape: f32[3,1,32], index: 3, kind: input, shape index: {}]   ;;  %s7699_s4 = inlined_call_operand.vmem [shape: f32[3,1,32], index: 4, kind: input, shape index: {}]   ;;  %s7700_s5 = inlined_call_operand.hbm [shape: f32[3,32,32], index: 5, kind: input, shape index: {}]   ;;  %s7701_s6 = inlined_call_operand.hbm [shape: f32[3,32,32], index: 6, kind: input, shape index: {}]   ;;  %s7702_s7 = inlined_call_operand.vmem [shape: f32[3,1,32], index: 7, kind: input, shape index: {}]   ;;  %s7703_s8 = inlined_call_operand.vmem [shape: f32[3,1,32], index: 8, kind: input, shape index: {}]   ;;  %s7704_s9 = inlined_call_operand.vmem [shape: f32[32,128], index: 9, kind: input, shape index: {}]   ;;  %s7705_s10 = inlined_call_operand.vmem [shape: f32[1,128], index: 10, kind: input, shape index: {}]   ;;  %s7706_s11 = inlined_call_operand.vmem [shape: f32[128,5], index: 11, kind: input, shape index: {}]   ;;  %s7707_s12 = inlined_call_operand.vmem [shape: f32[1,5], index: 12, kind: input, shape index: {}]   ;;  %s7708_s13 = inlined_call_operand.hbm [shape: f32[4,5], index: 13, kind: output, shape index: {}]  }
   0x1   :  { %19 = vsyncpa [#allocation6], 0 }
   0x2   :  { %20 = vsyncpa [#allocation4], 0  ;;  %s6456_s25 = smov [#allocation2]  }
   0x3   :  { %s36_s26 = sshll.u32 %s6456_s25, 4  ;;  %s37_s26 = int_to_ptr.vmem [resolvable:$true] %s36_s26 }
   0x4   :  { %s6398_s27 = scalar_lea.vmem %s37_s26, 1536  ;;  %p6403_p1 = scmp.lt.s32.totalorder %s37_s26, %s37_s26 }
   0x5   :  { %p6399_p0 = scmp.ne.s32.totalorder %s37_s26, %s6398_s27  ;;  %p6404_p2 = scmp.lt.s32.totalorder %s6398_s27, %s6398_s27 }
   0x7   :  { %p6405_p3 = por %p6404_p2, %p6403_p1 }
   0x9   :  { %p6406_p4 = pnand %p6405_p3, %p6399_p0 }
   0xb   :  { %6409 = shalt.err (!%p6406_p4)
}
   0xc   :  { %s6457_s28 = smov 128   ;;  %s6458_s29 = smov 8  }
   0xd   :  { %42 = dma.hbm_to_vmem [thread:$0]  %s7700_s5, 1536, %s37_s26, [#allocation3], %s6457_s28, %s6457_s28, %s6458_s29  }
   0xe   :  { %s6459_s15 = smov [#allocation5]  }
   0xf   :  { %s48_s16 = sshll.u32 %s6459_s15, 4  ;;  %s49_s16 = int_to_ptr.vmem [resolvable:$true] %s48_s16 }
  0x10   :  { %s6418_s17 = scalar_lea.vmem %s49_s16, 1536  ;;  %p6423_p6 = scmp.lt.s32.totalorder %s49_s16, %s49_s16 }
  0x11   :  { %p6419_p5 = scmp.ne.s32.totalorder %s49_s16, %s6418_s17  ;;  %p6424_p7 = scmp.lt.s32.totalorder %s6418_s17, %s6418_s17 }
  0x13   :  { %p6425_p8 = por %p6424_p7, %p6423_p6 }
  0x15   :  { %p6426_p9 = pnand %p6425_p8, %p6419_p5 }
  0x17   :  { %6429 = shalt.err (!%p6426_p9)
}
  0x18   :  { %54 = dma.hbm_to_vmem [thread:$0]  %s7701_s6, 1536, %s49_s16, [#allocation6], %s6457_s28, %s6457_s28, %s6458_s29  }
  0x19   :  { %6450 = dma.done.wait [#allocation3], 1536  }
  0x1a   :  { %6451 = vsyncadd [#allocation3], 4294965760 }
  0x1b   :  { %6452 = dma.done.wait [#allocation6], 1536  }
  0x1c   :  { %6453 = vsyncadd [#allocation6], 4294965760  ;;  %vm90_vm0 = vcmask 1043456   ;;  %vm83_vm1 = vcmask 31744   ;;  %v75_v0 = vld [vmem:[%s7696_s1] sm:$0xf] }
  0x1d   :  { %v73_v1 = vld [vmem:[%s7695_s0] sm:$0xff]  ;;  %v74_v2 = vld [vmem:[%s7695_s0 + $0x8] sm:$0xff]  ;;  %5506 = vmatprep.subr.msk.mxu0 %vm90_vm0, %v75_v0  ;;  %v6460_v5 = vmov 0.0   ;;  %v6566_v6 = vld [vmem:[%s7697_s2 + $0x18] sm:$0xff]  ;;  %vm6461_vm2 = vmmov 0   ;;  %vm653_vm3 = vcmask 1041409  }
  0x1e   :  { %5508 = vmatprep.mubr.msk.f32.mxu0 %vm83_vm1, %v73_v1  ;;  %v5089_v3 = vld [vmem:[%s7696_s1 + $0x8] sm:$0xf]  ;;  %5507 = vmatpush3.msk.msra.mxu0 %vm90_vm0, %v75_v0  ;;  %v5083_v4 = vld [vmem:[%s7696_s1 + $0x4] sm:$0xf]  ;;  %v6574_v7 = vld [vmem:[%s7697_s2 + $0x10] sm:$0xff]  ;;  %vm356_vm4 = vcmask 261120  }
  0x1f   :  { %5513 = vmatprep.mubr.msk.f32.mxu1 %vm83_vm1, %v73_v1  ;;  %5509 = vmatmul.mubr.msk.f32.vlgmr.msra.gmra.mxu0 %vm83_vm1, %v74_v2  ;;  %v6584_v8 = vld [vmem:[%s7697_s2 + $0x8] sm:$0xff]  ;;  %v6589_v9 = vld [vmem:[%s7697_s2 + $0x38] sm:$0xff]  ;;  %v6598_v10 = vld [vmem:[%s7697_s2] sm:$0xff]  ;;  %vm2593_vm5 = vcmask 1043459   ;;  %vm2620_vm6 = vcmask 1041408   ;;  %vm2598_vm7 = vcmask 1045509  }
  0x20   :  { %5516 = vmatprep.subr.msk.mxu0 %vm90_vm0, %v5089_v3  ;;  %5518 = vmatprep.mubr.msk.f32.mxu0 %vm83_vm1, %v73_v1  ;;  %v6603_v11 = vld [vmem:[%s7697_s2 + $0x30] sm:$0xff]  ;;  %v6612_v12 = vld [vmem:[%s7697_s2 + $0x28] sm:$0xff]  ;;  %v6626_v13 = vld [vmem:[%s7697_s2 + $0x20] sm:$0xff]  ;;  %vm2603_vm8 = vcmask 1047559   ;;  %vm2623_vm9 = vcmask 1045504   ;;  %s6462_s28 = smov [#allocation7]  }
  0x21   :  { %5517 = vmatpush3.msk.msra.mxu0 %vm90_vm0, %v5089_v3  ;;  %5511 = vmatprep.subr.msk.mxu1 %vm90_vm0, %v5083_v4  ;;  %v6640_v14 = vld [vmem:[%s7697_s2 + $0x58] sm:$0xff]  ;;  %v6648_v15 = vld [vmem:[%s7697_s2 + $0x50] sm:$0xff]  ;;  %v6657_v16 = vld [vmem:[%s7697_s2 + $0x48] sm:$0xff]  ;;  %s5069_s29 = sshll.u32 %s6462_s28, 4  ;;  %vm5061_vm10 = vcmask 35840   ;;  %s5070_s29 = int_to_ptr.vmem [resolvable:$true] %s5069_s29 }
  0x22   :  { %5521 = vmatprep.subr.mxu0 %v6460_v5  ;;  %5512 = vmatpush3.msk.msra.mxu1 %vm90_vm0, %v5083_v4  ;;  %v6664_v17 = vld [vmem:[%s7697_s2 + $0x40] sm:$0xff]  ;;  %p6435_p11 = scmp.lt.s32.totalorder %s5070_s29, %s5070_s29 }
  0x23   :  { %5519 = vmatmul.mubr.msk.f32.vlgmr.msra.gmra.mxu0 %vm83_vm1, %v74_v2  ;;  %5514 = vmatmul.mubr.msk.f32.vlgmr.msra.gmra.mxu1 %vm83_vm1, %v74_v2  ;;  %v6684_v22 = vld [vmem:[%s7699_s4] ss:$0 sm:$0xff]  ;;  %v5085_v32 = vld [vmem:[%s7698_s3 + $0x1] ss:$0 sm:$0xff]  ;;  %v6714_v54 = vld [vmem:[%s7699_s4 + $0x2] ss:$0 sm:$0xff] }
  0x24   :  { %5522 = vmatpush3.msra.mxu0 %v6566_v6  ;;  %5529 = vmatprep.mubr.msk.f32.mxu0 %vm6461_vm2, %v6460_v5  ;;  %v5079_v23 = vld [vmem:[%s7698_s3] ss:$0 sm:$0xff]  ;;  %v6702_v36 = vld [vmem:[%s7699_s4 + $0x1] ss:$0 sm:$0xff]  ;;  %v5091_v62 = vld [vmem:[%s7698_s3 + $0x2] ss:$0 sm:$0xff] }
  0x25   :  { %5523 = vmatprep.subr.mxu0 %v6460_v5  ;;  %5565 = vmatprep.subr.mxu1 %v6460_v5 }
  0x26   :  { %5524 = vmatpush3.msra.mxu0 %v6574_v7  ;;  %5566 = vmatpush3.msra.mxu1 %v6589_v9 }
  0x27   :  { %5525 = vmatprep.subr.mxu0 %v6460_v5  ;;  %5567 = vmatprep.subr.mxu1 %v6460_v5 }
  0x28   :  { %5526 = vmatpush3.msra.mxu0 %v6584_v8  ;;  %5568 = vmatpush3.msra.mxu1 %v6603_v11 }
  0x29   :  { %5527 = vmatprep.subr.mxu0 %v6460_v5  ;;  %5569 = vmatprep.subr.mxu1 %v6460_v5 }
  0x2a   :  { %5528 = vmatpush3.msra.mxu0 %v6598_v10  ;;  %5570 = vmatpush3.msra.mxu1 %v6612_v12 }
  0x2b   :  { %5530 = vmatmul.mubr.f32.vlgmr.msra.gmra.mxu0 %v6460_v5  ;;  %5532 = vmatprep.subr.mxu0 %v6460_v5 }
  0x2c   :  { %5533 = vmatpush3.msra.mxu0 %v6589_v9  ;;  %5540 = vmatprep.mubr.msk.f32.mxu0 %vm6461_vm2, %v6460_v5 }
  0x2d   :  { %5534 = vmatprep.subr.mxu0 %v6460_v5  ;;  %5571 = vmatprep.subr.mxu1 %v6460_v5 }
  0x2e   :  { %5535 = vmatpush3.msra.mxu0 %v6603_v11  ;;  %5572 = vmatpush3.msra.mxu1 %v6626_v13 }
  0x2f   :  { %5536 = vmatprep.subr.mxu0 %v6460_v5  ;;  %5573 = vmatprep.mubr.msk.f32.mxu1 %vm6461_vm2, %v6460_v5 }
  0x30   :  { %5537 = vmatpush3.msra.mxu0 %v6612_v12  ;;  %5587 = vmatprep.subr.mxu1 %v6460_v5 }
  0x31   :  { %5538 = vmatprep.subr.mxu0 %v6460_v5 }
  0x32   :  { %5539 = vmatpush3.msra.mxu0 %v6626_v13 }
  0x33   :  { %5541 = vmatmul.mubr.f32.vlgmr.msra.gmra.mxu0 %v6460_v5  ;;  %5543 = vmatprep.subr.mxu0 %v6460_v5 }
  0x34   :  { %5544 = vmatpush3.msra.mxu0 %v6640_v14  ;;  %5551 = vmatprep.mubr.msk.f32.mxu0 %vm6461_vm2, %v6460_v5 }
  0x35   :  { %5545 = vmatprep.subr.mxu0 %v6460_v5 }
  0x36   :  { %5546 = vmatpush3.msra.mxu0 %v6648_v15 }
  0x37   :  { %5547 = vmatprep.subr.mxu0 %v6460_v5 }
  0x38   :  { %5548 = vmatpush3.msra.mxu0 %v6657_v16 }
  0x39   :  { %5549 = vmatprep.subr.mxu0 %v6460_v5 }
  0x3a   :  { %5550 = vmatpush3.msra.mxu0 %v6664_v17 }
  0x3b   :  { %5552 = vmatmul.mubr.f32.vlgmr.msra.gmra.mxu0 %v6460_v5  ;;  %5554 = vmatprep.subr.mxu0 %v6460_v5 }
  0x3c   :  { %5555 = vmatpush3.msra.mxu0 %v6566_v6  ;;  %5562 = vmatprep.mubr.msk.f32.mxu0 %vm6461_vm2, %v6460_v5 }
  0x3d   :  { %5556 = vmatprep.subr.mxu0 %v6460_v5 }
  0x3e   :  { %5557 = vmatpush3.msra.mxu0 %v6574_v7 }
  0x3f   :  { %5558 = vmatprep.subr.mxu0 %v6460_v5 }
  0x40   :  { %5559 = vmatpush3.msra.mxu0 %v6584_v8 }
  0x41   :  { %5560 = vmatprep.subr.mxu0 %v6460_v5 }
  0x42   :  { %5561 = vmatpush3.msra.mxu0 %v6598_v10 }
  0x43   :  { %5576 = vmatprep.subr.mxu0 %v6460_v5 }
  0xdf   :  { %v5510_v18 = vpop.f32.mrf.mxu0 }
  0xe0   :  { %v6692_v29 = vadd.f32 %v5510_v18, %v5079_v23 }
  0xe1   :  { %v160_v19 = vpop.f32.mrf.mxu0 }
  0xe2   :  { %v6689_v26 = vadd.f32 %v5079_v23, %v160_v19 }
  0xe3   :  { %v5520_v20 = vpop.f32.mrf.mxu0  ;;  %v5515_v25 = vpop.f32.mrf.mxu1 }
  0xe4   :  { %v6706_v40 = vadd.f32 %v5515_v25, %v5085_v32  ;;  %v6722_v2 = vadd.f32 %v5520_v20, %v5091_v62 }
  0xe5   :  { %v336_v21 = vpop.f32.mrf.mxu0  ;;  %v248_v33 = vpop.f32.mrf.mxu1 }
  0xe6   :  { %v6704_v38 = vadd.f32 %v5085_v32, %v248_v33  ;;  %v6720_v63 = vadd.f32 %v5091_v62, %v336_v21 }
  0xeb   :  { %v426_v24 = vpop.f32.mrf.mxu0 }
  0xec   :  { %v427_v27 = vadd.f32 %v6684_v22, %v426_v24 }
  0xed   :  { %v5531_v28 = vpop.f32.mrf.mxu0 }
  0xee   :  { %v597_v30 = vrot.slane %v427_v27, 1  ;;  %v600_v31 = vadd.f32 %v427_v27, %v6689_v26 }
  0xf0   :  { %v601_v34 = vadd.f32 %v597_v30, %v6692_v29  ;;  %v5108_v35 = vmul.f32 -1.442695, %v600_v31 }
  0xf2   :  { %6135 = vpow2.f32 %v5108_v35  ;;  %v5109_v37 = vmul.f32 -1.442695, %v601_v34 }
  0xf3   :  { %v509_v39 = vpop.f32.mrf.mxu0 }
  0xf4   :  { %6137 = vpow2.f32 %v5109_v37  ;;  %v510_v41 = vadd.f32 %v6702_v36, %v509_v39 }
  0xf5   :  { %v5542_v42 = vpop.f32.mrf.mxu0 }
  0xf6   :  { %v615_v43 = vrot.slane %v510_v41, 1  ;;  %v618_v44 = vadd.f32 %v510_v41, %v6704_v38 }
  0xf8   :  { %v619_v45 = vadd.f32 %v615_v43, %v6706_v40  ;;  %v5110_v46 = vmul.f32 -1.442695, %v618_v44 }
  0xfa   :  { %v5111_v47 = vmul.f32 -1.442695, %v619_v45  ;;  %6139 = vpow2.f32 %v5110_v46 }
  0xfb   :  { %v592_v48 = vpop.f32.mrf.mxu0 }
  0xfc   :  { %6141 = vpow2.f32 %v5111_v47  ;;  %v593_v57 = vadd.f32 %v6714_v54, %v592_v48 }
  0xfd   :  { %v5553_v49 = vpop.f32.mrf.mxu0 }
  0xfe   :  { %v633_v60 = vrot.slane %v593_v57, 1 }
  0xff   :  { %v6136_v50 = vpop.eup %6135 }
 0x100   :  { %v608_v51 = vadd.f32 1.0, %v6136_v50 }
 0x101   :  { %v6138_v52 = vpop.eup %6137 }
 0x102   :  { %v609_v53 = vadd.f32 1.0, %v6138_v52  ;;  %6143 = vrcp.f32 %v608_v51 }
 0x104   :  { %6145 = vrcp.f32 %v609_v53 }
 0x107   :  { %v6140_v55 = vpop.eup %6139 }
 0x108   :  { %v626_v58 = vadd.f32 1.0, %v6140_v55 }
 0x109   :  { %v6142_v56 = vpop.eup %6141 }
 0x10a   :  { %v627_v59 = vadd.f32 1.0, %v6142_v56  ;;  %6147 = vrcp.f32 %v626_v58 }
 0x10c   :  { %6149 = vrcp.f32 %v627_v59 }
 0x10f   :  { %v6144_v61 = vpop.eup %6143 }
 0x110   :  { %v636_v0 = vmul.f32 %v6144_v61, %v593_v57 }
 0x111   :  { %v6146_v1 = vpop.eup %6145 }
 0x112   :  { %v637_v3 = vmul.f32 %v6146_v1, %v633_v60  ;;  %v638_v4 = vadd.f32 %v636_v0, %v6720_v63 }
 0x114   :  { %v639_v18 = vadd.f32 %v637_v3, %v6722_v2  ;;  %6151 = vtanh.f32 %v638_v4 }
 0x116   :  { %6153 = vtanh.f32 %v639_v18 }
 0x117   :  { %v6148_v19 = vpop.eup %6147 }
 0x118   :  { %v642_v24 = vsub.f32 1.0, %v6148_v19  ;;  %v646_v32 = vmul.f32 0.0, %v6148_v19 }
 0x119   :  { %v6150_v23 = vpop.eup %6149 }
 0x11a   :  { %v643_v25 = vsub.f32 1.0, %v6150_v23  ;;  %v647_v31 = vmul.f32 0.0, %v6150_v23 }
 0x121   :  { %v6152_v27 = vpop.eup %6151 }
 0x122   :  { %v644_v21 = vmul.f32 %v6152_v27, %v642_v24 }
 0x123   :  { %v6154_v28 = vpop.eup %6153 }
 0x124   :  { %v645_v30 = vmul.f32 %v6154_v28, %v643_v25  ;;  %v6728_v20 = vadd.f32 %v646_v32, %v644_v21 }
 0x126   :  { %v6726_v33 = vadd.f32 %v647_v31, %v645_v30  ;;  %v917_v32 = vrot.slane %v6728_v20, 7 }
 0x128   :  { %v652_v34 = vrot.slane %v6726_v33, 7 }
 0x12a   :  { %v6735_v35 = vsel %vm653_vm3, %v652_v34, %v6728_v20 }
 0x12b   :  { %5563 = vmatmul.mubr.msk.f32.vlgmr.msra.gmra.mxu0 %vm356_vm4, %v6735_v35  ;;  %5574 = vmatmul.mubr.msk.f32.vlgmr.msra.gmra.mxu1 %vm356_vm4, %v6735_v35 }
 0x12c   :  { %5577 = vmatpush3.msra.mxu0 %v6640_v14  ;;  %5584 = vmatprep.mubr.msk.f32.mxu0 %vm6461_vm2, %v6460_v5 }
 0x12d   :  { %5578 = vmatprep.subr.mxu0 %v6460_v5  ;;  %5588 = vmatpush3.msra.mxu1 %v6566_v6 }
 0x12e   :  { %5579 = vmatpush3.msra.mxu0 %v6648_v15  ;;  %5589 = vmatprep.subr.mxu1 %v6460_v5 }
 0x12f   :  { %5580 = vmatprep.subr.mxu0 %v6460_v5  ;;  %5590 = vmatpush3.msra.mxu1 %v6574_v7 }
 0x130   :  { %5581 = vmatpush3.msra.mxu0 %v6657_v16  ;;  %5591 = vmatprep.subr.mxu1 %v6460_v5 }
 0x131   :  { %5582 = vmatprep.subr.mxu0 %v6460_v5  ;;  %5592 = vmatpush3.msra.mxu1 %v6584_v8 }
 0x132   :  { %5583 = vmatpush3.msra.mxu0 %v6664_v17  ;;  %5593 = vmatprep.subr.mxu1 %v6460_v5 }
 0x133   :  { %5585 = vmatmul.mubr.msk.f32.vlgmr.msra.gmra.mxu0 %vm356_vm4, %v6735_v35  ;;  %5598 = vmatprep.subr.mxu0 %v6460_v5 }
 0x134   :  { %5599 = vmatpush3.msra.mxu0 %v6589_v9  ;;  %5594 = vmatpush3.msra.mxu1 %v6598_v10 }
 0x135   :  { %5600 = vmatprep.subr.mxu0 %v6460_v5  ;;  %5595 = vmatprep.mubr.msk.f32.mxu1 %vm6461_vm2, %v6460_v5 }
 0x136   :  { %5601 = vmatpush3.msra.mxu0 %v6603_v11  ;;  %5606 = vmatprep.mubr.msk.f32.mxu0 %vm6461_vm2, %v6460_v5 }
 0x137   :  { %5602 = vmatprep.subr.mxu0 %v6460_v5  ;;  %5609 = vmatprep.subr.mxu1 %v6460_v5 }
 0x138   :  { %5603 = vmatpush3.msra.mxu0 %v6612_v12 }
 0x139   :  { %5604 = vmatprep.subr.mxu0 %v6460_v5 }
 0x13a   :  { %5605 = vmatpush3.msra.mxu0 %v6626_v13 }
 0x13b   :  { %5620 = vmatprep.subr.mxu0 %v6460_v5 }
 0x1eb   :  { %v723_v37 = vpop.f32.mrf.mxu0  ;;  %v793_v39 = vpop.f32.mrf.mxu1 }
 0x1ec   :  { %v724_v41 = vadd.f32 %v6684_v22, %v723_v37  ;;  %v794_v46 = vadd.f32 %v6702_v36, %v793_v39 }
 0x1ed   :  { %v5564_v42 = vpop.f32.mrf.mxu0  ;;  %v5575_v43 = vpop.f32.mrf.mxu1 }
 0x1ee   :  { %v868_v44 = vrot.slane %v724_v41, 7  ;;  %v872_v45 = vadd.f32 %v724_v41, %v6692_v29  ;;  %v886_v50 = vrot.slane %v794_v46, 7  ;;  %v890_v52 = vadd.f32 %v794_v46, %v6706_v40 }
 0x1f0   :  { %v871_v47 = vadd.f32 %v868_v44, %v6689_v26  ;;  %v5116_v48 = vmul.f32 -1.442695, %v872_v45  ;;  %v889_v55 = vadd.f32 %v886_v50, %v6704_v38  ;;  %v5118_v56 = vmul.f32 -1.442695, %v890_v52 }
 0x1f2   :  { %v5115_v49 = vmul.f32 -1.442695, %v871_v47  ;;  %6155 = vpow2.f32 %v5116_v48  ;;  %v5117_v57 = vmul.f32 -1.442695, %v889_v55 }
 0x1f3   :  { %v863_v51 = vpop.f32.mrf.mxu0 }
 0x1f4   :  { %6157 = vpow2.f32 %v5115_v49  ;;  %v864_v1 = vadd.f32 %v6714_v54, %v863_v51 }
 0x1f5   :  { %v5586_v53 = vpop.f32.mrf.mxu0  ;;  %6159 = vpow2.f32 %v5118_v56 }
 0x1f6   :  { %6161 = vpow2.f32 %v5117_v57  ;;  %v904_v19 = vrot.slane %v864_v1, 7 }
 0x1ff   :  { %v6156_v58 = vpop.eup %6155 }
 0x200   :  { %v880_v59 = vadd.f32 1.0, %v6156_v58 }
 0x201   :  { %v6158_v60 = vpop.eup %6157 }
 0x202   :  { %v879_v61 = vadd.f32 1.0, %v6158_v60  ;;  %6163 = vrcp.f32 %v880_v59  ;;  %v6160_v62 = vpop.eup %6159 }
 0x203   :  { %v6162_v0 = vpop.eup %6161  ;;  %v898_v3 = vadd.f32 1.0, %v6160_v62 }
 0x204   :  { %6165 = vrcp.f32 %v879_v61  ;;  %v897_v4 = vadd.f32 1.0, %v6162_v0 }
 0x205   :  { %6167 = vrcp.f32 %v898_v3 }
 0x206   :  { %6169 = vrcp.f32 %v897_v4 }
 0x20f   :  { %v6164_v18 = vpop.eup %6163 }
 0x210   :  { %v908_v23 = vmul.f32 %v6164_v18, %v864_v1 }
 0x211   :  { %v6166_v24 = vpop.eup %6165 }
 0x212   :  { %v907_v25 = vmul.f32 %v6166_v24, %v904_v19  ;;  %v910_v27 = vadd.f32 %v908_v23, %v6722_v2  ;;  %v6168_v21 = vpop.eup %6167 }
 0x213   :  { %v6170_v30 = vpop.eup %6169  ;;  %v914_v39 = vsub.f32 1.0, %v6168_v21  ;;  %v921_v45 = vmul.f32 %v6168_v21, %v652_v34 }
 0x214   :  { %v909_v28 = vadd.f32 %v907_v25, %v6720_v63  ;;  %6171 = vtanh.f32 %v910_v27  ;;  %v913_v37 = vsub.f32 1.0, %v6170_v30  ;;  %v920_v44 = vmul.f32 %v6170_v30, %v917_v32 }
 0x216   :  { %6173 = vtanh.f32 %v909_v28 }
 0x221   :  { %v6172_v31 = vpop.eup %6171 }
 0x222   :  { %v916_v43 = vmul.f32 %v6172_v31, %v914_v39 }
 0x223   :  { %v6174_v41 = vpop.eup %6173 }
 0x224   :  { %v915_v42 = vmul.f32 %v6174_v41, %v913_v37  ;;  %v6787_v47 = vadd.f32 %v921_v45, %v916_v43 }
 0x226   :  { %v6785_v46 = vadd.f32 %v920_v44, %v915_v42 }
 0x228   :  { %v926_v48 = vrot.slane %v6785_v46, 1 }
 0x22a   :  { %v927_v49 = vsel %vm653_vm3, %v6787_v47, %v926_v48 }
 0x22b   :  { %5596 = vmatmul.mubr.msk.f32.vlgmr.msra.gmra.mxu1 %vm356_vm4, %v927_v49  ;;  %5607 = vmatmul.mubr.msk.f32.vlgmr.msra.gmra.mxu0 %vm356_vm4, %v927_v49 }
 0x22c   :  { %5610 = vmatpush3.msra.mxu1 %v6640_v14  ;;  %5617 = vmatprep.mubr.msk.f32.mxu1 %vm6461_vm2, %v6460_v5 }
 0x22d   :  { %5611 = vmatprep.subr.mxu1 %v6460_v5  ;;  %5621 = vmatpush3.msra.mxu0 %v6566_v6 }
 0x22e   :  { %5612 = vmatpush3.msra.mxu1 %v6648_v15  ;;  %5622 = vmatprep.subr.mxu0 %v6460_v5 }
 0x22f   :  { %5613 = vmatprep.subr.mxu1 %v6460_v5  ;;  %5623 = vmatpush3.msra.mxu0 %v6574_v7 }
 0x230   :  { %5614 = vmatpush3.msra.mxu1 %v6657_v16  ;;  %5624 = vmatprep.subr.mxu0 %v6460_v5 }
 0x231   :  { %5615 = vmatprep.subr.mxu1 %v6460_v5  ;;  %5625 = vmatpush3.msra.mxu0 %v6584_v8 }
 0x232   :  { %5616 = vmatpush3.msra.mxu1 %v6664_v17  ;;  %5626 = vmatprep.subr.mxu0 %v6460_v5 }
 0x233   :  { %5618 = vmatmul.mubr.msk.f32.vlgmr.msra.gmra.mxu1 %vm356_vm4, %v927_v49  ;;  %5631 = vmatprep.subr.mxu1 %v6460_v5 }
 0x234   :  { %5632 = vmatpush3.msra.mxu1 %v6589_v9  ;;  %5627 = vmatpush3.msra.mxu0 %v6598_v10 }
 0x235   :  { %5633 = vmatprep.subr.mxu1 %v6460_v5  ;;  %5628 = vmatprep.mubr.msk.f32.mxu0 %vm6461_vm2, %v6460_v5 }
 0x236   :  { %5634 = vmatpush3.msra.mxu1 %v6603_v11  ;;  %5639 = vmatprep.mubr.msk.f32.mxu1 %vm6461_vm2, %v6460_v5 }
 0x237   :  { %5635 = vmatprep.subr.mxu1 %v6460_v5  ;;  %5642 = vmatprep.subr.mxu0 %v6460_v5 }
 0x238   :  { %5636 = vmatpush3.msra.mxu1 %v6612_v12 }
 0x239   :  { %5637 = vmatprep.subr.mxu1 %v6460_v5 }
 0x23a   :  { %5638 = vmatpush3.msra.mxu1 %v6626_v13 }
 0x23b   :  { %5653 = vmatprep.subr.mxu1 %v6460_v5 }
 0x2eb   :  { %v996_v33 = vpop.f32.mrf.mxu1  ;;  %v1066_v20 = vpop.f32.mrf.mxu0 }
 0x2ec   :  { %v997_v34 = vadd.f32 %v6684_v22, %v996_v33  ;;  %v1067_v55 = vadd.f32 %v6702_v36, %v1066_v20  ;;  %v1193_v33 = vrot.slane %v6785_v46, 7 }
 0x2ed   :  { %v5597_v50 = vpop.f32.mrf.mxu1  ;;  %v5608_v51 = vpop.f32.mrf.mxu0 }
 0x2ee   :  { %v1141_v52 = vrot.slane %v997_v34, 6  ;;  %v1142_v53 = vrot.slane %v997_v34, 7  ;;  %v1160_v60 = vrot.slane %v1067_v55, 6  ;;  %v1161_v61 = vrot.slane %v1067_v55, 7 }
 0x2ef   :  { %v1194_v50 = vrot.slane %v6787_v47, 7 }
 0x2f0   :  { %v1145_v56 = vadd.f32 %v1141_v52, %v6689_v26  ;;  %v1146_v57 = vadd.f32 %v1142_v53, %v6692_v29  ;;  %v1164_v1 = vadd.f32 %v1160_v60, %v6704_v38  ;;  %v1165_v3 = vadd.f32 %v1161_v61, %v6706_v40 }
 0x2f2   :  { %v5122_v58 = vmul.f32 -1.442695, %v1145_v56  ;;  %v5123_v59 = vmul.f32 -1.442695, %v1146_v57  ;;  %v5124_v4 = vmul.f32 -1.442695, %v1164_v1 }
 0x2f3   :  { %v1136_v62 = vpop.f32.mrf.mxu1  ;;  %v5125_v18 = vmul.f32 -1.442695, %v1165_v3 }
 0x2f4   :  { %6175 = vpow2.f32 %v5122_v58  ;;  %v1137_v21 = vadd.f32 %v6714_v54, %v1136_v62 }
 0x2f5   :  { %6177 = vpow2.f32 %v5123_v59  ;;  %v5619_v0 = vpop.f32.mrf.mxu1  ;;  %v2592_v59 = vrot.slane %v6787_v47, 6 }
 0x2f6   :  { %6179 = vpow2.f32 %v5124_v4  ;;  %v1179_v32 = vrot.slane %v1137_v21, 6  ;;  %v1180_v39 = vrot.slane %v1137_v21, 7 }
 0x2f7   :  { %6181 = vpow2.f32 %v5125_v18  ;;  %v2594_v61 = vsel %vm2593_vm5, %v2592_v59, %v1193_v33 }
 0x2f8   :  { %v2621_v47 = vsel %vm2620_vm6, %v6735_v35, %v2594_v61 }
 0x301   :  { %v6176_v19 = vpop.eup %6175 }
 0x302   :  { %v6178_v23 = vpop.eup %6177  ;;  %v1153_v24 = vadd.f32 1.0, %v6176_v19 }
 0x303   :  { %v1154_v25 = vadd.f32 1.0, %v6178_v23  ;;  %v6180_v27 = vpop.eup %6179 }
 0x304   :  { %6183 = vrcp.f32 %v1153_v24  ;;  %v6182_v28 = vpop.eup %6181  ;;  %v1172_v30 = vadd.f32 1.0, %v6180_v27 }
 0x305   :  { %6185 = vrcp.f32 %v1154_v25  ;;  %v1173_v31 = vadd.f32 1.0, %v6182_v28 }
 0x306   :  { %6187 = vrcp.f32 %v1172_v30 }
 0x307   :  { %6189 = vrcp.f32 %v1173_v31 }
 0x311   :  { %v6184_v37 = vpop.eup %6183 }
 0x312   :  { %v6186_v41 = vpop.eup %6185  ;;  %v1183_v42 = vmul.f32 %v6184_v37, %v1179_v32 }
 0x313   :  { %v1184_v43 = vmul.f32 %v6186_v41, %v1180_v39  ;;  %v6188_v48 = vpop.eup %6187 }
 0x314   :  { %v1185_v44 = vadd.f32 %v1183_v42, %v6720_v63  ;;  %v6190_v49 = vpop.eup %6189  ;;  %v1189_v20 = vsub.f32 1.0, %v6188_v48  ;;  %v1197_v55 = vmul.f32 %v6188_v48, %v1193_v33 }
 0x315   :  { %v1186_v45 = vadd.f32 %v1184_v43, %v6722_v2  ;;  %v1190_v51 = vsub.f32 1.0, %v6190_v49  ;;  %v1198_v57 = vmul.f32 %v6190_v49, %v1194_v50 }
 0x316   :  { %6191 = vtanh.f32 %v1185_v44 }
 0x317   :  { %6193 = vtanh.f32 %v1186_v45 }
 0x323   :  { %v6192_v34 = vpop.eup %6191 }
 0x324   :  { %v6194_v52 = vpop.eup %6193  ;;  %v1191_v53 = vmul.f32 %v6192_v34, %v1189_v20 }
 0x325   :  { %v1192_v56 = vmul.f32 %v6194_v52, %v1190_v51 }
 0x326   :  { %v6836_v58 = vadd.f32 %v1197_v55, %v1191_v53 }
 0x327   :  { %v6839_v60 = vadd.f32 %v1198_v57, %v1192_v56 }
 0x328   :  { %v1203_v46 = vrot.slane %v6836_v58, 2  ;;  %v2596_v62 = vrot.slane %v6836_v58, 6 }
 0x329   :  { %v1204_v0 = vrot.slane %v6839_v60, 1  ;;  %v2597_v1 = vrot.slane %v6839_v60, 5 }
 0x32b   :  { %v1205_v3 = vsel %vm653_vm3, %v1204_v0, %v1203_v46  ;;  %v2599_v4 = vsel %vm2598_vm7, %v2597_v1, %v2596_v62 }
 0x32c   :  { %5629 = vmatmul.mubr.msk.f32.vlgmr.msra.gmra.mxu0 %vm356_vm4, %v1205_v3  ;;  %5640 = vmatmul.mubr.msk.f32.vlgmr.msra.gmra.mxu1 %vm356_vm4, %v1205_v3  ;;  %v6853_v18 = vsel %vm90_vm0, %v2621_v47, %v2599_v4 }
 0x32d   :  { %5643 = vmatpush3.msra.mxu0 %v6640_v14  ;;  %5650 = vmatprep.mubr.msk.f32.mxu0 %vm6461_vm2, %v6460_v5 }
 0x32e   :  { %5644 = vmatprep.subr.mxu0 %v6460_v5  ;;  %5654 = vmatpush3.msra.mxu1 %v6566_v6 }
 0x32f   :  { %5645 = vmatpush3.msra.mxu0 %v6648_v15  ;;  %5655 = vmatprep.subr.mxu1 %v6460_v5 }
 0x330   :  { %5646 = vmatprep.subr.mxu0 %v6460_v5  ;;  %5656 = vmatpush3.msra.mxu1 %v6574_v7 }
 0x331   :  { %5647 = vmatpush3.msra.mxu0 %v6657_v16  ;;  %5657 = vmatprep.subr.mxu1 %v6460_v5 }
 0x332   :  { %5648 = vmatprep.subr.mxu0 %v6460_v5  ;;  %5658 = vmatpush3.msra.mxu1 %v6584_v8 }
 0x333   :  { %5649 = vmatpush3.msra.mxu0 %v6664_v17  ;;  %5659 = vmatprep.subr.mxu1 %v6460_v5 }
 0x334   :  { %5651 = vmatmul.mubr.msk.f32.vlgmr.msra.gmra.mxu0 %vm356_vm4, %v1205_v3  ;;  %5664 = vmatprep.subr.mxu0 %v6460_v5 }
 0x335   :  { %5665 = vmatpush3.msra.mxu0 %v6589_v9  ;;  %5660 = vmatpush3.msra.mxu1 %v6598_v10 }
 0x336   :  { %5666 = vmatprep.subr.mxu0 %v6460_v5  ;;  %5661 = vmatprep.mubr.msk.f32.mxu1 %vm6461_vm2, %v6460_v5 }
 0x337   :  { %5667 = vmatpush3.msra.mxu0 %v6603_v11  ;;  %5672 = vmatprep.mubr.msk.f32.mxu0 %vm6461_vm2, %v6460_v5 }
 0x338   :  { %5668 = vmatprep.subr.mxu0 %v6460_v5  ;;  %5675 = vmatprep.subr.mxu1 %v6460_v5 }
 0x339   :  { %5669 = vmatpush3.msra.mxu0 %v6612_v12 }
 0x33a   :  { %5670 = vmatprep.subr.mxu0 %v6460_v5 }
 0x33b   :  { %5671 = vmatpush3.msra.mxu0 %v6626_v13 }
 0x33c   :  { %5686 = vmatprep.subr.mxu0 %v6460_v5 }
 0x3ec   :  { %v1274_v35 = vpop.f32.mrf.mxu0  ;;  %v1344_v19 = vpop.f32.mrf.mxu1 }
 0x3ed   :  { %v1275_v23 = vadd.f32 %v6684_v22, %v1274_v35  ;;  %v1345_v21 = vadd.f32 %v6702_v36, %v1344_v19  ;;  %v1471_v19 = vrot.slane %v6836_v58, 7 }
 0x3ee   :  { %v5630_v24 = vpop.f32.mrf.mxu0  ;;  %v5641_v25 = vpop.f32.mrf.mxu1 }
 0x3ef   :  { %v1419_v27 = vrot.slane %v1275_v23, 5  ;;  %v1420_v28 = vrot.slane %v1275_v23, 6  ;;  %v1438_v39 = vrot.slane %v1345_v21, 5  ;;  %v1439_v41 = vrot.slane %v1345_v21, 6 }
 0x3f0   :  { %v1472_v25 = vrot.slane %v6839_v60, 7 }
 0x3f1   :  { %v1423_v30 = vadd.f32 %v1419_v27, %v6689_v26  ;;  %v1424_v31 = vadd.f32 %v1420_v28, %v6692_v29  ;;  %v1442_v44 = vadd.f32 %v1438_v39, %v6704_v38  ;;  %v1443_v45 = vadd.f32 %v1439_v41, %v6706_v40 }
 0x3f3   :  { %v5129_v32 = vmul.f32 -1.442695, %v1423_v30  ;;  %v5130_v37 = vmul.f32 -1.442695, %v1424_v31  ;;  %v5131_v48 = vmul.f32 -1.442695, %v1442_v44 }
 0x3f4   :  { %v1414_v42 = vpop.f32.mrf.mxu0  ;;  %v5132_v49 = vmul.f32 -1.442695, %v1443_v45 }
 0x3f5   :  { %6195 = vpow2.f32 %v5129_v32  ;;  %v1415_v53 = vadd.f32 %v6714_v54, %v1414_v42 }
 0x3f6   :  { %6197 = vpow2.f32 %v5130_v37  ;;  %v5652_v43 = vpop.f32.mrf.mxu0 }
 0x3f7   :  { %6199 = vpow2.f32 %v5131_v48  ;;  %v1457_v57 = vrot.slane %v1415_v53, 5  ;;  %v1458_v46 = vrot.slane %v1415_v53, 6 }
 0x3f8   :  { %6201 = vpow2.f32 %v5132_v49 }
 0x402   :  { %v6196_v33 = vpop.eup %6195 }
 0x403   :  { %v6198_v20 = vpop.eup %6197  ;;  %v1431_v34 = vadd.f32 1.0, %v6196_v33 }
 0x404   :  { %v1432_v50 = vadd.f32 1.0, %v6198_v20  ;;  %v6200_v51 = vpop.eup %6199 }
 0x405   :  { %6203 = vrcp.f32 %v1431_v34  ;;  %v6202_v52 = vpop.eup %6201  ;;  %v1450_v55 = vadd.f32 1.0, %v6200_v51 }
 0x406   :  { %6205 = vrcp.f32 %v1432_v50  ;;  %v1451_v56 = vadd.f32 1.0, %v6202_v52 }
 0x407   :  { %6207 = vrcp.f32 %v1450_v55 }
 0x408   :  { %6209 = vrcp.f32 %v1451_v56 }
 0x412   :  { %v6204_v59 = vpop.eup %6203 }
 0x413   :  { %v6206_v61 = vpop.eup %6205  ;;  %v1461_v62 = vmul.f32 %v6204_v59, %v1457_v57 }
 0x414   :  { %v1462_v0 = vmul.f32 %v6206_v61, %v1458_v46  ;;  %v6208_v4 = vpop.eup %6207 }
 0x415   :  { %v1463_v1 = vadd.f32 %v1461_v62, %v6720_v63  ;;  %v6210_v47 = vpop.eup %6209  ;;  %v1467_v35 = vsub.f32 1.0, %v6208_v4  ;;  %v1475_v21 = vmul.f32 %v6208_v4, %v1471_v19 }
 0x416   :  { %v1464_v3 = vadd.f32 %v1462_v0, %v6722_v2  ;;  %v1468_v24 = vsub.f32 1.0, %v6210_v47  ;;  %v1476_v31 = vmul.f32 %v6210_v47, %v1472_v25 }
 0x417   :  { %6211 = vtanh.f32 %v1463_v1 }
 0x418   :  { %6213 = vtanh.f32 %v1464_v3 }
 0x424   :  { %v6212_v23 = vpop.eup %6211 }
 0x425   :  { %v6214_v27 = vpop.eup %6213  ;;  %v1469_v28 = vmul.f32 %v6212_v23, %v1467_v35 }
 0x426   :  { %v1470_v30 = vmul.f32 %v6214_v27, %v1468_v24 }
 0x427   :  { %v6897_v32 = vadd.f32 %v1475_v21, %v1469_v28 }
 0x428   :  { %v6899_v37 = vadd.f32 %v1476_v31, %v1470_v30 }
 0x429   :  { %v1481_v39 = vrot.slane %v6897_v32, 3  ;;  %v2601_v41 = vrot.slane %v6897_v32, 5  ;;  %v1749_v31 = vrot.slane %v6897_v32, 7  ;;  %v6975_v32 = vld [vmem:[%s7697_s2 + $0x18] sm:$0xff] }
 0x42a   :  { %v1482_v58 = vrot.slane %v6899_v37, 2  ;;  %v2602_v42 = vrot.slane %v6899_v37, 4 }
 0x42c   :  { %v1483_v60 = vsel %vm653_vm3, %v1482_v58, %v1481_v39  ;;  %v2604_v43 = vsel %vm2603_vm8, %v2602_v42, %v2601_v41  ;;  %v1750_v58 = vrot.slane %v6899_v37, 7  ;;  %v7010_v37 = vld [vmem:[%s7697_s2] sm:$0xff] }
 0x42d   :  { %5662 = vmatmul.mubr.msk.f32.vlgmr.msra.gmra.mxu1 %vm356_vm4, %v1483_v60  ;;  %5673 = vmatmul.mubr.msk.f32.vlgmr.msra.gmra.mxu0 %vm356_vm4, %v1483_v60  ;;  %v6911_v44 = vsel %vm2623_vm9, %v6853_v18, %v2604_v43 }
 0x42e   :  { %5676 = vmatpush3.msra.mxu1 %v6640_v14  ;;  %5683 = vmatprep.mubr.msk.f32.mxu1 %vm6461_vm2, %v6460_v5 }
 0x42f   :  { %5677 = vmatprep.subr.mxu1 %v6460_v5  ;;  %5687 = vmatpush3.msra.mxu0 %v6566_v6 }
 0x430   :  { %5678 = vmatpush3.msra.mxu1 %v6648_v15  ;;  %5688 = vmatprep.subr.mxu0 %v6460_v5 }
 0x431   :  { %5679 = vmatprep.subr.mxu1 %v6460_v5  ;;  %5689 = vmatpush3.msra.mxu0 %v6574_v7 }
 0x432   :  { %5680 = vmatpush3.msra.mxu1 %v6657_v16  ;;  %5690 = vmatprep.subr.mxu0 %v6460_v5 }
 0x433   :  { %5681 = vmatprep.subr.mxu1 %v6460_v5  ;;  %5691 = vmatpush3.msra.mxu0 %v6584_v8 }
 0x434   :  { %5682 = vmatpush3.msra.mxu1 %v6664_v17  ;;  %5692 = vmatprep.subr.mxu0 %v6460_v5 }
 0x435   :  { %5684 = vmatmul.mubr.msk.f32.vlgmr.msra.gmra.mxu1 %vm356_vm4, %v1483_v60  ;;  %5697 = vmatprep.subr.mxu1 %v6460_v5 }
 0x436   :  { %5698 = vmatpush3.msra.mxu1 %v6589_v9  ;;  %5693 = vmatpush3.msra.mxu0 %v6598_v10 }
 0x437   :  { %5699 = vmatprep.subr.mxu1 %v6460_v5  ;;  %5694 = vmatprep.mubr.msk.f32.mxu0 %vm6461_vm2, %v6460_v5 }
 0x438   :  { %5700 = vmatpush3.msra.mxu1 %v6603_v11  ;;  %5705 = vmatprep.mubr.msk.f32.mxu1 %vm6461_vm2, %v6460_v5 }
 0x439   :  { %5701 = vmatprep.subr.mxu1 %v6460_v5  ;;  %5708 = vmatprep.subr.mxu0 %v6460_v5 }
 0x43a   :  { %5702 = vmatpush3.msra.mxu1 %v6612_v12 }
 0x43b   :  { %5703 = vmatprep.subr.mxu1 %v6460_v5 }
 0x43c   :  { %5704 = vmatpush3.msra.mxu1 %v6626_v13 }
 0x43d   :  { %5719 = vmatprep.subr.mxu1 %v6460_v5 }
 0x4ed   :  { %v1552_v6 = vpop.f32.mrf.mxu1  ;;  %v1622_v7 = vpop.f32.mrf.mxu0 }
 0x4ee   :  { %v1553_v8 = vadd.f32 %v6684_v22, %v1552_v6  ;;  %v1623_v45 = vadd.f32 %v6702_v36, %v1622_v7 }
 0x4ef   :  { %v5663_v9 = vpop.f32.mrf.mxu1  ;;  %v5674_v10 = vpop.f32.mrf.mxu0 }
 0x4f0   :  { %v1697_v11 = vrot.slane %v1553_v8, 4  ;;  %v1698_v18 = vrot.slane %v1553_v8, 5  ;;  %v1716_v20 = vrot.slane %v1623_v45, 4  ;;  %v1717_v13 = vrot.slane %v1623_v45, 5  ;;  %v7029_v45 = vld [vmem:[%s7697_s2 + $0x28] sm:$0xff] }
 0x4f2   :  { %v1701_v48 = vadd.f32 %v1697_v11, %v6689_v26  ;;  %v1702_v12 = vadd.f32 %v1698_v18, %v6692_v29  ;;  %v1720_v51 = vadd.f32 %v1716_v20, %v6704_v38  ;;  %v1721_v52 = vadd.f32 %v1717_v13, %v6706_v40 }
 0x4f4   :  { %v5136_v49 = vmul.f32 -1.442695, %v1701_v48  ;;  %v5137_v33 = vmul.f32 -1.442695, %v1702_v12  ;;  %v5138_v53 = vmul.f32 -1.442695, %v1720_v51 }
 0x4f5   :  { %v1692_v34 = vpop.f32.mrf.mxu1  ;;  %v5139_v55 = vmul.f32 -1.442695, %v1721_v52  ;;  %v7036_v48 = vld [vmem:[%s7697_s2 + $0x20] sm:$0xff] }
 0x4f6   :  { %6215 = vpow2.f32 %v5136_v49  ;;  %v1693_v0 = vadd.f32 %v6714_v54, %v1692_v34 }
 0x4f7   :  { %6217 = vpow2.f32 %v5137_v33  ;;  %v5685_v50 = vpop.f32.mrf.mxu1 }
 0x4f8   :  { %6219 = vpow2.f32 %v5138_v53  ;;  %v1735_v4 = vrot.slane %v1693_v0, 4  ;;  %v1736_v35 = vrot.slane %v1693_v0, 5 }
 0x4f9   :  { %6221 = vpow2.f32 %v5139_v55 }
 0x503   :  { %v6216_v56 = vpop.eup %6215 }
 0x504   :  { %v6218_v57 = vpop.eup %6217  ;;  %v1709_v59 = vadd.f32 1.0, %v6216_v56 }
 0x505   :  { %v1710_v46 = vadd.f32 1.0, %v6218_v57  ;;  %v6220_v61 = vpop.eup %6219 }
 0x506   :  { %6223 = vrcp.f32 %v1709_v59  ;;  %v6222_v62 = vpop.eup %6221  ;;  %v1728_v1 = vadd.f32 1.0, %v6220_v61 }
 0x507   :  { %6225 = vrcp.f32 %v1710_v46  ;;  %v1729_v3 = vadd.f32 1.0, %v6222_v62 }
 0x508   :  { %6227 = vrcp.f32 %v1728_v1 }
 0x509   :  { %6229 = vrcp.f32 %v1729_v3 }
 0x513   :  { %v6224_v47 = vpop.eup %6223 }
 0x514   :  { %v6226_v19 = vpop.eup %6225  ;;  %v1739_v23 = vmul.f32 %v6224_v47, %v1735_v4 }
 0x515   :  { %v1740_v24 = vmul.f32 %v6226_v19, %v1736_v35  ;;  %v6228_v28 = vpop.eup %6227 }
 0x516   :  { %v1741_v25 = vadd.f32 %v1739_v23, %v6720_v63  ;;  %v6230_v21 = vpop.eup %6229  ;;  %v1745_v30 = vsub.f32 1.0, %v6228_v28  ;;  %v1753_v43 = vmul.f32 %v6228_v28, %v1749_v31 }
 0x517   :  { %v1742_v27 = vadd.f32 %v1740_v24, %v6722_v2  ;;  %v1746_v41 = vsub.f32 1.0, %v6230_v21  ;;  %v1754_v7 = vmul.f32 %v6230_v21, %v1750_v58 }
 0x518   :  { %6231 = vtanh.f32 %v1741_v25 }
 0x519   :  { %6233 = vtanh.f32 %v1742_v27 }
 0x525   :  { %v6232_v39 = vpop.eup %6231 }
 0x526   :  { %v6234_v42 = vpop.eup %6233  ;;  %v1747_v60 = vmul.f32 %v6232_v39, %v1745_v30 }
 0x527   :  { %v1748_v6 = vmul.f32 %v6234_v42, %v1746_v41 }
 0x528   :  { %v6955_v8 = vadd.f32 %v1753_v43, %v1747_v60 }
 0x529   :  { %v6957_v9 = vadd.f32 %v1754_v7, %v1748_v6 }
 0x52a   :  { %v1759_v10 = vrot.slane %v6955_v8, 4 }
 0x52b   :  { %v1760_v11 = vrot.slane %v6957_v9, 3  ;;  %v2028_v7 = vrot.slane %v6957_v9, 7 }
 0x52d   :  { %v6962_v18 = vsel %vm653_vm3, %v1760_v11, %v1759_v10 }
 0x52e   :  { %5695 = vmatmul.mubr.msk.f32.vlgmr.msra.gmra.mxu0 %vm356_vm4, %v6962_v18  ;;  %5706 = vmatmul.mubr.msk.f32.vlgmr.msra.gmra.mxu1 %vm356_vm4, %v6962_v18 }
 0x52f   :  { %5709 = vmatpush3.msra.mxu0 %v6640_v14  ;;  %5716 = vmatprep.mubr.msk.f32.mxu0 %vm6461_vm2, %v6460_v5  ;;  %v6984_v14 = vld [vmem:[%s7697_s2 + $0x10] sm:$0xff] }
 0x530   :  { %5710 = vmatprep.subr.mxu0 %v6460_v5  ;;  %5720 = vmatpush3.msra.mxu1 %v6975_v32 }
 0x531   :  { %5711 = vmatpush3.msra.mxu0 %v6648_v15  ;;  %5721 = vmatprep.subr.mxu1 %v6460_v5  ;;  %v6993_v15 = vld [vmem:[%s7697_s2 + $0x8] sm:$0xff] }
 0x532   :  { %5712 = vmatprep.subr.mxu0 %v6460_v5  ;;  %5722 = vmatpush3.msra.mxu1 %v6984_v14 }
 0x533   :  { %5713 = vmatpush3.msra.mxu0 %v6657_v16  ;;  %5723 = vmatprep.subr.mxu1 %v6460_v5  ;;  %v7004_v16 = vld [vmem:[%s7697_s2 + $0x38] sm:$0xff] }
 0x534   :  { %5714 = vmatprep.subr.mxu0 %v6460_v5  ;;  %5724 = vmatpush3.msra.mxu1 %v6993_v15 }
 0x535   :  { %5715 = vmatpush3.msra.mxu0 %v6664_v17  ;;  %5725 = vmatprep.subr.mxu1 %v6460_v5  ;;  %v7019_v17 = vld [vmem:[%s7697_s2 + $0x30] sm:$0xff] }
 0x536   :  { %5717 = vmatmul.mubr.msk.f32.vlgmr.msra.gmra.mxu0 %vm356_vm4, %v6962_v18  ;;  %5730 = vmatprep.subr.mxu0 %v6460_v5 }
 0x537   :  { %5731 = vmatpush3.msra.mxu0 %v7004_v16  ;;  %5726 = vmatpush3.msra.mxu1 %v7010_v37 }
 0x538   :  { %5732 = vmatprep.subr.mxu0 %v6460_v5  ;;  %5727 = vmatprep.mubr.msk.f32.mxu1 %vm6461_vm2, %v6460_v5 }
 0x539   :  { %5733 = vmatpush3.msra.mxu0 %v7019_v17  ;;  %5738 = vmatprep.mubr.msk.f32.mxu0 %vm6461_vm2, %v6460_v5 }
 0x53a   :  { %5734 = vmatprep.subr.mxu0 %v6460_v5  ;;  %5741 = vmatprep.subr.mxu1 %v6460_v5 }
 0x53b   :  { %5735 = vmatpush3.msra.mxu0 %v7029_v45 }
 0x53c   :  { %5736 = vmatprep.subr.mxu0 %v6460_v5 }
 0x53d   :  { %5737 = vmatpush3.msra.mxu0 %v7036_v48 }
 0x53e   :  { %5752 = vmatprep.subr.mxu0 %v6460_v5 }
 0x5ee   :  { %v1830_v12 = vpop.f32.mrf.mxu0  ;;  %v1900_v49 = vpop.f32.mrf.mxu1 }
 0x5ef   :  { %v1831_v33 = vadd.f32 %v6684_v22, %v1830_v12  ;;  %v1901_v51 = vadd.f32 %v6702_v36, %v1900_v49 }
 0x5f0   :  { %v5696_v20 = vpop.f32.mrf.mxu0  ;;  %v5707_v13 = vpop.f32.mrf.mxu1 }
 0x5f1   :  { %v1975_v34 = vrot.slane %v1831_v33, 3  ;;  %v1976_v50 = vrot.slane %v1831_v33, 4  ;;  %v1994_v57 = vrot.slane %v1901_v51, 3  ;;  %v1995_v59 = vrot.slane %v1901_v51, 4 }
 0x5f3   :  { %v1979_v52 = vadd.f32 %v1975_v34, %v6689_v26  ;;  %v1980_v53 = vadd.f32 %v1976_v50, %v6692_v29  ;;  %v1998_v22 = vadd.f32 %v1994_v57, %v6704_v38  ;;  %v1999_v62 = vadd.f32 %v1995_v59, %v6706_v40  ;;  %v7087_v57 = vld [vmem:[%s7697_s2 + $0x48] sm:$0xff] }
 0x5f5   :  { %v5143_v55 = vmul.f32 -1.442695, %v1979_v52  ;;  %v5144_v56 = vmul.f32 -1.442695, %v1980_v53  ;;  %v5145_v0 = vmul.f32 -1.442695, %v1998_v22 }
 0x5f6   :  { %v1970_v46 = vpop.f32.mrf.mxu0  ;;  %v5146_v1 = vmul.f32 -1.442695, %v1999_v62 }
 0x5f7   :  { %6235 = vpow2.f32 %v5143_v55  ;;  %v1971_v23 = vadd.f32 %v6714_v54, %v1970_v46  ;;  %v2027_v54 = vrot.slane %v6955_v8, 7  ;;  %v7068_v55 = vld [vmem:[%s7697_s2 + $0x58] sm:$0xff] }
 0x5f8   :  { %6237 = vpow2.f32 %v5144_v56  ;;  %v5718_v61 = vpop.f32.mrf.mxu0  ;;  %v7078_v56 = vld [vmem:[%s7697_s2 + $0x50] sm:$0xff] }
 0x5f9   :  { %6239 = vpow2.f32 %v5145_v0  ;;  %v2013_v27 = vrot.slane %v1971_v23, 3  ;;  %v2014_v21 = vrot.slane %v1971_v23, 4 }
 0x5fa   :  { %6241 = vpow2.f32 %v5146_v1 }
 0x604   :  { %v6236_v36 = vpop.eup %6235 }
 0x605   :  { %v6238_v3 = vpop.eup %6237  ;;  %v1987_v4 = vadd.f32 1.0, %v6236_v36 }
 0x606   :  { %v1988_v47 = vadd.f32 1.0, %v6238_v3  ;;  %v6240_v35 = vpop.eup %6239 }
 0x607   :  { %6243 = vrcp.f32 %v1987_v4  ;;  %v6242_v19 = vpop.eup %6241  ;;  %v2006_v24 = vadd.f32 1.0, %v6240_v35 }
 0x608   :  { %6245 = vrcp.f32 %v1988_v47  ;;  %v2007_v25 = vadd.f32 1.0, %v6242_v19 }
 0x609   :  { %6247 = vrcp.f32 %v2006_v24 }
 0x60a   :  { %6249 = vrcp.f32 %v2007_v25 }
 0x614   :  { %v6244_v28 = vpop.eup %6243 }
 0x615   :  { %v6246_v30 = vpop.eup %6245  ;;  %v2017_v31 = vmul.f32 %v6244_v28, %v2013_v27 }
 0x616   :  { %v2018_v39 = vmul.f32 %v6246_v30, %v2014_v21  ;;  %v6248_v42 = vpop.eup %6247 }
 0x617   :  { %v2019_v41 = vadd.f32 %v2017_v31, %v6720_v63  ;;  %v6250_v60 = vpop.eup %6249  ;;  %v2023_v43 = vsub.f32 1.0, %v6248_v42  ;;  %v2031_v49 = vmul.f32 %v6248_v42, %v2027_v54 }
 0x618   :  { %v2020_v58 = vadd.f32 %v2018_v39, %v6722_v2  ;;  %v2024_v10 = vsub.f32 1.0, %v6250_v60  ;;  %v2032_v20 = vmul.f32 %v6250_v60, %v2028_v7  ;;  %v7134_v39 = vld [vmem:[%s7699_s4 + $0x2] ss:$0 sm:$0xff] }
 0x619   :  { %6251 = vtanh.f32 %v2019_v41 }
 0x61a   :  { %6253 = vtanh.f32 %v2020_v58 }
 0x626   :  { %v6252_v6 = vpop.eup %6251 }
 0x627   :  { %v6254_v11 = vpop.eup %6253  ;;  %v2025_v12 = vmul.f32 %v6252_v6, %v2023_v43 }
 0x628   :  { %v2026_v33 = vmul.f32 %v6254_v11, %v2024_v10 }
 0x629   :  { %v7051_v13 = vadd.f32 %v2031_v49, %v2025_v12 }
 0x62a   :  { %v7053_v34 = vadd.f32 %v2032_v20, %v2026_v33 }
 0x62b   :  { %v2037_v50 = vrot.slane %v7051_v13, 5  ;;  %v2607_v51 = vrot.slane %v7051_v13, 3 }
 0x62c   :  { %v2038_v8 = vrot.slane %v7053_v34, 4  ;;  %v2608_v52 = vrot.slane %v7053_v34, 2 }
 0x62e   :  { %v2039_v9 = vsel %vm653_vm3, %v2038_v8, %v2037_v50  ;;  %v7061_v53 = vsel %vm2593_vm5, %v2608_v52, %v2607_v51  ;;  %v2305_v50 = vrot.slane %v7051_v13, 7  ;;  %v2306_v52 = vrot.slane %v7053_v34, 7 }
 0x62f   :  { %5728 = vmatmul.mubr.msk.f32.vlgmr.msra.gmra.mxu1 %vm356_vm4, %v2039_v9  ;;  %5739 = vmatmul.mubr.msk.f32.vlgmr.msra.gmra.mxu0 %vm356_vm4, %v2039_v9 }
 0x630   :  { %5742 = vmatpush3.msra.mxu1 %v7068_v55  ;;  %5749 = vmatprep.mubr.msk.f32.mxu1 %vm6461_vm2, %v6460_v5 }
 0x631   :  { %5743 = vmatprep.subr.mxu1 %v6460_v5  ;;  %5753 = vmatpush3.msra.mxu0 %v6975_v32  ;;  %v7096_v32 = vld [vmem:[%s7697_s2 + $0x40] sm:$0xff] }
 0x632   :  { %5744 = vmatpush3.msra.mxu1 %v7078_v56  ;;  %5754 = vmatprep.subr.mxu0 %v6460_v5 }
 0x633   :  { %5745 = vmatprep.subr.mxu1 %v6460_v5  ;;  %5755 = vmatpush3.msra.mxu0 %v6984_v14 }
 0x634   :  { %5746 = vmatpush3.msra.mxu1 %v7087_v57  ;;  %5756 = vmatprep.subr.mxu0 %v6460_v5 }
 0x635   :  { %5747 = vmatprep.subr.mxu1 %v6460_v5  ;;  %5757 = vmatpush3.msra.mxu0 %v6993_v15 }
 0x636   :  { %5748 = vmatpush3.msra.mxu1 %v7096_v32  ;;  %5758 = vmatprep.subr.mxu0 %v6460_v5 }
 0x637   :  { %5750 = vmatmul.mubr.msk.f32.vlgmr.msra.gmra.mxu1 %vm356_vm4, %v2039_v9  ;;  %5763 = vmatprep.subr.mxu1 %v6460_v5 }
 0x638   :  { %5764 = vmatpush3.msra.mxu1 %v7004_v16  ;;  %5759 = vmatpush3.msra.mxu0 %v7010_v37  ;;  %v7118_v16 = vld [vmem:[%s7699_s4] ss:$0 sm:$0xff] }
 0x639   :  { %5765 = vmatprep.subr.mxu1 %v6460_v5  ;;  %5760 = vmatprep.mubr.msk.f32.mxu0 %vm6461_vm2, %v6460_v5 }
 0x63a   :  { %5766 = vmatpush3.msra.mxu1 %v7019_v17  ;;  %5771 = vmatprep.mubr.msk.f32.mxu1 %vm6461_vm2, %v6460_v5 }
 0x63b   :  { %5767 = vmatprep.subr.mxu1 %v6460_v5  ;;  %5774 = vmatprep.subr.mxu0 %v6460_v5 }
 0x63c   :  { %5768 = vmatpush3.msra.mxu1 %v7029_v45  ;;  %v7124_v45 = vld [vmem:[%s7699_s4 + $0x1] ss:$0 sm:$0xff] }
 0x63d   :  { %5769 = vmatprep.subr.mxu1 %v6460_v5 }
 0x63e   :  { %5770 = vmatpush3.msra.mxu1 %v7036_v48 }
 0x6ef   :  { %v2108_v14 = vpop.f32.mrf.mxu1  ;;  %v2178_v15 = vpop.f32.mrf.mxu0 }
 0x6f0   :  { %v2109_v37 = vadd.f32 %v7118_v16, %v2108_v14  ;;  %v2179_v48 = vadd.f32 %v7124_v45, %v2178_v15 }
 0x6f1   :  { %v5729_v17 = vpop.f32.mrf.mxu1  ;;  %v5740_v59 = vpop.f32.mrf.mxu0 }
 0x6f2   :  { %v2253_v46 = vrot.slane %v2109_v37, 2  ;;  %v2254_v61 = vrot.slane %v2109_v37, 3  ;;  %v2272_v36 = vrot.slane %v2179_v48, 2  ;;  %v2273_v3 = vrot.slane %v2179_v48, 3 }
 0x6f4   :  { %v2257_v22 = vadd.f32 %v2253_v46, %v6689_v26  ;;  %v2258_v62 = vadd.f32 %v2254_v61, %v6692_v29  ;;  %v2276_v35 = vadd.f32 %v2272_v36, %v6704_v38  ;;  %v2277_v19 = vadd.f32 %v2273_v3, %v6706_v40  ;;  %v2723_v36 = vld [vmem:[#allocation2 + $0x30] sm:$0xff]  ;;  %v2722_v3 = vld [vmem:[#allocation2 + $0x28] sm:$0xff] }
 0x6f6   :  { %v5150_v0 = vmul.f32 -1.442695, %v2257_v22  ;;  %v5151_v1 = vmul.f32 -1.442695, %v2258_v62  ;;  %v5152_v23 = vmul.f32 -1.442695, %v2276_v35 }
 0x6f7   :  { %v2248_v4 = vpop.f32.mrf.mxu1  ;;  %v5153_v24 = vmul.f32 -1.442695, %v2277_v19 }
 0x6f8   :  { %6255 = vpow2.f32 %v5150_v0  ;;  %v2249_v41 = vadd.f32 %v7134_v39, %v2248_v4  ;;  %v2625_v0 = vsel %vm2620_vm6, %v6962_v18, %v7061_v53  ;;  %v2631_v18 = vld [vmem:[#allocation2 + $0x18] sm:$0xff] }
 0x6f9   :  { %6257 = vpow2.f32 %v5151_v1  ;;  %v5751_v47 = vpop.f32.mrf.mxu1  ;;  %v2724_v53 = vld [vmem:[#allocation2 + $0x38] sm:$0xff]  ;;  %5785 = vmatprep.subr.mxu1 %v2631_v18 }
 0x6fa   :  { %6259 = vpow2.f32 %v5152_v23  ;;  %v2291_v60 = vrot.slane %v2249_v41, 2  ;;  %v2292_v43 = vrot.slane %v2249_v41, 3  ;;  %v7173_v4 = vld [vmem:[#allocation2 + $0x58] sm:$0xff] }
 0x6fb   :  { %6261 = vpow2.f32 %v5153_v24 }
 0x705   :  { %v6256_v25 = vpop.eup %6255 }
 0x706   :  { %v6258_v27 = vpop.eup %6257  ;;  %v2265_v28 = vadd.f32 1.0, %v6256_v25 }
 0x707   :  { %v2266_v21 = vadd.f32 1.0, %v6258_v27  ;;  %v6260_v30 = vpop.eup %6259 }
 0x708   :  { %6263 = vrcp.f32 %v2265_v28  ;;  %v6262_v31 = vpop.eup %6261  ;;  %v2284_v58 = vadd.f32 1.0, %v6260_v30 }
 0x709   :  { %6265 = vrcp.f32 %v2266_v21  ;;  %v2285_v42 = vadd.f32 1.0, %v6262_v31 }
 0x70a   :  { %6267 = vrcp.f32 %v2284_v58 }
 0x70b   :  { %6269 = vrcp.f32 %v2285_v42 }
 0x715   :  { %v6264_v54 = vpop.eup %6263 }
 0x716   :  { %v6266_v6 = vpop.eup %6265  ;;  %v2295_v7 = vmul.f32 %v6264_v54, %v2291_v60 }
 0x717   :  { %v2296_v10 = vmul.f32 %v6266_v6, %v2292_v43  ;;  %v6268_v49 = vpop.eup %6267 }
 0x718   :  { %v2297_v11 = vadd.f32 %v2295_v7, %v6720_v63  ;;  %v6270_v33 = vpop.eup %6269  ;;  %v2301_v20 = vsub.f32 1.0, %v6268_v49  ;;  %v2309_v15 = vmul.f32 %v6268_v49, %v2305_v50 }
 0x719   :  { %v2298_v12 = vadd.f32 %v2296_v10, %v6722_v2  ;;  %v2302_v8 = vsub.f32 1.0, %v6270_v33  ;;  %v2310_v17 = vmul.f32 %v6270_v33, %v2306_v52 }
 0x71a   :  { %6271 = vtanh.f32 %v2297_v11 }
 0x71b   :  { %6273 = vtanh.f32 %v2298_v12 }
 0x727   :  { %v6272_v51 = vpop.eup %6271 }
 0x728   :  { %v6274_v9 = vpop.eup %6273  ;;  %v2303_v14 = vmul.f32 %v6272_v51, %v2301_v20 }
 0x729   :  { %v2304_v37 = vmul.f32 %v6274_v9, %v2302_v8 }
 0x72a   :  { %v7141_v59 = vadd.f32 %v2309_v15, %v2303_v14 }
 0x72b   :  { %v7143_v46 = vadd.f32 %v2310_v17, %v2304_v37 }
 0x72c   :  { %v2315_v61 = vrot.slane %v7141_v59, 6  ;;  %v2611_v48 = vrot.slane %v7141_v59, 2 }
 0x72d   :  { %v2316_v22 = vrot.slane %v7143_v46, 5  ;;  %v2612_v13 = vrot.slane %v7143_v46, 1 }
 0x72f   :  { %v2317_v62 = vsel %vm653_vm3, %v2316_v22, %v2315_v61  ;;  %v2613_v34 = vsel %vm2598_vm7, %v2612_v13, %v2611_v48  ;;  %v2584_v22 = vrot.slane %v7143_v46, 7 }
 0x730   :  { %5761 = vmatmul.mubr.msk.f32.vlgmr.msra.gmra.mxu0 %vm356_vm4, %v2317_v62  ;;  %5772 = vmatmul.mubr.msk.f32.vlgmr.msra.gmra.mxu1 %vm356_vm4, %v2317_v62  ;;  %v7157_v1 = vsel %vm90_vm0, %v2625_v0, %v2613_v34 }
 0x731   :  { %5775 = vmatpush3.msra.mxu0 %v7068_v55  ;;  %5793 = vmatprep.mubr.msk.f32.mxu1 %vm356_vm4, %v6911_v44  ;;  %v2630_v55 = vld [vmem:[#allocation2 + $0x10] sm:$0xff] }
 0x732   :  { %5776 = vmatprep.subr.mxu0 %v6460_v5  ;;  %5782 = vmatprep.mubr.msk.f32.mxu0 %vm6461_vm2, %v6460_v5 }
 0x733   :  { %5777 = vmatpush3.msra.mxu0 %v7078_v56  ;;  %5786 = vmatpush3.msra.mxu1 %v2631_v18  ;;  %v2629_v56 = vld [vmem:[#allocation2 + $0x8] sm:$0xff] }
 0x734   :  { %5778 = vmatprep.subr.mxu0 %v6460_v5  ;;  %5787 = vmatprep.subr.mxu1 %v2630_v55 }
 0x735   :  { %5779 = vmatpush3.msra.mxu0 %v7087_v57  ;;  %5788 = vmatpush3.msra.mxu1 %v2630_v55  ;;  %v2628_v57 = vld [vmem:[#allocation2] sm:$0xff] }
 0x736   :  { %5780 = vmatprep.subr.mxu0 %v6460_v5  ;;  %5789 = vmatprep.subr.mxu1 %v2629_v56 }
 0x737   :  { %5781 = vmatpush3.msra.mxu0 %v7096_v32  ;;  %v2721_v32 = vld [vmem:[#allocation2 + $0x20] sm:$0xff]  ;;  %5790 = vmatpush3.msra.mxu1 %v2629_v56 }
 0x738   :  { %5783 = vmatmul.mubr.msk.f32.vlgmr.msra.gmra.mxu0 %vm356_vm4, %v2317_v62  ;;  %5796 = vmatprep.subr.mxu0 %v2724_v53 }
 0x739   :  { %5804 = vmatprep.mubr.msk.f32.mxu0 %vm356_vm4, %v6911_v44  ;;  %5797 = vmatpush3.msra.mxu0 %v2724_v53 }
 0x73a   :  { %5798 = vmatprep.subr.mxu0 %v2723_v36  ;;  %5791 = vmatprep.subr.mxu1 %v2628_v57 }
 0x73b   :  { %5799 = vmatpush3.msra.mxu0 %v2723_v36  ;;  %5792 = vmatpush3.msra.mxu1 %v2628_v57  ;;  %v2811_v57 = vld [vmem:[#allocation2 + $0x50] sm:$0xff] }
 0x73c   :  { %5800 = vmatprep.subr.mxu0 %v2722_v3  ;;  %5807 = vmatprep.subr.mxu1 %v7173_v4 }
 0x73d   :  { %5801 = vmatpush3.msra.mxu0 %v2722_v3  ;;  %v7189_v3 = vld [vmem:[#allocation5 + $0x18] sm:$0xff] }
 0x73e   :  { %5802 = vmatprep.subr.mxu0 %v2721_v32 }
 0x73f   :  { %5803 = vmatpush3.msra.mxu0 %v2721_v32  ;;  %v7200_v32 = vld [vmem:[#allocation5 + $0x10] sm:$0xff] }
 0x740   :  { %5818 = vmatprep.subr.mxu0 %v6460_v5 }
 0x7f0   :  { %v2386_v47 = vpop.f32.mrf.mxu0  ;;  %v2456_v35 = vpop.f32.mrf.mxu1 }
 0x7f1   :  { %v2387_v19 = vadd.f32 %v7118_v16, %v2386_v47  ;;  %v2457_v28 = vadd.f32 %v7124_v45, %v2456_v35  ;;  %v2810_v47 = vld [vmem:[#allocation2 + $0x48] sm:$0xff]  ;;  %v2809_v35 = vld [vmem:[#allocation2 + $0x40] sm:$0xff] }
 0x7f2   :  { %v5762_v23 = vpop.f32.mrf.mxu0  ;;  %v5773_v24 = vpop.f32.mrf.mxu1 }
 0x7f3   :  { %v2531_v25 = vrot.slane %v2387_v19, 1  ;;  %v2532_v27 = vrot.slane %v2387_v19, 2  ;;  %v2550_v58 = vrot.slane %v2457_v28, 1  ;;  %v2551_v42 = vrot.slane %v2457_v28, 2  ;;  %v7220_v19 = vld [vmem:[#allocation5 + $0x58] sm:$0xff]  ;;  %v7223_v23 = vld [vmem:[#allocation5 + $0x30] sm:$0xff] }
 0x7f4   :  { %v7229_v24 = vld [vmem:[#allocation5 + $0x50] sm:$0xff]  ;;  %v7240_v28 = vld [vmem:[#allocation5 + $0x20] sm:$0xff] }
 0x7f5   :  { %v2535_v21 = vadd.f32 %v2531_v25, %v6689_v26  ;;  %v2536_v30 = vadd.f32 %v2532_v27, %v6692_v29  ;;  %v2554_v16 = vadd.f32 %v2550_v58, %v6704_v38  ;;  %v2555_v43 = vadd.f32 %v2551_v42, %v6706_v40  ;;  %v7232_v25 = vld [vmem:[#allocation5 + $0x28] sm:$0xff] }
 0x7f6   :  { %v7237_v27 = vld [vmem:[#allocation5 + $0x48] sm:$0xff] }
 0x7f7   :  { %v5157_v31 = vmul.f32 -1.442695, %v2535_v21  ;;  %v5158_v41 = vmul.f32 -1.442695, %v2536_v30  ;;  %v5159_v6 = vmul.f32 -1.442695, %v2554_v16 }
 0x7f8   :  { %v2526_v60 = vpop.f32.mrf.mxu0  ;;  %v5160_v7 = vmul.f32 -1.442695, %v2555_v43  ;;  %v7245_v21 = vld [vmem:[#allocation5 + $0x40] sm:$0xff] }
 0x7f9   :  { %6275 = vpow2.f32 %v5157_v31  ;;  %v2527_v49 = vadd.f32 %v7134_v39, %v2526_v60  ;;  %v2583_v39 = vrot.slane %v7141_v59, 7  ;;  %v5161_v30 = vld [vmem:[%s7702_s7] ss:$0 sm:$0xff]  ;;  %v5165_v31 = vld [vmem:[%s7702_s7 + $0x1] ss:$0 sm:$0xff] }
 0x7fa   :  { %6277 = vpow2.f32 %v5158_v41  ;;  %v5784_v54 = vpop.f32.mrf.mxu0  ;;  %v5169_v43 = vld [vmem:[%s7702_s7 + $0x2] ss:$0 sm:$0xff] }
 0x7fb   :  { %6279 = vpow2.f32 %v5159_v6  ;;  %v2569_v50 = vrot.slane %v2527_v49, 1  ;;  %v2570_v51 = vrot.slane %v2527_v49, 2  ;;  %v7294_v6 = vld [vmem:[%s7703_s8] ss:$0 sm:$0xff] }
 0x7fc   :  { %6281 = vpow2.f32 %v5160_v7 }
 0x806   :  { %v6276_v45 = vpop.eup %6275 }
 0x807   :  { %v6278_v26 = vpop.eup %6277  ;;  %v2543_v10 = vadd.f32 1.0, %v6276_v45 }
 0x808   :  { %v2544_v29 = vadd.f32 1.0, %v6278_v26  ;;  %v6280_v11 = vpop.eup %6279 }
 0x809   :  { %6283 = vrcp.f32 %v2543_v10  ;;  %v6282_v12 = vpop.eup %6281  ;;  %v2562_v33 = vadd.f32 1.0, %v6280_v11 }
 0x80a   :  { %6285 = vrcp.f32 %v2544_v29  ;;  %v2563_v20 = vadd.f32 1.0, %v6282_v12 }
 0x80b   :  { %6287 = vrcp.f32 %v2562_v33 }
 0x80c   :  { %6289 = vrcp.f32 %v2563_v20  ;;  %v7305_v20 = vld [vmem:[%s7703_s8 + $0x1] ss:$0 sm:$0xff] }
 0x816   :  { %v6284_v38 = vpop.eup %6283 }
 0x817   :  { %v6286_v40 = vpop.eup %6285  ;;  %v2573_v8 = vmul.f32 %v6284_v38, %v2569_v50 }
 0x818   :  { %v2574_v52 = vmul.f32 %v6286_v40, %v2570_v51  ;;  %v6288_v15 = vpop.eup %6287 }
 0x819   :  { %v2575_v9 = vadd.f32 %v2573_v8, %v6720_v63  ;;  %v6290_v37 = vpop.eup %6289  ;;  %v2579_v17 = vsub.f32 1.0, %v6288_v15  ;;  %v2587_v34 = vmul.f32 %v6288_v15, %v2583_v39  ;;  %v7314_v39 = vld [vmem:[%s7703_s8 + $0x2] ss:$0 sm:$0xff] }
 0x81a   :  { %v2576_v14 = vadd.f32 %v2574_v52, %v6722_v2  ;;  %v2580_v48 = vsub.f32 1.0, %v6290_v37  ;;  %v2588_v18 = vmul.f32 %v6290_v37, %v2584_v22 }
 0x81b   :  { %6291 = vtanh.f32 %v2575_v9 }
 0x81c   :  { %6293 = vtanh.f32 %v2576_v14 }
 0x828   :  { %v6292_v61 = vpop.eup %6291 }
 0x829   :  { %v6294_v13 = vpop.eup %6293  ;;  %v2581_v62 = vmul.f32 %v6292_v61, %v2579_v17 }
 0x82a   :  { %v2582_v0 = vmul.f32 %v6294_v13, %v2580_v48 }
 0x82b   :  { %v2589_v53 = vadd.f32 %v2587_v34, %v2581_v62 }
 0x82c   :  { %v2590_v63 = vadd.f32 %v2588_v18, %v2582_v0 }
 0x82d   :  { %v2617_v55 = vrot.slane %v2589_v53, 1  ;;  %v4874_v2 = vrot.slane %v2589_v53, 7 }
 0x82e   :  { %v4875_v36 = vrot.slane %v2590_v63, 6 }
 0x82f   :  { %v2618_v56 = vsel %vm2603_vm8, %v2590_v63, %v2617_v55 }
 0x830   :  { %v2627_v59 = vsel %vm2623_vm9, %v7157_v1, %v2618_v56  ;;  %v7194_v46 = vsel %vm653_vm3, %v4875_v36, %v4874_v2  ;;  %v7205_v1 = vld [vmem:[#allocation5 + $0x8] sm:$0xff] }
 0x831   :  { %5794 = vmatmul.mubr.msk.f32.vlgmr.msra.gmra.mxu1 %vm356_vm4, %v2627_v59  ;;  %5805 = vmatmul.mubr.msk.f32.vlgmr.msra.gmra.mxu0 %vm356_vm4, %v2627_v59 }
 0x832   :  { %5808 = vmatpush3.msra.mxu1 %v7173_v4  ;;  %5819 = vmatpush3.msra.mxu0 %v7189_v3  ;;  %v7209_v4 = vld [vmem:[#allocation5] sm:$0xff] }
 0x833   :  { %5809 = vmatprep.subr.mxu1 %v2811_v57  ;;  %5815 = vmatprep.mubr.msk.f32.mxu1 %vm356_vm4, %v6911_v44  ;;  %v7216_v44 = vld [vmem:[#allocation5 + $0x38] sm:$0xff] }
 0x834   :  { %5820 = vmatprep.subr.mxu0 %v6460_v5  ;;  %5810 = vmatpush3.msra.mxu1 %v2811_v57 }
 0x835   :  { %5821 = vmatpush3.msra.mxu0 %v7200_v32  ;;  %5811 = vmatprep.subr.mxu1 %v2810_v47 }
 0x836   :  { %5822 = vmatprep.subr.mxu0 %v6460_v5  ;;  %5812 = vmatpush3.msra.mxu1 %v2810_v47 }
 0x837   :  { %5823 = vmatpush3.msra.mxu0 %v7205_v1  ;;  %5813 = vmatprep.subr.mxu1 %v2809_v35 }
 0x838   :  { %5824 = vmatprep.subr.mxu0 %v6460_v5  ;;  %5814 = vmatpush3.msra.mxu1 %v2809_v35 }
 0x839   :  { %5825 = vmatpush3.msra.mxu0 %v7209_v4  ;;  %5826 = vmatprep.mubr.msk.f32.mxu0 %vm6461_vm2, %v6460_v5 }
 0x83a   :  { %5816 = vmatmul.mubr.msk.f32.vlgmr.msra.gmra.mxu1 %vm356_vm4, %v2627_v59  ;;  %5827 = vmatmul.mubr.f32.vlgmr.msra.gmra.mxu0 %v6460_v5 }
 0x83b   :  { %5829 = vmatprep.subr.mxu1 %v6460_v5  ;;  %5837 = vmatprep.mubr.msk.f32.mxu1 %vm6461_vm2, %v6460_v5 }
 0x83c   :  { %5830 = vmatpush3.msra.mxu1 %v7216_v44  ;;  %5840 = vmatprep.subr.mxu0 %v6460_v5 }
 0x83d   :  { %5831 = vmatprep.subr.mxu1 %v6460_v5  ;;  %5841 = vmatpush3.msra.mxu0 %v7220_v19 }
 0x83e   :  { %5832 = vmatpush3.msra.mxu1 %v7223_v23  ;;  %5842 = vmatprep.subr.mxu0 %v6460_v5 }
 0x83f   :  { %5833 = vmatprep.subr.mxu1 %v6460_v5  ;;  %5843 = vmatpush3.msra.mxu0 %v7229_v24 }
 0x840   :  { %5834 = vmatpush3.msra.mxu1 %v7232_v25  ;;  %5844 = vmatprep.subr.mxu0 %v6460_v5 }
 0x841   :  { %5835 = vmatprep.subr.mxu1 %v6460_v5  ;;  %5845 = vmatpush3.msra.mxu0 %v7237_v27 }
 0x842   :  { %5836 = vmatpush3.msra.mxu1 %v7240_v28  ;;  %5846 = vmatprep.subr.mxu0 %v6460_v5 }
 0x843   :  { %5838 = vmatmul.mubr.f32.vlgmr.msra.gmra.mxu1 %v6460_v5  ;;  %5847 = vmatpush3.msra.mxu0 %v7245_v21 }
 0x844   :  { %5848 = vmatprep.mubr.msk.f32.mxu0 %vm6461_vm2, %v6460_v5  ;;  %5851 = vmatprep.subr.mxu1 %v6460_v5 }
 0x845   :  { %5849 = vmatmul.mubr.f32.vlgmr.msra.gmra.mxu0 %v6460_v5  ;;  %5852 = vmatpush3.msra.mxu1 %v7189_v3 }
 0x846   :  { %5862 = vmatprep.subr.mxu0 %v6460_v5  ;;  %5853 = vmatprep.subr.mxu1 %v6460_v5 }
 0x847   :  { %5863 = vmatpush3.msra.mxu0 %v7216_v44  ;;  %5854 = vmatpush3.msra.mxu1 %v7200_v32 }
 0x848   :  { %5864 = vmatprep.subr.mxu0 %v6460_v5  ;;  %5855 = vmatprep.subr.mxu1 %v6460_v5 }
 0x849   :  { %5865 = vmatpush3.msra.mxu0 %v7223_v23  ;;  %5856 = vmatpush3.msra.mxu1 %v7205_v1 }
 0x84a   :  { %5866 = vmatprep.subr.mxu0 %v6460_v5  ;;  %5857 = vmatprep.subr.mxu1 %v6460_v5 }
 0x84b   :  { %5867 = vmatpush3.msra.mxu0 %v7232_v25  ;;  %5858 = vmatpush3.msra.mxu1 %v7209_v4 }
 0x84c   :  { %5868 = vmatprep.subr.mxu0 %v6460_v5  ;;  %5859 = vmatprep.mubr.msk.f32.mxu1 %vm6461_vm2, %v6460_v5 }
 0x84d   :  { %5869 = vmatpush3.msra.mxu0 %v7240_v28  ;;  %5870 = vmatprep.mubr.msk.f32.mxu0 %vm6461_vm2, %v6460_v5 }
 0x84e   :  { %5873 = vmatprep.subr.mxu1 %v6460_v5  ;;  %5884 = vmatprep.subr.mxu0 %v6460_v5 }
 0x8f1   :  { %v5795_v41 = vpop.f32.mrf.mxu1  ;;  %v5806_v58 = vpop.f32.mrf.mxu0 }
 0x8f2   :  { %v7284_v42 = vadd.f32 %v5795_v41, %v5161_v30  ;;  %v7286_v60 = vadd.f32 %v5806_v58, %v5165_v31 }
 0x8f3   :  { %v2711_v54 = vpop.f32.mrf.mxu1  ;;  %v2799_v16 = vpop.f32.mrf.mxu0 }
 0x8f4   :  { %v7296_v26 = vadd.f32 %v5161_v30, %v2711_v54  ;;  %v7307_v38 = vadd.f32 %v5165_v31, %v2799_v16 }
 0x8fa   :  { %v5817_v7 = vpop.f32.mrf.mxu1  ;;  %v2973_v45 = vpop.f32.mrf.mxu0 }
 0x8fb   :  { %v7298_v10 = vadd.f32 %v5817_v7, %v5169_v43  ;;  %v2974_v29 = vadd.f32 %v7294_v6, %v2973_v45 }
 0x8fc   :  { %v5828_v11 = vpop.f32.mrf.mxu0  ;;  %v2887_v33 = vpop.f32.mrf.mxu1 }
 0x8fd   :  { %v3143_v12 = vadd.f32 %v2974_v29, %v7296_v26  ;;  %v7317_v13 = vadd.f32 %v5169_v43, %v2887_v33 }
 0x8ff   :  { %v5177_v49 = vmul.f32 -1.442695, %v3143_v12 }
 0x901   :  { %6295 = vpow2.f32 %v5177_v49 }
 0x903   :  { %v3056_v50 = vpop.f32.mrf.mxu1 }
 0x904   :  { %v3057_v51 = vadd.f32 %v7305_v20, %v3056_v50 }
 0x905   :  { %v5839_v40 = vpop.f32.mrf.mxu1  ;;  %v3139_v8 = vpop.f32.mrf.mxu0 }
 0x906   :  { %v3150_v52 = vadd.f32 %v3057_v51, %v7307_v38  ;;  %v3140_v48 = vadd.f32 %v7314_v39, %v3139_v8 }
 0x907   :  { %v5850_v9 = vpop.f32.mrf.mxu0 }
 0x908   :  { %v5178_v14 = vmul.f32 -1.442695, %v3150_v52 }
 0x90a   :  { %6297 = vpow2.f32 %v5178_v14 }
 0x90e   :  { %v6296_v15 = vpop.eup %6295 }
 0x90f   :  { %v3147_v37 = vadd.f32 1.0, %v6296_v15 }
 0x911   :  { %6299 = vrcp.f32 %v3147_v37 }
 0x917   :  { %v6298_v17 = vpop.eup %6297 }
 0x918   :  { %v3154_v61 = vadd.f32 1.0, %v6298_v17 }
 0x91a   :  { %6301 = vrcp.f32 %v3154_v61 }
 0x91e   :  { %v6300_v22 = vpop.eup %6299 }
 0x91f   :  { %v3157_v62 = vmul.f32 %v6300_v22, %v3140_v48 }
 0x921   :  { %v3158_v34 = vadd.f32 %v3157_v62, %v7317_v13 }
 0x923   :  { %6303 = vtanh.f32 %v3158_v34 }
 0x927   :  { %v6302_v0 = vpop.eup %6301 }
 0x928   :  { %v3160_v18 = vsub.f32 1.0, %v6302_v0  ;;  %v3162_v55 = vmul.f32 0.0, %v6302_v0 }
 0x930   :  { %v6304_v53 = vpop.eup %6303 }
 0x931   :  { %v3161_v63 = vmul.f32 %v6304_v53, %v3160_v18 }
 0x933   :  { %v7320_v2 = vadd.f32 %v3162_v55, %v3161_v63 }
 0x935   :  { %5860 = vmatmul.mubr.msk.f32.vlgmr.msra.gmra.mxu1 %vm356_vm4, %v7320_v2  ;;  %5871 = vmatmul.mubr.msk.f32.vlgmr.msra.gmra.mxu0 %vm356_vm4, %v7320_v2  ;;  %v3405_v9 = vrot.slane %v7320_v2, 6 }
 0x936   :  { %5874 = vmatpush3.msra.mxu1 %v7220_v19  ;;  %5881 = vmatprep.mubr.msk.f32.mxu1 %vm6461_vm2, %v6460_v5 }
 0x937   :  { %5875 = vmatprep.subr.mxu1 %v6460_v5  ;;  %5885 = vmatpush3.msra.mxu0 %v7189_v3 }
 0x938   :  { %5876 = vmatpush3.msra.mxu1 %v7229_v24  ;;  %5886 = vmatprep.subr.mxu0 %v6460_v5 }
 0x939   :  { %5877 = vmatprep.subr.mxu1 %v6460_v5  ;;  %5887 = vmatpush3.msra.mxu0 %v7200_v32 }
 0x93a   :  { %5878 = vmatpush3.msra.mxu1 %v7237_v27  ;;  %5888 = vmatprep.subr.mxu0 %v6460_v5 }
 0x93b   :  { %5879 = vmatprep.subr.mxu1 %v6460_v5  ;;  %5889 = vmatpush3.msra.mxu0 %v7205_v1 }
 0x93c   :  { %5880 = vmatpush3.msra.mxu1 %v7245_v21  ;;  %5890 = vmatprep.subr.mxu0 %v6460_v5 }
 0x93d   :  { %5882 = vmatmul.mubr.msk.f32.vlgmr.msra.gmra.mxu1 %vm356_vm4, %v7320_v2  ;;  %5895 = vmatprep.subr.mxu1 %v6460_v5 }
 0x93e   :  { %5896 = vmatpush3.msra.mxu1 %v7216_v44  ;;  %5891 = vmatpush3.msra.mxu0 %v7209_v4 }
 0x93f   :  { %5897 = vmatprep.subr.mxu1 %v6460_v5  ;;  %5892 = vmatprep.mubr.msk.f32.mxu0 %vm6461_vm2, %v6460_v5 }
 0x940   :  { %5898 = vmatpush3.msra.mxu1 %v7223_v23  ;;  %5903 = vmatprep.mubr.msk.f32.mxu1 %vm6461_vm2, %v6460_v5 }
 0x941   :  { %5899 = vmatprep.subr.mxu1 %v6460_v5  ;;  %5906 = vmatprep.subr.mxu0 %v6460_v5 }
 0x942   :  { %5900 = vmatpush3.msra.mxu1 %v7232_v25 }
 0x943   :  { %5901 = vmatprep.subr.mxu1 %v6460_v5 }
 0x944   :  { %5902 = vmatpush3.msra.mxu1 %v7240_v28 }
 0x945   :  { %5917 = vmatprep.subr.mxu1 %v6460_v5 }
 0x9f5   :  { %v3233_v36 = vpop.f32.mrf.mxu1  ;;  %v3303_v56 = vpop.f32.mrf.mxu0 }
 0x9f6   :  { %v3234_v59 = vadd.f32 %v7294_v6, %v3233_v36  ;;  %v3304_v30 = vadd.f32 %v7305_v20, %v3303_v56 }
 0x9f7   :  { %v5861_v57 = vpop.f32.mrf.mxu1  ;;  %v5872_v47 = vpop.f32.mrf.mxu0 }
 0x9f8   :  { %v3378_v35 = vrot.slane %v3234_v59, 6  ;;  %v3388_v58 = vrot.slane %v3304_v30, 6 }
 0x9fa   :  { %v3380_v31 = vadd.f32 %v3378_v35, %v7296_v26  ;;  %v3390_v43 = vadd.f32 %v3388_v58, %v7307_v38 }
 0x9fc   :  { %v5182_v41 = vmul.f32 -1.442695, %v3380_v31  ;;  %v5183_v7 = vmul.f32 -1.442695, %v3390_v43 }
 0x9fd   :  { %v3373_v54 = vpop.f32.mrf.mxu1 }
 0x9fe   :  { %6305 = vpow2.f32 %v5182_v41  ;;  %v3374_v12 = vadd.f32 %v7314_v39, %v3373_v54 }
 0x9ff   :  { %v5883_v16 = vpop.f32.mrf.mxu1  ;;  %6307 = vpow2.f32 %v5183_v7 }
 0xa00   :  { %v3398_v33 = vrot.slane %v3374_v12, 6 }
 0xa0b   :  { %v6306_v45 = vpop.eup %6305 }
 0xa0c   :  { %v3384_v29 = vadd.f32 1.0, %v6306_v45  ;;  %v6308_v11 = vpop.eup %6307 }
 0xa0d   :  { %v3394_v49 = vadd.f32 1.0, %v6308_v11 }
 0xa0e   :  { %6309 = vrcp.f32 %v3384_v29 }
 0xa0f   :  { %6311 = vrcp.f32 %v3394_v49 }
 0xa1b   :  { %v6310_v50 = vpop.eup %6309 }
 0xa1c   :  { %v3400_v51 = vmul.f32 %v6310_v50, %v3398_v33  ;;  %v6312_v8 = vpop.eup %6311 }
 0xa1d   :  { %v3403_v52 = vsub.f32 1.0, %v6312_v8  ;;  %v3407_v37 = vmul.f32 %v6312_v8, %v3405_v9 }
 0xa1e   :  { %v3401_v40 = vadd.f32 %v3400_v51, %v7317_v13 }
 0xa20   :  { %6313 = vtanh.f32 %v3401_v40 }
 0xa2d   :  { %v6314_v14 = vpop.eup %6313 }
 0xa2e   :  { %v3404_v15 = vmul.f32 %v6314_v14, %v3403_v52 }
 0xa30   :  { %v7365_v17 = vadd.f32 %v3407_v37, %v3404_v15 }
 0xa32   :  { %v3410_v61 = vrot.slane %v7365_v17, 2  ;;  %v3651_v45 = vrot.slane %v7365_v17, 6 }
 0xa34   :  { %5893 = vmatmul.mubr.msk.f32.vlgmr.msra.gmra.mxu0 %vm356_vm4, %v3410_v61  ;;  %5904 = vmatmul.mubr.msk.f32.vlgmr.msra.gmra.mxu1 %vm356_vm4, %v3410_v61 }
 0xa35   :  { %5907 = vmatpush3.msra.mxu0 %v7220_v19  ;;  %5914 = vmatprep.mubr.msk.f32.mxu0 %vm6461_vm2, %v6460_v5 }
 0xa36   :  { %5908 = vmatprep.subr.mxu0 %v6460_v5  ;;  %5918 = vmatpush3.msra.mxu1 %v7189_v3 }
 0xa37   :  { %5909 = vmatpush3.msra.mxu0 %v7229_v24  ;;  %5919 = vmatprep.subr.mxu1 %v6460_v5 }
 0xa38   :  { %5910 = vmatprep.subr.mxu0 %v6460_v5  ;;  %5920 = vmatpush3.msra.mxu1 %v7200_v32 }
 0xa39   :  { %5911 = vmatpush3.msra.mxu0 %v7237_v27  ;;  %5921 = vmatprep.subr.mxu1 %v6460_v5 }
 0xa3a   :  { %5912 = vmatprep.subr.mxu0 %v6460_v5  ;;  %5922 = vmatpush3.msra.mxu1 %v7205_v1 }
 0xa3b   :  { %5913 = vmatpush3.msra.mxu0 %v7245_v21  ;;  %5923 = vmatprep.subr.mxu1 %v6460_v5 }
 0xa3c   :  { %5915 = vmatmul.mubr.msk.f32.vlgmr.msra.gmra.mxu0 %vm356_vm4, %v3410_v61  ;;  %5928 = vmatprep.subr.mxu0 %v6460_v5 }
 0xa3d   :  { %5929 = vmatpush3.msra.mxu0 %v7216_v44  ;;  %5924 = vmatpush3.msra.mxu1 %v7209_v4 }
 0xa3e   :  { %5930 = vmatprep.subr.mxu0 %v6460_v5  ;;  %5925 = vmatprep.mubr.msk.f32.mxu1 %vm6461_vm2, %v6460_v5 }
 0xa3f   :  { %5931 = vmatpush3.msra.mxu0 %v7223_v23  ;;  %5936 = vmatprep.mubr.msk.f32.mxu0 %vm6461_vm2, %v6460_v5 }
 0xa40   :  { %5932 = vmatprep.subr.mxu0 %v6460_v5  ;;  %5939 = vmatprep.subr.mxu1 %v6460_v5 }
 0xa41   :  { %5933 = vmatpush3.msra.mxu0 %v7232_v25 }
 0xa42   :  { %5934 = vmatprep.subr.mxu0 %v6460_v5 }
 0xa43   :  { %5935 = vmatpush3.msra.mxu0 %v7240_v28 }
 0xa44   :  { %5950 = vmatprep.subr.mxu0 %v6460_v5 }
 0xaf4   :  { %v3479_v48 = vpop.f32.mrf.mxu0  ;;  %v3549_v22 = vpop.f32.mrf.mxu1 }
 0xaf5   :  { %v3480_v62 = vadd.f32 %v7294_v6, %v3479_v48  ;;  %v3550_v53 = vadd.f32 %v7305_v20, %v3549_v22 }
 0xaf6   :  { %v5894_v34 = vpop.f32.mrf.mxu0  ;;  %v5905_v0 = vpop.f32.mrf.mxu1 }
 0xaf7   :  { %v3624_v18 = vrot.slane %v3480_v62, 4  ;;  %v3634_v2 = vrot.slane %v3550_v53, 4 }
 0xaf9   :  { %v3626_v63 = vadd.f32 %v3624_v18, %v7296_v26  ;;  %v3636_v59 = vadd.f32 %v3634_v2, %v7307_v38 }
 0xafb   :  { %v5187_v55 = vmul.f32 -1.442695, %v3626_v63  ;;  %v5188_v57 = vmul.f32 -1.442695, %v3636_v59 }
 0xafc   :  { %v3619_v36 = vpop.f32.mrf.mxu0 }
 0xafd   :  { %6315 = vpow2.f32 %v5187_v55  ;;  %v3620_v31 = vadd.f32 %v7314_v39, %v3619_v36 }
 0xafe   :  { %v5916_v56 = vpop.f32.mrf.mxu0  ;;  %6317 = vpow2.f32 %v5188_v57 }
 0xaff   :  { %v3644_v58 = vrot.slane %v3620_v31, 4 }
 0xb0a   :  { %v6316_v47 = vpop.eup %6315 }
 0xb0b   :  { %v3630_v35 = vadd.f32 1.0, %v6316_v47  ;;  %v6318_v30 = vpop.eup %6317 }
 0xb0c   :  { %v3640_v41 = vadd.f32 1.0, %v6318_v30 }
 0xb0d   :  { %6319 = vrcp.f32 %v3630_v35 }
 0xb0e   :  { %6321 = vrcp.f32 %v3640_v41 }
 0xb1a   :  { %v6320_v54 = vpop.eup %6319 }
 0xb1b   :  { %v3646_v16 = vmul.f32 %v6320_v54, %v3644_v58  ;;  %v6322_v7 = vpop.eup %6321 }
 0xb1c   :  { %v3649_v29 = vsub.f32 1.0, %v6322_v7  ;;  %v3653_v49 = vmul.f32 %v6322_v7, %v3651_v45 }
 0xb1d   :  { %v3647_v43 = vadd.f32 %v3646_v16, %v7317_v13 }
 0xb1f   :  { %6323 = vtanh.f32 %v3647_v43 }
 0xb2c   :  { %v6324_v11 = vpop.eup %6323 }
 0xb2d   :  { %v3650_v12 = vmul.f32 %v6324_v11, %v3649_v29 }
 0xb2f   :  { %v7408_v33 = vadd.f32 %v3653_v49, %v3650_v12 }
 0xb31   :  { %v3656_v50 = vrot.slane %v7408_v33, 4  ;;  %v3897_v57 = vrot.slane %v7408_v33, 6 }
 0xb33   :  { %5926 = vmatmul.mubr.msk.f32.vlgmr.msra.gmra.mxu1 %vm356_vm4, %v3656_v50  ;;  %5937 = vmatmul.mubr.msk.f32.vlgmr.msra.gmra.mxu0 %vm356_vm4, %v3656_v50 }
 0xb34   :  { %5940 = vmatpush3.msra.mxu1 %v7220_v19  ;;  %5947 = vmatprep.mubr.msk.f32.mxu1 %vm6461_vm2, %v6460_v5 }
 0xb35   :  { %5941 = vmatprep.subr.mxu1 %v6460_v5  ;;  %5951 = vmatpush3.msra.mxu0 %v7189_v3 }
 0xb36   :  { %5942 = vmatpush3.msra.mxu1 %v7229_v24  ;;  %5952 = vmatprep.subr.mxu0 %v6460_v5 }
 0xb37   :  { %5943 = vmatprep.subr.mxu1 %v6460_v5  ;;  %5953 = vmatpush3.msra.mxu0 %v7200_v32 }
 0xb38   :  { %5944 = vmatpush3.msra.mxu1 %v7237_v27  ;;  %5954 = vmatprep.subr.mxu0 %v6460_v5 }
 0xb39   :  { %5945 = vmatprep.subr.mxu1 %v6460_v5  ;;  %5955 = vmatpush3.msra.mxu0 %v7205_v1 }
 0xb3a   :  { %5946 = vmatpush3.msra.mxu1 %v7245_v21  ;;  %5956 = vmatprep.subr.mxu0 %v6460_v5 }
 0xb3b   :  { %5948 = vmatmul.mubr.msk.f32.vlgmr.msra.gmra.mxu1 %vm356_vm4, %v3656_v50  ;;  %5961 = vmatprep.subr.mxu1 %v6460_v5 }
 0xb3c   :  { %5962 = vmatpush3.msra.mxu1 %v7216_v44  ;;  %5957 = vmatpush3.msra.mxu0 %v7209_v4 }
 0xb3d   :  { %5963 = vmatprep.subr.mxu1 %v6460_v5  ;;  %5958 = vmatprep.mubr.msk.f32.mxu0 %vm6461_vm2, %v6460_v5 }
 0xb3e   :  { %5964 = vmatpush3.msra.mxu1 %v7223_v23  ;;  %5969 = vmatprep.mubr.msk.f32.mxu1 %vm6461_vm2, %v6460_v5 }
 0xb3f   :  { %5965 = vmatprep.subr.mxu1 %v6460_v5  ;;  %5972 = vmatprep.subr.mxu0 %v6460_v5 }
 0xb40   :  { %5966 = vmatpush3.msra.mxu1 %v7232_v25 }
 0xb41   :  { %5967 = vmatprep.subr.mxu1 %v6460_v5 }
 0xb42   :  { %5968 = vmatpush3.msra.mxu1 %v7240_v28 }
 0xb43   :  { %5983 = vmatprep.subr.mxu1 %v6460_v5 }
 0xbf3   :  { %v3725_v51 = vpop.f32.mrf.mxu1  ;;  %v3795_v40 = vpop.f32.mrf.mxu0 }
 0xbf4   :  { %v3726_v8 = vadd.f32 %v7294_v6, %v3725_v51  ;;  %v3796_v15 = vadd.f32 %v7305_v20, %v3795_v40 }
 0xbf5   :  { %v5927_v52 = vpop.f32.mrf.mxu1  ;;  %v5938_v9 = vpop.f32.mrf.mxu0 }
 0xbf6   :  { %v3870_v14 = vrot.slane %v3726_v8, 2  ;;  %v3880_v61 = vrot.slane %v3796_v15, 2 }
 0xbf8   :  { %v3872_v37 = vadd.f32 %v3870_v14, %v7296_v26  ;;  %v3882_v62 = vadd.f32 %v3880_v61, %v7307_v38 }
 0xbfa   :  { %v5192_v17 = vmul.f32 -1.442695, %v3872_v37  ;;  %v5193_v34 = vmul.f32 -1.442695, %v3882_v62 }
 0xbfb   :  { %v3865_v48 = vpop.f32.mrf.mxu1 }
 0xbfc   :  { %6325 = vpow2.f32 %v5192_v17  ;;  %v3866_v63 = vadd.f32 %v7314_v39, %v3865_v48 }
 0xbfd   :  { %v5949_v22 = vpop.f32.mrf.mxu1  ;;  %6327 = vpow2.f32 %v5193_v34 }
 0xbfe   :  { %v3890_v2 = vrot.slane %v3866_v63, 2 }
 0xc09   :  { %v6326_v0 = vpop.eup %6325 }
 0xc0a   :  { %v3876_v18 = vadd.f32 1.0, %v6326_v0  ;;  %v6328_v53 = vpop.eup %6327 }
 0xc0b   :  { %v3886_v55 = vadd.f32 1.0, %v6328_v53 }
 0xc0c   :  { %6329 = vrcp.f32 %v3876_v18 }
 0xc0d   :  { %6331 = vrcp.f32 %v3886_v55 }
 0xc19   :  { %v6330_v36 = vpop.eup %6329 }
 0xc1a   :  { %v3892_v26 = vmul.f32 %v6330_v36, %v3890_v2  ;;  %v6332_v59 = vpop.eup %6331 }
 0xc1b   :  { %v3895_v38 = vsub.f32 1.0, %v6332_v59  ;;  %v3899_v30 = vmul.f32 %v6332_v59, %v3897_v57 }
 0xc1c   :  { %v3893_v56 = vadd.f32 %v3892_v26, %v7317_v13 }
 0xc1e   :  { %6333 = vtanh.f32 %v3893_v56 }
 0xc2b   :  { %v6334_v47 = vpop.eup %6333 }
 0xc2c   :  { %v3896_v35 = vmul.f32 %v6334_v47, %v3895_v38 }
 0xc2e   :  { %v3900_v31 = vadd.f32 %v3899_v30, %v3896_v35 }
 0xc30   :  { %v3902_v41 = vrot.slane %v3900_v31, 6 }
 0xc32   :  { %5959 = vmatmul.mubr.msk.f32.vlgmr.msra.gmra.mxu0 %vm356_vm4, %v3902_v41  ;;  %5970 = vmatmul.mubr.msk.f32.vlgmr.msra.gmra.mxu1 %vm356_vm4, %v3902_v41 }
 0xc33   :  { %5973 = vmatpush3.msra.mxu0 %v7220_v19  ;;  %5980 = vmatprep.mubr.msk.f32.mxu0 %vm6461_vm2, %v6460_v5 }
 0xc34   :  { %5974 = vmatprep.subr.mxu0 %v6460_v5  ;;  %5984 = vmatpush3.msra.mxu1 %v7189_v3 }
 0xc35   :  { %5975 = vmatpush3.msra.mxu0 %v7229_v24  ;;  %5985 = vmatprep.subr.mxu1 %v6460_v5 }
 0xc36   :  { %5976 = vmatprep.subr.mxu0 %v6460_v5  ;;  %5986 = vmatpush3.msra.mxu1 %v7200_v32 }
 0xc37   :  { %5977 = vmatpush3.msra.mxu0 %v7237_v27  ;;  %5987 = vmatprep.subr.mxu1 %v6460_v5 }
 0xc38   :  { %5978 = vmatprep.subr.mxu0 %v6460_v5  ;;  %5988 = vmatpush3.msra.mxu1 %v7205_v1 }
 0xc39   :  { %5979 = vmatpush3.msra.mxu0 %v7245_v21  ;;  %5989 = vmatprep.subr.mxu1 %v6460_v5 }
 0xc3a   :  { %5981 = vmatmul.mubr.msk.f32.vlgmr.msra.gmra.mxu0 %vm356_vm4, %v3902_v41  ;;  %5994 = vmatprep.subr.mxu0 %v6460_v5 }
 0xc3b   :  { %5995 = vmatpush3.msra.mxu0 %v7216_v44  ;;  %5990 = vmatpush3.msra.mxu1 %v7209_v4 }
 0xc3c   :  { %5996 = vmatprep.subr.mxu0 %v6460_v5  ;;  %5991 = vmatprep.mubr.msk.f32.mxu1 %vm6461_vm2, %v6460_v5 }
 0xc3d   :  { %5997 = vmatpush3.msra.mxu0 %v7223_v23  ;;  %6002 = vmatprep.mubr.msk.f32.mxu0 %vm6461_vm2, %v6460_v5 }
 0xc3e   :  { %5998 = vmatprep.subr.mxu0 %v6460_v5  ;;  %6005 = vmatprep.subr.mxu1 %v6460_v5 }
 0xc3f   :  { %5999 = vmatpush3.msra.mxu0 %v7232_v25 }
 0xc40   :  { %6000 = vmatprep.subr.mxu0 %v6460_v5 }
 0xc41   :  { %6001 = vmatpush3.msra.mxu0 %v7240_v28 }
 0xc42   :  { %6016 = vmatprep.subr.mxu0 %v6460_v5 }
 0xcf2   :  { %v3971_v13 = vpop.f32.mrf.mxu0  ;;  %v4041_v58 = vpop.f32.mrf.mxu1 }
 0xcf3   :  { %v3972_v54 = vadd.f32 %v7294_v6, %v3971_v13  ;;  %v4042_v29 = vadd.f32 %v7305_v20, %v4041_v58 }
 0xcf4   :  { %v5960_v16 = vpop.f32.mrf.mxu0  ;;  %v5971_v43 = vpop.f32.mrf.mxu1 }
 0xcf5   :  { %v4115_v7 = vadd.f32 %v3972_v54, %v7284_v42  ;;  %v4122_v12 = vadd.f32 %v4042_v29, %v7286_v60 }
 0xcf7   :  { %v5197_v45 = vmul.f32 -1.442695, %v4115_v7  ;;  %v5198_v33 = vmul.f32 -1.442695, %v4122_v12 }
 0xcf9   :  { %6335 = vpow2.f32 %v5197_v45 }
 0xcfa   :  { %v4111_v11 = vpop.f32.mrf.mxu0  ;;  %6337 = vpow2.f32 %v5198_v33 }
 0xcfb   :  { %v4112_v52 = vadd.f32 %v7314_v39, %v4111_v11 }
 0xcfc   :  { %v5982_v49 = vpop.f32.mrf.mxu0 }
 0xd06   :  { %v6336_v50 = vpop.eup %6335 }
 0xd07   :  { %v4119_v51 = vadd.f32 1.0, %v6336_v50  ;;  %v6338_v40 = vpop.eup %6337 }
 0xd08   :  { %v4126_v8 = vadd.f32 1.0, %v6338_v40 }
 0xd09   :  { %6339 = vrcp.f32 %v4119_v51 }
 0xd0a   :  { %6341 = vrcp.f32 %v4126_v8 }
 0xd16   :  { %v6340_v9 = vpop.eup %6339 }
 0xd17   :  { %v4129_v14 = vmul.f32 %v6340_v9, %v4112_v52  ;;  %v6342_v37 = vpop.eup %6341 }
 0xd18   :  { %v4132_v17 = vsub.f32 1.0, %v6342_v37  ;;  %v4135_v22 = vmul.f32 %v6342_v37, %v3902_v41 }
 0xd19   :  { %v4130_v15 = vadd.f32 %v4129_v14, %v7298_v10 }
 0xd1b   :  { %6343 = vtanh.f32 %v4130_v15 }
 0xd28   :  { %v6344_v61 = vpop.eup %6343 }
 0xd29   :  { %v4133_v48 = vmul.f32 %v6344_v61, %v4132_v17 }
 0xd2b   :  { %v7490_v62 = vadd.f32 %v4135_v22, %v4133_v48 }
 0xd2d   :  { %5992 = vmatmul.mubr.msk.f32.vlgmr.msra.gmra.mxu1 %vm356_vm4, %v7490_v62  ;;  %6003 = vmatmul.mubr.msk.f32.vlgmr.msra.gmra.mxu0 %vm356_vm4, %v7490_v62  ;;  %v4378_v29 = vrot.slane %v7490_v62, 6 }
 0xd2e   :  { %6006 = vmatpush3.msra.mxu1 %v7220_v19  ;;  %6013 = vmatprep.mubr.msk.f32.mxu1 %vm6461_vm2, %v6460_v5 }
 0xd2f   :  { %6007 = vmatprep.subr.mxu1 %v6460_v5  ;;  %6017 = vmatpush3.msra.mxu0 %v7189_v3 }
 0xd30   :  { %6008 = vmatpush3.msra.mxu1 %v7229_v24  ;;  %6018 = vmatprep.subr.mxu0 %v6460_v5 }
 0xd31   :  { %6009 = vmatprep.subr.mxu1 %v6460_v5  ;;  %6019 = vmatpush3.msra.mxu0 %v7200_v32 }
 0xd32   :  { %6010 = vmatpush3.msra.mxu1 %v7237_v27  ;;  %6020 = vmatprep.subr.mxu0 %v6460_v5 }
 0xd33   :  { %6011 = vmatprep.subr.mxu1 %v6460_v5  ;;  %6021 = vmatpush3.msra.mxu0 %v7205_v1 }
 0xd34   :  { %6012 = vmatpush3.msra.mxu1 %v7245_v21  ;;  %6022 = vmatprep.subr.mxu0 %v6460_v5 }
 0xd35   :  { %6014 = vmatmul.mubr.msk.f32.vlgmr.msra.gmra.mxu1 %vm356_vm4, %v7490_v62  ;;  %6027 = vmatprep.subr.mxu1 %v6460_v5 }
 0xd36   :  { %6028 = vmatpush3.msra.mxu1 %v7216_v44  ;;  %6023 = vmatpush3.msra.mxu0 %v7209_v4 }
 0xd37   :  { %6029 = vmatprep.subr.mxu1 %v6460_v5  ;;  %6024 = vmatprep.mubr.msk.f32.mxu0 %vm6461_vm2, %v6460_v5 }
 0xd38   :  { %6030 = vmatpush3.msra.mxu1 %v7223_v23  ;;  %6035 = vmatprep.mubr.msk.f32.mxu1 %vm6461_vm2, %v6460_v5 }
 0xd39   :  { %6031 = vmatprep.subr.mxu1 %v6460_v5  ;;  %6038 = vmatprep.subr.mxu0 %v6460_v5 }
 0xd3a   :  { %6032 = vmatpush3.msra.mxu1 %v7232_v25 }
 0xd3b   :  { %6033 = vmatprep.subr.mxu1 %v6460_v5 }
 0xd3c   :  { %6034 = vmatpush3.msra.mxu1 %v7240_v28 }
 0xd3d   :  { %6049 = vmatprep.subr.mxu1 %v6460_v5 }
 0xded   :  { %v4206_v34 = vpop.f32.mrf.mxu1  ;;  %v4276_v0 = vpop.f32.mrf.mxu0 }
 0xdee   :  { %v4207_v18 = vadd.f32 %v7294_v6, %v4206_v34  ;;  %v4277_v2 = vadd.f32 %v7305_v20, %v4276_v0 }
 0xdef   :  { %v5993_v53 = vpop.f32.mrf.mxu1  ;;  %v6004_v63 = vpop.f32.mrf.mxu0 }
 0xdf0   :  { %v4351_v55 = vrot.slane %v4207_v18, 6  ;;  %v4361_v56 = vrot.slane %v4277_v2, 6 }
 0xdf2   :  { %v4353_v36 = vadd.f32 %v4351_v55, %v7284_v42  ;;  %v4363_v38 = vadd.f32 %v4361_v56, %v7286_v60 }
 0xdf4   :  { %v5202_v26 = vmul.f32 -1.442695, %v4353_v36  ;;  %v5203_v47 = vmul.f32 -1.442695, %v4363_v38  ;;  %v4981_v38 = vld [vmem:[%s7706_s11 + $0x68] sm:$0xff] }
 0xdf5   :  { %v4346_v59 = vpop.f32.mrf.mxu1 }
 0xdf6   :  { %6345 = vpow2.f32 %v5202_v26  ;;  %v4347_v41 = vadd.f32 %v7314_v39, %v4346_v59  ;;  %v4983_v59 = vld [vmem:[%s7706_s11 + $0x78] sm:$0xff] }
 0xdf7   :  { %v6015_v57 = vpop.f32.mrf.mxu1  ;;  %6347 = vpow2.f32 %v5203_v47  ;;  %v4980_v47 = vld [vmem:[%s7706_s11 + $0x60] sm:$0xff] }
 0xdf8   :  { %v4371_v58 = vrot.slane %v4347_v41, 6  ;;  %v4982_v57 = vld [vmem:[%s7706_s11 + $0x70] sm:$0xff]  ;;  %v4976_v41 = vld [vmem:[%s7706_s11 + $0x40] sm:$0xff] }
 0xe03   :  { %v6346_v35 = vpop.eup %6345 }
 0xe04   :  { %v4357_v30 = vadd.f32 1.0, %v6346_v35  ;;  %v6348_v31 = vpop.eup %6347  ;;  %v4979_v35 = vld [vmem:[%s7706_s11 + $0x58] sm:$0xff] }
 0xe05   :  { %v4367_v13 = vadd.f32 1.0, %v6348_v31  ;;  %v4977_v31 = vld [vmem:[%s7706_s11 + $0x48] sm:$0xff] }
 0xe06   :  { %6349 = vrcp.f32 %v4357_v30  ;;  %v4978_v30 = vld [vmem:[%s7706_s11 + $0x50] sm:$0xff] }
 0xe07   :  { %6351 = vrcp.f32 %v4367_v13  ;;  %v4975_v13 = vld [vmem:[%s7706_s11 + $0x38] sm:$0xff] }
 0xe13   :  { %v6350_v54 = vpop.eup %6349 }
 0xe14   :  { %v4373_v16 = vmul.f32 %v6350_v54, %v4371_v58  ;;  %v6352_v7 = vpop.eup %6351  ;;  %v4974_v58 = vld [vmem:[%s7706_s11 + $0x30] sm:$0xff]  ;;  %v4973_v54 = vld [vmem:[%s7706_s11 + $0x28] sm:$0xff] }
 0xe15   :  { %v4376_v45 = vsub.f32 1.0, %v6352_v7  ;;  %v4380_v49 = vmul.f32 %v6352_v7, %v4378_v29 }
 0xe16   :  { %v4374_v43 = vadd.f32 %v4373_v16, %v7298_v10  ;;  %v4972_v16 = vld [vmem:[%s7706_s11 + $0x20] sm:$0xff] }
 0xe18   :  { %6353 = vtanh.f32 %v4374_v43  ;;  %v4971_v43 = vld [vmem:[%s7706_s11 + $0x18] sm:$0xff] }
 0xe25   :  { %v6354_v11 = vpop.eup %6353 }
 0xe26   :  { %v4377_v12 = vmul.f32 %v6354_v11, %v4376_v45 }
 0xe28   :  { %v7535_v33 = vadd.f32 %v4380_v49, %v4377_v12 }
 0xe2a   :  { %v4383_v50 = vrot.slane %v7535_v33, 2  ;;  %v4624_v53 = vrot.slane %v7535_v33, 6 }
 0xe2c   :  { %6025 = vmatmul.mubr.msk.f32.vlgmr.msra.gmra.mxu0 %vm356_vm4, %v4383_v50  ;;  %6036 = vmatmul.mubr.msk.f32.vlgmr.msra.gmra.mxu1 %vm356_vm4, %v4383_v50 }
 0xe2d   :  { %6039 = vmatpush3.msra.mxu0 %v7220_v19  ;;  %6046 = vmatprep.mubr.msk.f32.mxu0 %vm6461_vm2, %v6460_v5 }
 0xe2e   :  { %6040 = vmatprep.subr.mxu0 %v6460_v5  ;;  %6050 = vmatpush3.msra.mxu1 %v7189_v3 }
 0xe2f   :  { %6041 = vmatpush3.msra.mxu0 %v7229_v24  ;;  %6051 = vmatprep.subr.mxu1 %v6460_v5 }
 0xe30   :  { %6042 = vmatprep.subr.mxu0 %v6460_v5  ;;  %6052 = vmatpush3.msra.mxu1 %v7200_v32 }
 0xe31   :  { %6043 = vmatpush3.msra.mxu0 %v7237_v27  ;;  %6053 = vmatprep.subr.mxu1 %v6460_v5 }
 0xe32   :  { %6044 = vmatprep.subr.mxu0 %v6460_v5  ;;  %6054 = vmatpush3.msra.mxu1 %v7205_v1 }
 0xe33   :  { %6045 = vmatpush3.msra.mxu0 %v7245_v21  ;;  %6055 = vmatprep.subr.mxu1 %v6460_v5 }
 0xe34   :  { %6047 = vmatmul.mubr.msk.f32.vlgmr.msra.gmra.mxu0 %vm356_vm4, %v4383_v50  ;;  %6060 = vmatprep.subr.mxu0 %v6460_v5 }
 0xe35   :  { %6061 = vmatpush3.msra.mxu0 %v7216_v44  ;;  %6056 = vmatpush3.msra.mxu1 %v7209_v4 }
 0xe36   :  { %6062 = vmatprep.subr.mxu0 %v6460_v5  ;;  %6057 = vmatprep.mubr.msk.f32.mxu1 %vm6461_vm2, %v6460_v5 }
 0xe37   :  { %6063 = vmatpush3.msra.mxu0 %v7223_v23  ;;  %6068 = vmatprep.mubr.msk.f32.mxu0 %vm6461_vm2, %v6460_v5 }
 0xe38   :  { %6064 = vmatprep.subr.mxu0 %v6460_v5  ;;  %6071 = vmatprep.subr.mxu1 %v6460_v5 }
 0xe39   :  { %6065 = vmatpush3.msra.mxu0 %v7232_v25 }
 0xe3a   :  { %6066 = vmatprep.subr.mxu0 %v6460_v5 }
 0xe3b   :  { %6067 = vmatpush3.msra.mxu0 %v7240_v28 }
 0xe3c   :  { %6082 = vmatprep.subr.mxu0 %v6460_v5 }
 0xeec   :  { %v4452_v3 = vpop.f32.mrf.mxu0  ;;  %v4522_v32 = vpop.f32.mrf.mxu1 }
 0xeed   :  { %v4453_v1 = vadd.f32 %v7294_v6, %v4452_v3  ;;  %v4523_v51 = vadd.f32 %v7305_v20, %v4522_v32 }
 0xeee   :  { %v6026_v4 = vpop.f32.mrf.mxu0  ;;  %v6037_v44 = vpop.f32.mrf.mxu1 }
 0xeef   :  { %v4597_v23 = vrot.slane %v4453_v1, 4  ;;  %v4607_v52 = vrot.slane %v4523_v51, 4 }
 0xef1   :  { %v4599_v40 = vadd.f32 %v4597_v23, %v7284_v42  ;;  %v4609_v28 = vadd.f32 %v4607_v52, %v7286_v60 }
 0xef3   :  { %v5207_v8 = vmul.f32 -1.442695, %v4599_v40  ;;  %v5208_v14 = vmul.f32 -1.442695, %v4609_v28 }
 0xef4   :  { %v4592_v25 = vpop.f32.mrf.mxu0 }
 0xef5   :  { %6355 = vpow2.f32 %v5207_v8  ;;  %v4593_v61 = vadd.f32 %v7314_v39, %v4592_v25 }
 0xef6   :  { %v6048_v9 = vpop.f32.mrf.mxu0  ;;  %6357 = vpow2.f32 %v5208_v14 }
 0xef7   :  { %v4617_v22 = vrot.slane %v4593_v61, 4 }
 0xf02   :  { %v6356_v15 = vpop.eup %6355 }
 0xf03   :  { %v4603_v37 = vadd.f32 1.0, %v6356_v15  ;;  %v6358_v17 = vpop.eup %6357 }
 0xf04   :  { %v4613_v48 = vadd.f32 1.0, %v6358_v17 }
 0xf05   :  { %6359 = vrcp.f32 %v4603_v37 }
 0xf06   :  { %6361 = vrcp.f32 %v4613_v48 }
 0xf12   :  { %v6360_v62 = vpop.eup %6359 }
 0xf13   :  { %v4619_v34 = vmul.f32 %v6360_v62, %v4617_v22  ;;  %v6362_v18 = vpop.eup %6361  ;;  %v4969_v62 = vld [vmem:[%s7706_s11 + $0x8] sm:$0xff] }
 0xf14   :  { %v4622_v63 = vsub.f32 1.0, %v6362_v18  ;;  %v4626_v36 = vmul.f32 %v6362_v18, %v4624_v53 }
 0xf15   :  { %v4620_v0 = vadd.f32 %v4619_v34, %v7298_v10  ;;  %v4968_v34 = vld [vmem:[%s7706_s11] sm:$0xff] }
 0xf17   :  { %6363 = vtanh.f32 %v4620_v0 }
 0xf24   :  { %v6364_v55 = vpop.eup %6363 }
 0xf25   :  { %v4623_v2 = vmul.f32 %v6364_v55, %v4622_v63  ;;  %v5216_v55 = vld [vmem:[%s7707_s12] ss:$0 sm:$0xff] }
 0xf27   :  { %v7578_v26 = vadd.f32 %v4626_v36, %v4623_v2 }
 0xf29   :  { %v4629_v56 = vrot.slane %v7578_v26, 4  ;;  %v4870_v14 = vrot.slane %v7578_v26, 6 }
 0xf2b   :  { %6058 = vmatmul.mubr.msk.f32.vlgmr.msra.gmra.mxu1 %vm356_vm4, %v4629_v56  ;;  %6069 = vmatmul.mubr.msk.f32.vlgmr.msra.gmra.mxu0 %vm356_vm4, %v4629_v56 }
 0xf2c   :  { %6072 = vmatpush3.msra.mxu1 %v7220_v19  ;;  %6079 = vmatprep.mubr.msk.f32.mxu1 %vm6461_vm2, %v6460_v5  ;;  %v4886_v19 = vld [vmem:[%s7704_s9 + $0x18] sm:$0xff] }
 0xf2d   :  { %6073 = vmatprep.subr.mxu1 %v6460_v5  ;;  %6090 = vmatprep.mubr.msk.f32.mxu0 %vm6461_vm2, %v6460_v5 }
 0xf2e   :  { %6074 = vmatpush3.msra.mxu1 %v7229_v24  ;;  %v4885_v24 = vld [vmem:[%s7704_s9 + $0x10] sm:$0xff]  ;;  %6083 = vmatpush3.msra.mxu0 %v4886_v19 }
 0xf2f   :  { %6075 = vmatprep.subr.mxu1 %v6460_v5  ;;  %6084 = vmatprep.subr.mxu0 %v6460_v5 }
 0xf30   :  { %6076 = vmatpush3.msra.mxu1 %v7237_v27  ;;  %v4884_v27 = vld [vmem:[%s7704_s9 + $0x8] sm:$0xff]  ;;  %6085 = vmatpush3.msra.mxu0 %v4885_v24 }
 0xf31   :  { %6077 = vmatprep.subr.mxu1 %v6460_v5  ;;  %6086 = vmatprep.subr.mxu0 %v6460_v5 }
 0xf32   :  { %6078 = vmatpush3.msra.mxu1 %v7245_v21  ;;  %v4883_v21 = vld [vmem:[%s7704_s9] sm:$0xff]  ;;  %6087 = vmatpush3.msra.mxu0 %v4884_v27 }
 0xf33   :  { %6080 = vmatmul.mubr.msk.f32.vlgmr.msra.gmra.mxu1 %vm356_vm4, %v4629_v56  ;;  %6093 = vmatprep.subr.mxu1 %v6460_v5 }
 0xf34   :  { %6125 = vmatprep.mubr.msk.f32.mxu1 %vm6461_vm2, %v6460_v5  ;;  %6088 = vmatprep.subr.mxu0 %v6460_v5 }
 0xf35   :  { %6089 = vmatpush3.msra.mxu0 %v4883_v21  ;;  %6094 = vmatpush3.msra.mxu1 %v4983_v59 }
 0xf36   :  { %6095 = vmatprep.subr.mxu1 %v6460_v5 }
 0xf37   :  { %6096 = vmatpush3.msra.mxu1 %v4982_v57 }
 0xf38   :  { %6097 = vmatprep.subr.mxu1 %v6460_v5 }
 0xf39   :  { %6098 = vmatpush3.msra.mxu1 %v4981_v38 }
 0xf3a   :  { %6099 = vmatprep.subr.mxu1 %v6460_v5 }
 0xf3b   :  { %6100 = vmatpush3.msra.mxu1 %v4980_v47 }
 0xf3c   :  { %6101 = vmatprep.subr.mxu1 %v6460_v5 }
 0xf3d   :  { %6102 = vmatpush3.msra.mxu1 %v4979_v35 }
 0xf3e   :  { %6103 = vmatprep.subr.mxu1 %v6460_v5 }
 0xf3f   :  { %6104 = vmatpush3.msra.mxu1 %v4978_v30 }
 0xf40   :  { %6105 = vmatprep.subr.mxu1 %v6460_v5 }
 0xf41   :  { %6106 = vmatpush3.msra.mxu1 %v4977_v31 }
 0xf42   :  { %6107 = vmatprep.subr.mxu1 %v6460_v5 }
 0xf43   :  { %6108 = vmatpush3.msra.mxu1 %v4976_v41 }
 0xf44   :  { %6109 = vmatprep.subr.mxu1 %v6460_v5 }
 0xf45   :  { %6110 = vmatpush3.msra.mxu1 %v4975_v13 }
 0xf46   :  { %6111 = vmatprep.subr.mxu1 %v6460_v5 }
 0xf47   :  { %6112 = vmatpush3.msra.mxu1 %v4974_v58 }
 0xf48   :  { %6113 = vmatprep.subr.mxu1 %v6460_v5 }
 0xf49   :  { %6114 = vmatpush3.msra.mxu1 %v4973_v54 }
 0xf4a   :  { %6115 = vmatprep.subr.mxu1 %v6460_v5 }
 0xf4b   :  { %6116 = vmatpush3.msra.mxu1 %v4972_v16 }
 0xf4c   :  { %6117 = vmatprep.subr.mxu1 %v6460_v5 }
 0xf4d   :  { %6118 = vmatpush3.msra.mxu1 %v4971_v43 }
 0xf4e   :  { %6119 = vmatprep.subr.mxu1 %v6460_v5 }
 0xfeb   :  { %v4698_v7 = vpop.f32.mrf.mxu1  ;;  %v4768_v45 = vpop.f32.mrf.mxu0 }
 0xfec   :  { %v4699_v29 = vadd.f32 %v7294_v6, %v4698_v7  ;;  %v4769_v33 = vadd.f32 %v7305_v20, %v4768_v45 }
 0xfed   :  { %v6059_v11 = vpop.f32.mrf.mxu1  ;;  %v6070_v12 = vpop.f32.mrf.mxu0 }
 0xfee   :  { %v4843_v49 = vrot.slane %v4699_v29, 2  ;;  %v4853_v32 = vrot.slane %v4769_v33, 2 }
 0xff0   :  { %v4845_v50 = vadd.f32 %v4843_v49, %v7284_v42  ;;  %v4855_v44 = vadd.f32 %v4853_v32, %v7286_v60 }
 0xff2   :  { %v5212_v3 = vmul.f32 -1.442695, %v4845_v50  ;;  %v5213_v23 = vmul.f32 -1.442695, %v4855_v44 }
 0xff3   :  { %v4838_v1 = vpop.f32.mrf.mxu1 }
 0xff4   :  { %6365 = vpow2.f32 %v5212_v3  ;;  %v4839_v8 = vadd.f32 %v7314_v39, %v4838_v1 }
 0xff5   :  { %v6081_v4 = vpop.f32.mrf.mxu1  ;;  %6367 = vpow2.f32 %v5213_v23 }
 0xff6   :  { %v4863_v25 = vrot.slane %v4839_v8, 2 }
0x1001   :  { %v6366_v51 = vpop.eup %6365 }
0x1002   :  { %v4849_v40 = vadd.f32 1.0, %v6366_v51  ;;  %v6368_v6 = vpop.eup %6367 }
0x1003   :  { %v4859_v52 = vadd.f32 1.0, %v6368_v6 }
0x1004   :  { %6369 = vrcp.f32 %v4849_v40 }
0x1005   :  { %6371 = vrcp.f32 %v4859_v52 }
0x1011   :  { %v6370_v20 = vpop.eup %6369 }
0x1012   :  { %v4865_v42 = vmul.f32 %v6370_v20, %v4863_v25  ;;  %v6372_v28 = vpop.eup %6371 }
0x1013   :  { %v4868_v60 = vsub.f32 1.0, %v6372_v28  ;;  %v4872_v17 = vmul.f32 %v6372_v28, %v4870_v14 }
0x1014   :  { %v4866_v9 = vadd.f32 %v4865_v42, %v7298_v10  ;;  %v4970_v10 = vld [vmem:[%s7706_s11 + $0x10] sm:$0xff]  ;;  %s6430_s11 = scalar_lea.vmem %s5070_s29, 64 }
0x1015   :  { %6120 = vmatpush3.msra.mxu1 %v4970_v10  ;;  %p6431_p10 = scmp.ne.s32.totalorder %s5070_s29, %s6430_s11  ;;  %p6436_p12 = scmp.lt.s32.totalorder %s6430_s11, %s6430_s11 }
0x1016   :  { %6373 = vtanh.f32 %v4866_v9  ;;  %6121 = vmatprep.subr.mxu1 %v6460_v5 }
0x1017   :  { %6122 = vmatpush3.msra.mxu1 %v4969_v62  ;;  %p6437_p13 = por %p6436_p12, %p6435_p11 }
0x1018   :  { %6123 = vmatprep.subr.mxu1 %v6460_v5 }
0x1019   :  { %6124 = vmatpush3.msra.mxu1 %v4968_v34  ;;  %p6438_p0 = pnand %p6437_p13, %p6431_p10 }
0x1023   :  { %v6374_v15 = vpop.eup %6373 }
0x1024   :  { %v4869_v37 = vmul.f32 %v6374_v15, %v4868_v60 }
0x1026   :  { %v4873_v61 = vadd.f32 %v4872_v17, %v4869_v37 }
0x1028   :  { %v4879_v48 = vrot.slane %v4873_v61, 4 }
0x102a   :  { %v4881_v39 = vsel %vm2620_vm6, %v7194_v46, %v4879_v48  ;;  %v5214_v46 = vld [vmem:[%s7705_s10] ss:$0 sm:$0xff] }
0x102b   :  { %v4882_v22 = vmax.f32 %v4881_v39, 0.0 }
0x102d   :  { %6091 = vmatmul.mubr.msk.f32.vlgmr.msra.gmra.mxu0 %vm356_vm4, %v4882_v22 }
0x10ed   :  { %v4963_v0 = vpop.f32.mrf.mxu0 }
0x10ee   :  { %v4964_v18 = vadd.f32 %v5214_v46, %v4963_v0 }
0x10ef   :  { %v6092_v53 = vpop.f32.mrf.mxu0 }
0x10f0   :  { %v4967_v63 = vmax.f32 %v4964_v18, 0.0 }
0x10f2   :  { %6126 = vmatmul.mubr.f32.vlgmr.msra.gmra.mxu1 %v4967_v63 }
0x11b2   :  { %v5057_v2 = vpop.f32.mrf.mxu1 }
0x11b3   :  { %v5058_v36 = vadd.f32 %v5216_v55, %v5057_v2 }
0x11b4   :  { %v6127_v5 = vpop.f32.mrf.mxu1 }
0x11b5   :  { %5062 = vst.msk [vmem:[#allocation7] sm:$0xf] %vm5061_vm10, %v5058_v36 }
0x11b6   :  { %6441 = shalt.err (!%p6438_p0)
}
0x11b7   :  { %5072 = dma.vmem_to_hbm [thread:$0]  %s5070_s29, 64, %s7708_s13, [#allocation4]  }
0x11b8   :  { %6454 = dma.done.wait [#allocation4], 64  }
0x11b9   :  { %6455 = vsyncadd [#allocation4], 4294967232 }
0x11ba   :  { %5076 = vsyncpa [#allocation3], 1 }
0x11bb   :  { %5077 = vsyncpa [#allocation6], 1 }
0x11bc   :  { %5078 = vsyncpa [#allocation4], 1 }

</bundles_post_ra>
